<compile_context>
chip_gen: v6e
topology: v6e:2x2x1
jax: 0.10.0
libtpu: 0.0.40
codegen_flags: <defaults>
</compile_context>

<pallas_src>
import jax
import jax.numpy as jnp
from jax.experimental import pallas as pl
from jax.experimental.pallas import tpu as pltpu

D_IN = 6169
D_IN_PAD = 6272            # 49 * 128, zero-padded (exact: padded cols are zero)
TK = 896                   # 7 * 128 -> 7 K-reduction steps for layer 1
H1, H2, H3, H4 = 1024, 512, 256, 128
NUM_CLASSES = 100
NC_PAD = 128               # lane-dense output / W5 column padding
MAX_TB = 128               # max batch-tile rows per grid step


def _round_up(n, m):
    return ((n + m - 1) // m) * m


def _mlp_kernel(x_ref, w1_ref, b1_ref, w2_ref, b2_ref, w3_ref, b3_ref,
                w4_ref, b4_ref, w5_ref, b5_ref, out_ref, acc_ref):
    k = pl.program_id(1)

    @pl.when(k == 0)
    def _():
        acc_ref[...] = jnp.zeros_like(acc_ref)

    # Layer-1 matmul (K = 6169 padded to 6272) accumulated over K tiles,
    # bf16 operands -> f32 accumulator on the MXU.
    acc_ref[...] += jnp.dot(x_ref[...], w1_ref[...],
                            preferred_element_type=jnp.float32)

    @pl.when(k == pl.num_programs(1) - 1)
    def _():
        h1 = jnp.tanh(acc_ref[...] + b1_ref[...]).astype(jnp.bfloat16)
        h2 = jnp.tanh(jnp.dot(h1, w2_ref[...],
                              preferred_element_type=jnp.float32)
                      + b2_ref[...]).astype(jnp.bfloat16)
        h3 = jnp.tanh(jnp.dot(h2, w3_ref[...],
                              preferred_element_type=jnp.float32)
                      + b3_ref[...]).astype(jnp.bfloat16)
        h4 = jnp.tanh(jnp.dot(h3, w4_ref[...],
                              preferred_element_type=jnp.float32)
                      + b4_ref[...]).astype(jnp.bfloat16)
        out = jnp.dot(h4, w5_ref[...],
                      preferred_element_type=jnp.float32) + b5_ref[...]
        out_ref[...] = out.astype(out_ref.dtype)


def prepare_params(params):
    """One-time param prep (do NOT call per forward): pad W1's K dim, pad
    W5/b5 classes to 128 lanes, cast weights to bf16 (biases stay f32)."""
    prep = {}
    w1 = jnp.pad(params["w1"], ((0, D_IN_PAD - D_IN), (0, 0)))
    prep["w1"] = w1.astype(jnp.bfloat16)
    prep["b1"] = params["b1"].astype(jnp.float32)
    for i in (2, 3, 4):
        prep[f"w{i}"] = params[f"w{i}"].astype(jnp.bfloat16)
        prep[f"b{i}"] = params[f"b{i}"].astype(jnp.float32)
    prep["w5"] = jnp.pad(params["w5"],
                         ((0, 0), (0, NC_PAD - NUM_CLASSES))).astype(jnp.bfloat16)
    prep["b5"] = jnp.pad(params["b5"],
                         ((0, 0), (0, NC_PAD - NUM_CLASSES))).astype(jnp.float32)
    return jax.tree.map(jax.device_put, prep)


@jax.jit
def texas_classifier_forward(x, prep):
    """x: (B, 6169) float32.  prep: output of prepare_params (bf16 weights)."""
    B = x.shape[0]
    TB = min(MAX_TB, _round_up(B, 8))          # batch tile (>= 8 sublanes)
    B_pad = _round_up(B, TB)
    # Only x is padded per call (feature dim zero-pad is exact; padded W1 rows
    # are zero, so results match the unpadded matmul).
    x_pad = jnp.pad(x, ((0, B_pad - B), (0, D_IN_PAD - D_IN))).astype(jnp.bfloat16)

    nb = B_pad // TB
    nk = D_IN_PAD // TK

    grid_spec = pltpu.PrefetchScalarGridSpec(
        num_scalar_prefetch=0,
        grid=(nb, nk),
        in_specs=[
            pl.BlockSpec((TB, TK), lambda b, k: (b, k)),           # x tile
            pl.BlockSpec((TK, H1), lambda b, k: (k, 0)),           # W1 tile
            pl.BlockSpec((1, H1), lambda b, k: (0, 0)),            # b1
            pl.BlockSpec((H1, H2), lambda b, k: (0, 0)),           # W2
            pl.BlockSpec((1, H2), lambda b, k: (0, 0)),            # b2
            pl.BlockSpec((H2, H3), lambda b, k: (0, 0)),           # W3
            pl.BlockSpec((1, H3), lambda b, k: (0, 0)),            # b3
            pl.BlockSpec((H3, H4), lambda b, k: (0, 0)),           # W4
            pl.BlockSpec((1, H4), lambda b, k: (0, 0)),            # b4
            pl.BlockSpec((H4, NC_PAD), lambda b, k: (0, 0)),       # W5 (padded)
            pl.BlockSpec((1, NC_PAD), lambda b, k: (0, 0)),        # b5 (padded)
        ],
        out_specs=pl.BlockSpec((TB, NC_PAD), lambda b, k: (b, 0)),
        scratch_shapes=[pltpu.VMEM((TB, H1), jnp.float32)],
    )

    out = pl.pallas_call(
        _mlp_kernel,
        out_shape=jax.ShapeDtypeStruct((B_pad, NC_PAD), jnp.float32),
        grid_spec=grid_spec,
        compiler_params=pltpu.CompilerParams(
            dimension_semantics=("parallel", "arbitrary"),
            vmem_limit_bytes=32 << 20,
        ),
    )(x_pad, prep["w1"], prep["b1"], prep["w2"], prep["b2"],
      prep["w3"], prep["b3"], prep["w4"], prep["b4"],
      prep["w5"], prep["b5"])

    return out[:B, :NUM_CLASSES]


def _init_params(key):
    """Deterministic init mirroring nn.Linear default U(-1/sqrt(fan_in), +),
    stored pre-transposed as (in, out) so the kernel does x @ W + b."""
    dims = [(D_IN, H1), (H1, H2), (H2, H3), (H3, H4), (H4, NUM_CLASSES)]
    params = {}
    for i, (fi, fo) in enumerate(dims, start=1):
        key, kw, kb = jax.random.split(key, 3)
        bound = 1.0 / jnp.sqrt(fi)
        params[f"w{i}"] = jax.random.uniform(
            kw, (fi, fo), jnp.float32, -bound, bound)
        params[f"b{i}"] = jax.random.uniform(
            kb, (1, fo), jnp.float32, -bound, bound)
    return params


def _reference_f32(x, p):
    """Pure f32 math on the original params (the PyTorch semantics)."""
    h = jnp.tanh(x @ p["w1"] + p["b1"])
    h = jnp.tanh(h @ p["w2"] + p["b2"])
    h = jnp.tanh(h @ p["w3"] + p["b3"])
    h = jnp.tanh(h @ p["w4"] + p["b4"])
    return h @ p["w5"] + p["b5"]


def _reference_prepared(x, prep):
    """Reference that uses the same bf16-stored weights / bf16 intermediates
    the kernel uses (f32 accumulation), for a tight numerical check."""
    xb = jnp.pad(x, ((0, 0), (0, D_IN_PAD - D_IN))).astype(jnp.bfloat16)
    h = jnp.tanh(jnp.dot(xb, prep["w1"],
                         preferred_element_type=jnp.float32) + prep["b1"])
    h = jnp.tanh(jnp.dot(h.astype(jnp.bfloat16), prep["w2"],
                         preferred_element_type=jnp.float32) + prep["b2"])
    h = jnp.tanh(jnp.dot(h.astype(jnp.bfloat16), prep["w3"],
                         preferred_element_type=jnp.float32) + prep["b3"])
    h = jnp.tanh(jnp.dot(h.astype(jnp.bfloat16), prep["w4"],
                         preferred_element_type=jnp.float32) + prep["b4"])
    out = jnp.dot(h.astype(jnp.bfloat16), prep["w5"],
                  preferred_element_type=jnp.float32) + prep["b5"]
    return out[:, :NUM_CLASSES]


if __name__ == "__main__":
    key = jax.random.PRNGKey(0)
    key, kx = jax.random.split(key)
    batch = 2
    x = jax.random.normal(kx, (batch, D_IN), jnp.float32)
    params = _init_params(key)
    prep = prepare_params(params)          # one-time, outside the jitted forward

    out = texas_classifier_forward(x, prep)
    out = jax.block_until_ready(out)
    assert out.shape == (batch, NUM_CLASSES)

    # Tight check vs a reference using the same bf16 weights / intermediates.
    ref_bf16 = _reference_prepared(x, prep)
    assert jnp.allclose(out, ref_bf16, atol=2e-2, rtol=2e-2), \
        "mismatch vs bf16 reference"

    # Looser sanity check vs the pure-f32 PyTorch-equivalent math (weights are
    # stored in bf16, so numerics differ at the ~1e-2 level).
    ref_f32 = _reference_f32(x, params)
    assert jnp.allclose(out, ref_f32, atol=8e-2, rtol=8e-2), \
        "mismatch vs f32 reference"

    print("KERNEL_OK")
</pallas_src>

<mosaic_0001>
module attributes {stable_mosaic.version = 11 : i64} {
  func.func @_mlp_kernel(%arg0: i32, %arg1: i32, %arg2: memref<8x896xbf16, #tpu.memory_space<vmem>>, %arg3: memref<896x1024xbf16, #tpu.memory_space<vmem>>, %arg4: memref<1x1024xf32, #tpu.memory_space<vmem>>, %arg5: memref<1024x512xbf16, #tpu.memory_space<vmem>>, %arg6: memref<1x512xf32, #tpu.memory_space<vmem>>, %arg7: memref<512x256xbf16, #tpu.memory_space<vmem>>, %arg8: memref<1x256xf32, #tpu.memory_space<vmem>>, %arg9: memref<256x128xbf16, #tpu.memory_space<vmem>>, %arg10: memref<1x128xf32, #tpu.memory_space<vmem>>, %arg11: memref<128x128xbf16, #tpu.memory_space<vmem>>, %arg12: memref<1x128xf32, #tpu.memory_space<vmem>>, %arg13: memref<8x128xf32, #tpu.memory_space<vmem>>, %arg14: memref<8x1024xf32, #tpu.memory_space<vmem>>) attributes {dimension_semantics = [#tpu.dimension_semantics<parallel>, #tpu.dimension_semantics<arbitrary>], iteration_bounds = array<i64: 1, 7>, scalar_prefetch = 0 : i64, scratch_operands = 1 : i64, tpu.core_type = #tpu.core_type<tc>, window_params = [{transform_indices = @transform_0, window_bounds = array<i64: 8, 896>}, {transform_indices = @transform_1, window_bounds = array<i64: 896, 1024>}, {pipeline_mode = #tpu.pipeline_mode<synchronous>, transform_indices = @transform_2, window_bounds = array<i64: 1, 1024>}, {pipeline_mode = #tpu.pipeline_mode<synchronous>, transform_indices = @transform_3, window_bounds = array<i64: 1024, 512>}, {pipeline_mode = #tpu.pipeline_mode<synchronous>, transform_indices = @transform_4, window_bounds = array<i64: 1, 512>}, {pipeline_mode = #tpu.pipeline_mode<synchronous>, transform_indices = @transform_5, window_bounds = array<i64: 512, 256>}, {pipeline_mode = #tpu.pipeline_mode<synchronous>, transform_indices = @transform_6, window_bounds = array<i64: 1, 256>}, {pipeline_mode = #tpu.pipeline_mode<synchronous>, transform_indices = @transform_7, window_bounds = array<i64: 256, 128>}, {pipeline_mode = #tpu.pipeline_mode<synchronous>, transform_indices = @transform_8, window_bounds = array<i64: 1, 128>}, {pipeline_mode = #tpu.pipeline_mode<synchronous>, transform_indices = @transform_9, window_bounds = array<i64: 128, 128>}, {pipeline_mode = #tpu.pipeline_mode<synchronous>, transform_indices = @transform_10, window_bounds = array<i64: 1, 128>}, {transform_indices = @transform_11, window_bounds = array<i64: 8, 128>}]} {
    %c0_i32 = arith.constant 0 : i32
    %0 = arith.cmpi eq, %arg1, %c0_i32 : i32
    %1 = arith.extui %0 : i1 to i32
    %c0_i32_0 = arith.constant 0 : i32
    %2 = arith.cmpi ne, %1, %c0_i32_0 : i32
    scf.if %2 {
      %cst_9 = arith.constant 0.000000e+00 : f32
      %12 = vector.broadcast %cst_9 : f32 to vector<8x1024xf32>
      %c0_10 = arith.constant 0 : index
      %c0_11 = arith.constant 0 : index
      %13 = vector.load %arg14[%c0_10, %c0_11] : memref<8x1024xf32, #tpu.memory_space<vmem>>, vector<8x1024xf32>
      tpu.vector_store %arg14[%c0_10, %c0_11], %12 {strides = array<i32>} : memref<8x1024xf32, #tpu.memory_space<vmem>>, vector<8x1024xf32>,
    } else {
    }
    %c0 = arith.constant 0 : index
    %c0_1 = arith.constant 0 : index
    %3 = vector.load %arg14[%c0, %c0_1] : memref<8x1024xf32, #tpu.memory_space<vmem>>, vector<8x1024xf32>
    %c0_2 = arith.constant 0 : index
    %c0_3 = arith.constant 0 : index
    %4 = vector.load %arg2[%c0_2, %c0_3] : memref<8x896xbf16, #tpu.memory_space<vmem>>, vector<8x896xbf16>
    %c0_4 = arith.constant 0 : index
    %c0_5 = arith.constant 0 : index
    %5 = vector.load %arg3[%c0_4, %c0_5] : memref<896x1024xbf16, #tpu.memory_space<vmem>>, vector<896x1024xbf16>
    %cst = arith.constant dense<0.000000e+00> : vector<8x1024xf32>
    %6 = tpu.matmul %4, %5, %cst {dimension_numbers = #tpu.dot_dimension_numbers<[1], [0], [0], [1], [0, 0, 1, 1], [], []>} : vector<8x896xbf16>, vector<896x1024xbf16>, vector<8x1024xf32> -> vector<8x1024xf32>
    %7 = arith.addf %3, %6 : vector<8x1024xf32>
    %c0_6 = arith.constant 0 : index
    %c0_7 = arith.constant 0 : index
    %8 = vector.load %arg14[%c0_6, %c0_7] : memref<8x1024xf32, #tpu.memory_space<vmem>>, vector<8x1024xf32>
    tpu.vector_store %arg14[%c0_6, %c0_7], %7 {strides = array<i32>} : memref<8x1024xf32, #tpu.memory_space<vmem>>, vector<8x1024xf32>,
    %c6_i32 = arith.constant 6 : i32
    %9 = arith.cmpi eq, %arg1, %c6_i32 : i32
    %10 = arith.extui %9 : i1 to i32
    %c0_i32_8 = arith.constant 0 : i32
    %11 = arith.cmpi ne, %10, %c0_i32_8 : i32
    scf.if %11 {
      %c0_9 = arith.constant 0 : index
      %c0_10 = arith.constant 0 : index
      %12 = vector.load %arg14[%c0_9, %c0_10] : memref<8x1024xf32, #tpu.memory_space<vmem>>, vector<8x1024xf32>
      %c0_11 = arith.constant 0 : index
      %c0_12 = arith.constant 0 : index
      %13 = vector.load %arg4[%c0_11, %c0_12] : memref<1x1024xf32, #tpu.memory_space<vmem>>, vector<1x1024xf32>
      %14 = vector.broadcast %13 : vector<1x1024xf32> to vector<8x1024xf32>
      %15 = arith.addf %12, %14 : vector<8x1024xf32>
      %16 = math.tanh %15 : vector<8x1024xf32>
      %17 = arith.truncf %16 : vector<8x1024xf32> to vector<8x1024xbf16>
      %c0_13 = arith.constant 0 : index
      %c0_14 = arith.constant 0 : index
      %18 = vector.load %arg5[%c0_13, %c0_14] : memref<1024x512xbf16, #tpu.memory_space<vmem>>, vector<1024x512xbf16>
      %cst_15 = arith.constant dense<0.000000e+00> : vector<8x512xf32>
      %19 = tpu.matmul %17, %18, %cst_15 {dimension_numbers = #tpu.dot_dimension_numbers<[1], [0], [0], [1], [0, 0, 1, 1], [], []>} : vector<8x1024xbf16>, vector<1024x512xbf16>, vector<8x512xf32> -> vector<8x512xf32>
      %c0_16 = arith.constant 0 : index
      %c0_17 = arith.constant 0 : index
      %20 = vector.load %arg6[%c0_16, %c0_17] : memref<1x512xf32, #tpu.memory_space<vmem>>, vector<1x512xf32>
      %21 = vector.broadcast %20 : vector<1x512xf32> to vector<8x512xf32>
      %22 = arith.addf %19, %21 : vector<8x512xf32>
      %23 = math.tanh %22 : vector<8x512xf32>
      %24 = arith.truncf %23 : vector<8x512xf32> to vector<8x512xbf16>
      %c0_18 = arith.constant 0 : index
      %c0_19 = arith.constant 0 : index
      %25 = vector.load %arg7[%c0_18, %c0_19] : memref<512x256xbf16, #tpu.memory_space<vmem>>, vector<512x256xbf16>
      %cst_20 = arith.constant dense<0.000000e+00> : vector<8x256xf32>
      %26 = tpu.matmul %24, %25, %cst_20 {dimension_numbers = #tpu.dot_dimension_numbers<[1], [0], [0], [1], [0, 0, 1, 1], [], []>} : vector<8x512xbf16>, vector<512x256xbf16>, vector<8x256xf32> -> vector<8x256xf32>
      %c0_21 = arith.constant 0 : index
      %c0_22 = arith.constant 0 : index
      %27 = vector.load %arg8[%c0_21, %c0_22] : memref<1x256xf32, #tpu.memory_space<vmem>>, vector<1x256xf32>
      %28 = vector.broadcast %27 : vector<1x256xf32> to vector<8x256xf32>
      %29 = arith.addf %26, %28 : vector<8x256xf32>
      %30 = math.tanh %29 : vector<8x256xf32>
      %31 = arith.truncf %30 : vector<8x256xf32> to vector<8x256xbf16>
      %c0_23 = arith.constant 0 : index
      %c0_24 = arith.constant 0 : index
      %32 = vector.load %arg9[%c0_23, %c0_24] : memref<256x128xbf16, #tpu.memory_space<vmem>>, vector<256x128xbf16>
      %cst_25 = arith.constant dense<0.000000e+00> : vector<8x128xf32>
      %33 = tpu.matmul %31, %32, %cst_25 {dimension_numbers = #tpu.dot_dimension_numbers<[1], [0], [0], [1], [0, 0, 1, 1], [], []>} : vector<8x256xbf16>, vector<256x128xbf16>, vector<8x128xf32> -> vector<8x128xf32>
      %c0_26 = arith.constant 0 : index
      %c0_27 = arith.constant 0 : index
      %34 = vector.load %arg10[%c0_26, %c0_27] : memref<1x128xf32, #tpu.memory_space<vmem>>, vector<1x128xf32>
      %35 = vector.broadcast %34 : vector<1x128xf32> to vector<8x128xf32>
      %36 = arith.addf %33, %35 : vector<8x128xf32>
      %37 = math.tanh %36 : vector<8x128xf32>
      %38 = arith.truncf %37 : vector<8x128xf32> to vector<8x128xbf16>
      %c0_28 = arith.constant 0 : index
      %c0_29 = arith.constant 0 : index
      %39 = vector.load %arg11[%c0_28, %c0_29] : memref<128x128xbf16, #tpu.memory_space<vmem>>, vector<128x128xbf16>
      %cst_30 = arith.constant dense<0.000000e+00> : vector<8x128xf32>
      %40 = tpu.matmul %38, %39, %cst_30 {dimension_numbers = #tpu.dot_dimension_numbers<[1], [0], [0], [1], [0, 0, 1, 1], [], []>} : vector<8x128xbf16>, vector<128x128xbf16>, vector<8x128xf32> -> vector<8x128xf32>
      %c0_31 = arith.constant 0 : index
      %c0_32 = arith.constant 0 : index
      %41 = vector.load %arg12[%c0_31, %c0_32] : memref<1x128xf32, #tpu.memory_space<vmem>>, vector<1x128xf32>
      %42 = vector.broadcast %41 : vector<1x128xf32> to vector<8x128xf32>
      %43 = arith.addf %40, %42 : vector<8x128xf32>
      %c0_33 = arith.constant 0 : index
      %c0_34 = arith.constant 0 : index
      %44 = vector.load %arg13[%c0_33, %c0_34] : memref<8x128xf32, #tpu.memory_space<vmem>>, vector<8x128xf32>
      tpu.vector_store %arg13[%c0_33, %c0_34], %43 {strides = array<i32>} : memref<8x128xf32, #tpu.memory_space<vmem>>, vector<8x128xf32>,
    } else {
    }
    return
  }
  func.func @transform_0(%arg0: i32, %arg1: i32) -> (i32, i32) {
    %c0_i32 = arith.constant 0 : i32
    return %arg0, %arg1 : i32, i32
  }
  func.func @transform_1(%arg0: i32, %arg1: i32) -> (i32, i32) {
    %c0_i32 = arith.constant 0 : i32
    %c0_i32_0 = arith.constant 0 : i32
    return %arg1, %c0_i32 : i32, i32
  }
  func.func @transform_2(%arg0: i32, %arg1: i32) -> (i32, i32) {
    %c0_i32 = arith.constant 0 : i32
    %c0_i32_0 = arith.constant 0 : i32
    %c0_i32_1 = arith.constant 0 : i32
    return %c0_i32, %c0_i32_0 : i32, i32
  }
  func.func @transform_3(%arg0: i32, %arg1: i32) -> (i32, i32) {
    %c0_i32 = arith.constant 0 : i32
    %c0_i32_0 = arith.constant 0 : i32
    %c0_i32_1 = arith.constant 0 : i32
    return %c0_i32, %c0_i32_0 : i32, i32
  }
  func.func @transform_4(%arg0: i32, %arg1: i32) -> (i32, i32) {
    %c0_i32 = arith.constant 0 : i32
    %c0_i32_0 = arith.constant 0 : i32
    %c0_i32_1 = arith.constant 0 : i32
    return %c0_i32, %c0_i32_0 : i32, i32
  }
  func.func @transform_5(%arg0: i32, %arg1: i32) -> (i32, i32) {
    %c0_i32 = arith.constant 0 : i32
    %c0_i32_0 = arith.constant 0 : i32
    %c0_i32_1 = arith.constant 0 : i32
    return %c0_i32, %c0_i32_0 : i32, i32
  }
  func.func @transform_6(%arg0: i32, %arg1: i32) -> (i32, i32) {
    %c0_i32 = arith.constant 0 : i32
    %c0_i32_0 = arith.constant 0 : i32
    %c0_i32_1 = arith.constant 0 : i32
    return %c0_i32, %c0_i32_0 : i32, i32
  }
  func.func @transform_7(%arg0: i32, %arg1: i32) -> (i32, i32) {
    %c0_i32 = arith.constant 0 : i32
    %c0_i32_0 = arith.constant 0 : i32
    %c0_i32_1 = arith.constant 0 : i32
    return %c0_i32, %c0_i32_0 : i32, i32
  }
  func.func @transform_8(%arg0: i32, %arg1: i32) -> (i32, i32) {
    %c0_i32 = arith.constant 0 : i32
    %c0_i32_0 = arith.constant 0 : i32
    %c0_i32_1 = arith.constant 0 : i32
    return %c0_i32, %c0_i32_0 : i32, i32
  }
  func.func @transform_9(%arg0: i32, %arg1: i32) -> (i32, i32) {
    %c0_i32 = arith.constant 0 : i32
    %c0_i32_0 = arith.constant 0 : i32
    %c0_i32_1 = arith.constant 0 : i32
    return %c0_i32, %c0_i32_0 : i32, i32
  }
  func.func @transform_10(%arg0: i32, %arg1: i32) -> (i32, i32) {
    %c0_i32 = arith.constant 0 : i32
    %c0_i32_0 = arith.constant 0 : i32
    %c0_i32_1 = arith.constant 0 : i32
    return %c0_i32, %c0_i32_0 : i32, i32
  }
  func.func @transform_11(%arg0: i32, %arg1: i32) -> (i32, i32) {
    %c0_i32 = arith.constant 0 : i32
    %c0_i32_0 = arith.constant 0 : i32
    return %arg0, %c0_i32 : i32, i32
  }
}

</mosaic_0001>

<bundles_post_ra>
// kernel: texas_classifier_forward.1
= control target key start
LH: loop header
LB: loop body
LE: loop exit
PB: predicated region body
PF: predicated region fallthrough
CT: control target
= control target key end

     0   :  { %s9766_s0 = inlined_call_operand.vmem [shape: bf16[8,6272], index: 0, kind: input, shape index: {}]   ;;  %s9767_s1 = inlined_call_operand.hbm [shape: bf16[6272,1024], index: 1, kind: input, shape index: {}]   ;;  %s9768_s2 = inlined_call_operand.hbm [shape: f32[1,1024], index: 2, kind: input, shape index: {}]   ;;  %s9769_s3 = inlined_call_operand.hbm [shape: bf16[1024,512], index: 3, kind: input, shape index: {}]   ;;  %s9770_s4 = inlined_call_operand.hbm [shape: f32[1,512], index: 4, kind: input, shape index: {}]   ;;  %s9771_s5 = inlined_call_operand.hbm [shape: bf16[512,256], index: 5, kind: input, shape index: {}]   ;;  %s9772_s6 = inlined_call_operand.hbm [shape: f32[1,256], index: 6, kind: input, shape index: {}]   ;;  %s9773_s7 = inlined_call_operand.hbm [shape: bf16[256,128], index: 7, kind: input, shape index: {}]   ;;  %s9774_s8 = inlined_call_operand.hbm [shape: f32[1,128], index: 8, kind: input, shape index: {}]   ;;  %s9775_s9 = inlined_call_operand.hbm [shape: bf16[128,128], index: 9, kind: input, shape index: {}]   ;;  %s9776_s10 = inlined_call_operand.hbm [shape: f32[1,128], index: 10, kind: input, shape index: {}]   ;;  %s9777_s11 = inlined_call_operand.vmem [shape: f32[8,128], index: 11, kind: output, shape index: {}]  }
   0x1   :  { %9781 = sst [smem:[#allocation25_spill]] %s9768_s2 }
   0x2   :  { %9782 = sst [smem:[#allocation26_spill]] %s9769_s3 }
   0x3   :  { %9783 = sst [smem:[#allocation27_spill]] %s9770_s4 }
   0x4   :  { %9784 = sst [smem:[#allocation28_spill]] %s9771_s5 }
   0x5   :  { %16 = vsyncpa [#allocation4], 0 }
   0x6   :  { %18 = vsyncpa [#allocation4 + $0x1], 0 }
   0x7   :  { %19 = vsyncpa [#allocation6], 0 }
   0x8   :  { %20 = vsyncpa [#allocation9], 0 }
   0x9   :  { %21 = vsyncpa [#allocation12], 0 }
   0xa   :  { %22 = vsyncpa [#allocation15], 0 }
   0xb   :  { %23 = vsyncpa [#allocation18], 0  ;;  %s8906_s17 = smov 0   ;;  %s8908_s18 = smov 0  }
   0xc   :  { %s8910_s19 = smov 0   ;;  %s8912_s20 = smov 0  }
   0xd   :  { %s8914_s21 = smov 0   ;;  %s8916_s22 = smov 0  }
   0xe LB: > { %s6903_s23 = sadd.s32 4294967295, %s8822_s22   ;;  %p6904_p0 = scmp.ge.s32.totalorder %s8822_s22, 1  ;;  %s8822_s22 = sphi %s8916_s22, %s29_s22   ;;  %s8818_s21 = sphi %s8914_s21, %s9802_s21   ;;  %s8814_s20 = sphi %s8912_s20, %s9801_s20   ;;  %s8810_s19 = sphi %s8910_s19, %s9800_s19   ;;  %s8806_s18 = sphi %s8908_s18, %s9799_s18   ;;  %s8802_s17 = sphi %s8906_s17, %s9798_s17  }
   0xf   : > { %p8938_p1 = scmp.eq.s32.totalorder %s6903_s23, 0  ;;  %p315_p2 = scmp.lt.s32.totalorder %s8822_s22, 8 }
  0x10   : > { %s8824_s26 = smov [#allocation5]   ;;  %s8825_s28 = smov [#allocation8]  }
  0x11   : > { %s9785_s24 = scalar_select %p8938_p1, 1, 0 }
  0x12   : > { %p8943_p3 = pnand %p6904_p0, %p315_p2  ;;  %s328_s27 = sshll.u32 %s8824_s26, 4  ;;  %s329_s27 = int_to_ptr.vmem [resolvable:$true] %s328_s27 }
  0x13   : > { %s352_s29 = sshll.u32 %s8825_s28, 4  ;;  %s8826_s12 = smov [#allocation11]   ;;  %s353_s29 = int_to_ptr.vmem [resolvable:$true] %s352_s29 }
  0x14   : > { %s9786_s25 = scalar_select %p8943_p3, 1, 0 }
  0x15   : > { %p7828_p4 = pneg %p8943_p3  ;;  %s376_s13 = sshll.u32 %s8826_s12, 4  ;;  %s8955_s13 = int_to_ptr.vmem [resolvable:$true] %s376_s13 }
  0x16   : > { %s8501_s15 = scalar_lea.vmem %s329_s27, 128  ;;  %p8509_p10 = scmp.lt.s32.totalorder %s329_s27, %s329_s27 }
  0x17   : > { %p8951_p5 = pnand %p7828_p4, %p8938_p1  ;;  %p8502_p7 = scmp.ne.s32.totalorder %s329_s27, %s8501_s15 }
  0x18   : > { %p8510_p11 = scmp.lt.s32.totalorder %s8501_s15, %s8501_s15 }
  0x19   : > { %p8959_p6 = pneg %p8951_p5 }
  0x1a   : > { %p8511_p12 = por %p8510_p11, %p8509_p10 }
  0x1b   : > { %p8504_p8 = pnand %p8502_p7, %p8959_p6 }
  0x1d   : > { %p8505_p9 = pneg %p8504_p8 }
  0x1f   : > { %p8512_p13 = pnand %p8511_p12, %p8505_p9 }
  0x21   : > { %8515 = shalt.err (!%p8512_p13)
}
  0x22   : > { %s9789_s2 = sld [smem:[#allocation25_spill]]  ;;  %s8527_s26 = scalar_lea.vmem %s353_s29, 64 }
  0x23   : > { %p8528_p0 = scmp.ne.s32.totalorder %s353_s29, %s8527_s26  ;;  %p8535_p3 = scmp.lt.s32.totalorder %s353_s29, %s353_s29 }
  0x24   : > { %p8536_p7 = scmp.lt.s32.totalorder %s8527_s26, %s8527_s26 }
  0x25   : > { %p8530_p2 = pnand %p8528_p0, %p8959_p6 }
  0x26   : > { %p8537_p8 = por %p8536_p7, %p8535_p3 }
  0x27   : > { %p8531_p4 = pneg %p8530_p2 }
  0x28   : > { %7831 = dma.hbm_to_vmem [thread:$0]  (!%p8951_p5), %s9789_s2, 128, %s329_s27, [#allocation6]  }
  0x29   : > { %p8538_p1 = pnand %p8537_p8, %p8531_p4 }
  0x2b   : > { %8541 = shalt.err (!%p8538_p1)
}
  0x2c   : > { %s9790_s4 = sld [smem:[#allocation27_spill]]  ;;  %s8553_s27 = scalar_lea.vmem %s8955_s13, 32 }
  0x2d   : > { %p8554_p9 = scmp.ne.s32.totalorder %s8955_s13, %s8553_s27  ;;  %p8561_p12 = scmp.lt.s32.totalorder %s8955_s13, %s8955_s13 }
  0x2e   : > { %p8562_p3 = scmp.lt.s32.totalorder %s8553_s27, %s8553_s27 }
  0x2f   : > { %p8556_p10 = pnand %p8554_p9, %p8959_p6 }
  0x30   : > { %p8563_p13 = por %p8562_p3, %p8561_p12 }
  0x31   : > { %p8557_p11 = pneg %p8556_p10 }
  0x32   : > { %7837 = dma.hbm_to_vmem [thread:$0]  (!%p8951_p5), %s9790_s4, 64, %s353_s29, [#allocation9]  }
  0x33   : > { %p8564_p1 = pnand %p8563_p13, %p8557_p11 }
  0x35   : > { %8567 = shalt.err (!%p8564_p1)
}
  0x36   : > { %7843 = dma.hbm_to_vmem [thread:$0]  (!%p8951_p5), %s9772_s6, 32, %s8955_s13, [#allocation12]  }
  0x37   : > { %s8827_s29 = smov [#allocation14]   ;;  %s8828_s26 = smov [#allocation7]  }
  0x38   : > { %s400_s23 = sshll.u32 %s8827_s29, 4  ;;  %s338_s28 = sshll.u32 %s8828_s26, 4  ;;  %s401_s23 = int_to_ptr.vmem [resolvable:$true] %s400_s23  ;;  %s339_s28 = int_to_ptr.vmem [resolvable:$true] %s338_s28 }
  0x39   : > { %s8579_s12 = scalar_lea.vmem %s401_s23, 16  ;;  %s8586_s27 = scalar_lea.vmem %s401_s23, 32 }
  0x3a   : > { %p8580_p0 = scmp.ne.s32.totalorder %s401_s23, %s8579_s12  ;;  %p8587_p7 = scmp.lt.s32.totalorder %s401_s23, %s401_s23 }
  0x3b   : > { %p8588_p8 = scmp.lt.s32.totalorder %s8586_s27, %s8579_s12 }
  0x3c   : > { %p8582_p2 = pnand %p8580_p0, %p8959_p6 }
  0x3d   : > { %p8589_p9 = por %p8588_p8, %p8587_p7 }
  0x3e   : > { %p8583_p4 = pneg %p8582_p2 }
  0x40   : > { %p8590_p10 = pnand %p8589_p9, %p8583_p4 }
  0x42   : > { %8593 = shalt.err (!%p8590_p10)
}
  0x43   : > { %7849 = dma.hbm_to_vmem [thread:$0]  (!%p8951_p5), %s9774_s8, 16, %s401_s23, [#allocation15]  }
  0x44   : > { %s8605_s16 = scalar_lea.vmem %s339_s28, 32768  ;;  %p8613_p13 = scmp.lt.s32.totalorder %s339_s28, %s339_s28 }
  0x45   : > { %p8606_p11 = scmp.ne.s32.totalorder %s339_s28, %s8605_s16  ;;  %p8614_p1 = scmp.lt.s32.totalorder %s8605_s16, %s8605_s16 }
  0x47   : > { %p8608_p12 = pnand %p8606_p11, %p8959_p6  ;;  %p8615_p0 = por %p8614_p1, %p8613_p13 }
  0x49   : > { %p8609_p3 = pneg %p8608_p12 }
  0x4b   : > { %p8616_p2 = pnand %p8615_p0, %p8609_p3 }
  0x4d   : > { %8619 = shalt.err (!%p8616_p2)
}
  0x4e   : > { %s8829_s29 = smov 256   ;;  %s8830_s26 = smov 16  }
  0x4f   : > { %s9791_s3 = sld [smem:[#allocation26_spill]]  ;;  %s8831_s23 = smov [#allocation10]  }
  0x50   : > { %s362_s15 = sshll.u32 %s8831_s23, 4  ;;  %s363_s15 = int_to_ptr.vmem [resolvable:$true] %s362_s15 }
  0x51   : > { %s8631_s13 = scalar_lea.vmem %s363_s15, 8192  ;;  %p8639_p9 = scmp.lt.s32.totalorder %s363_s15, %s363_s15 }
  0x52   : > { %p8632_p4 = scmp.ne.s32.totalorder %s363_s15, %s8631_s13  ;;  %p8640_p10 = scmp.lt.s32.totalorder %s8631_s13, %s8631_s13 }
  0x54   : > { %p8634_p7 = pnand %p8632_p4, %p8959_p6  ;;  %p8641_p11 = por %p8640_p10, %p8639_p9 }
  0x55   : > { %7834 = dma.hbm_to_vmem [thread:$0]  (!%p8951_p5), %s9791_s3, 32768, %s339_s28, [#allocation6], %s8829_s29, %s8829_s29, %s8830_s26  }
  0x56   : > { %p8635_p8 = pneg %p8634_p7 }
  0x58   : > { %p8642_p12 = pnand %p8641_p11, %p8635_p8 }
  0x5a   : > { %8645 = shalt.err (!%p8642_p12)
}
  0x5b   : > { %s8832_s16 = smov 128   ;;  %s8833_s2 = smov 8  }
  0x5c   : > { %s9792_s5 = sld [smem:[#allocation28_spill]]  ;;  %s8834_s29 = smov [#allocation13]  }
  0x5d   : > { %s386_s26 = sshll.u32 %s8834_s29, 4  ;;  %s387_s26 = int_to_ptr.vmem [resolvable:$true] %s386_s26 }
  0x5e   : > { %s8657_s27 = scalar_lea.vmem %s387_s26, 2048  ;;  %p8665_p0 = scmp.lt.s32.totalorder %s387_s26, %s387_s26 }
  0x5f   : > { %p8658_p3 = scmp.ne.s32.totalorder %s387_s26, %s8657_s27  ;;  %p8666_p2 = scmp.lt.s32.totalorder %s8657_s27, %s8657_s27 }
  0x61   : > { %p8660_p13 = pnand %p8658_p3, %p8959_p6  ;;  %p8667_p4 = por %p8666_p2, %p8665_p0 }
  0x62   : > { %7840 = dma.hbm_to_vmem [thread:$0]  (!%p8951_p5), %s9792_s5, 8192, %s363_s15, [#allocation9], %s8832_s16, %s8832_s16, %s8833_s2  }
  0x63   : > { %p8661_p1 = pneg %p8660_p13 }
  0x65   : > { %p8668_p7 = pnand %p8667_p4, %p8661_p1 }
  0x67   : > { %8671 = shalt.err (!%p8668_p7)
}
  0x68   : > { %s8835_s23 = smov 64   ;;  %s8836_s13 = smov 4  }
  0x69   : > { %7846 = dma.hbm_to_vmem [thread:$0]  (!%p8951_p5), %s9773_s7, 2048, %s387_s26, [#allocation12], %s8835_s23, %s8835_s23, %s8836_s13  }
  0x6a   : > { %s8837_s15 = smov [#allocation16]   ;;  %s8838_s28 = smov [#allocation17]  }
  0x6b   : > { %s410_s16 = sshll.u32 %s8837_s15, 4  ;;  %s424_s29 = sshll.u32 %s8838_s28, 4  ;;  %s411_s16 = int_to_ptr.vmem [resolvable:$true] %s410_s16  ;;  %s425_s29 = int_to_ptr.vmem [resolvable:$true] %s424_s29 }
  0x6c   : > { %s8683_s3 = scalar_lea.vmem %s411_s16, 1024  ;;  %p8691_p11 = scmp.lt.s32.totalorder %s411_s16, %s411_s16 }
  0x6d   : > { %p8684_p8 = scmp.ne.s32.totalorder %s411_s16, %s8683_s3  ;;  %p8692_p12 = scmp.lt.s32.totalorder %s8683_s3, %s8683_s3 }
  0x6f   : > { %p8686_p9 = pnand %p8684_p8, %p8959_p6  ;;  %p8693_p3 = por %p8692_p12, %p8691_p11 }
  0x71   : > { %p8687_p10 = pneg %p8686_p9 }
  0x73   : > { %p8694_p13 = pnand %p8693_p3, %p8687_p10 }
  0x75   : > { %8697 = shalt.err (!%p8694_p13)
}
  0x76   : > { %7852 = dma.hbm_to_vmem [thread:$0]  (!%p8951_p5), %s9775_s9, 1024, %s411_s16, [#allocation15], %s8835_s23, %s8835_s23, %s8836_s13  }
  0x77   : > { %s8709_s26 = scalar_lea.vmem %s425_s29, 16  ;;  %s8716_s2 = scalar_lea.vmem %s425_s29, 32 }
  0x78   : > { %p8710_p1 = scmp.ne.s32.totalorder %s425_s29, %s8709_s26  ;;  %p8717_p4 = scmp.lt.s32.totalorder %s425_s29, %s425_s29 }
  0x79   : > { %p8718_p7 = scmp.lt.s32.totalorder %s8716_s2, %s8709_s26 }
  0x7a   : > { %p8712_p0 = pnand %p8710_p1, %p8959_p6 }
  0x7b   : > { %p8719_p8 = por %p8718_p7, %p8717_p4 }
  0x7c   : > { %p8713_p2 = pneg %p8712_p0 }
  0x7e   : > { %p8720_p9 = pnand %p8719_p8, %p8713_p2 }
  0x80   : > { %8723 = shalt.err (!%p8720_p9)
}
  0x81   : > { %7855 = dma.hbm_to_vmem [thread:$0]  (!%p8951_p5), %s9776_s10, 16, %s425_s29, [#allocation18]  }
  0x82   : > { %s38_s14 = sadd.s32 1, %s8818_s21  ;;  %s76_s30 = sadd.s32 1, %s8810_s19 }
  0x83   : > { %p39_p6 = scmp.ge.s32.totalorder %s38_s14, 7  ;;  %p83_p10 = scmp.ne.s32.totalorder %s8810_s19, %s8806_s18 }
  0x84   : > { %p84_p11 = scmp.eq.s32.totalorder %s8822_s22, 0  ;;  %p89_p3 = scmp.ne.s32.totalorder %s8806_s18, %s8802_s17 }
  0x85   : > { %s9804_s14 = smov (%p39_p6, %s38_s14), 0  ;;  %p7869_p13 = scmp.lt.s32.totalorder %s8822_s22, 7 }
  0x86   : > { %p85_p12 = por %p84_p11, %p83_p10  ;;  %s73_s23 = ssub.s32 %s8818_s21, %s9804_s14 }
  0x87   : > { %p74_p1 = scmp.eq.s32.totalorder %s73_s23, 0  ;;  %p9793_p0 = scmp.ne.s32.totalorder %s9785_s24, 0 }
  0x88   : > { %s448_s16 = sand.u32 1, %s8810_s19   ;;  %s7736_s28 = smul.u32 57344, %s8818_s21 }
  0x89   : > { %p9045_p2 = por %p9793_p0, %p89_p3  ;;  %s7788_s27 = smul.u32 3584, %s448_s16 }
  0x8a   : > { %s9052_s29 = scalar_select %p74_p1, %s8810_s19, %s76_s30  }
  0x8b   : > { %s459_s2 = scalar_lea.hbm %s9767_s1, %s7736_s28  ;;  %p9057_p5 = pnand %p7869_p13, %p85_p12 }
  0x8c   : > { %s452_s17 = scalar_lea.vmem [#allocation3], %s7788_s27  ;;  %s449_s23 = scalar_lea.sflag [#allocation4], %s448_s16 }
  0x8d   : > { %s460_s15 = sshll.u32 %s452_s17, 4  ;;  %p8726_p4 = pneg %p9057_p5  ;;  %s461_s15 = int_to_ptr.vmem [resolvable:$true] %s460_s15 }
  0x8e   : > { %s8737_s4 = scalar_lea.vmem %s461_s15, 57344  ;;  %s8839_s30 = smov [#allocation3]  }
  0x8f   : > { %p8738_p7 = scmp.ne.s32.totalorder %s461_s15, %s8737_s4  ;;  %s8742_s5 = sshll.u32 %s8839_s30, 4  ;;  %s8743_s5 = int_to_ptr.vmem [resolvable:$false] %s8742_s5 }
  0x90   : > { %s8744_s12 = scalar_lea.vmem %s8743_s5, 114688  ;;  %p8745_p6 = scmp.lt.s32.totalorder %s461_s15, %s8743_s5 }
  0x91   : > { %p8740_p8 = pnand %p8738_p7, %p8726_p4  ;;  %p8746_p10 = scmp.lt.s32.totalorder %s8744_s12, %s8737_s4 }
  0x93   : > { %p8741_p9 = pneg %p8740_p8  ;;  %p8747_p11 = por %p8746_p10, %p8745_p6 }
  0x95   : > { %p8748_p12 = pnand %p8747_p11, %p8741_p9 }
  0x97   : > { %8751 = shalt.err (!%p8748_p12)
}
  0x98   : > { %s8840_s28 = smov 512   ;;  %s8841_s27 = smov 32  }
  0x99   : > { %7859 = dma.hbm_to_vmem [thread:$0]  (!%p9057_p5), %s459_s2, 57344, %s461_s15, %s449_s23, %s8840_s28, %s8840_s28, %s8841_s27  }
  0x9a   : > { %p9796_p3 = scmp.ne.s32.totalorder %s9786_s25, 0 }
  0x9b   : > { %s474_s16 = sand.u32 (!%p9796_p3), 1, %s8806_s18  }
  0x9c   : > { %472 = sbr.rel (%p9796_p3) target bundleno = 1943 (0x797), region = 64  ;;  %s475_s17 = scalar_lea.sflag (!%p9796_p3), [#allocation4], %s474_s16 }
  0x9d   : > { %s7789_s26 = smul.u32 (!%p9796_p3), 3584, %s474_s16 }
  0x9f   : > { %s9068_s30 = scalar_lea.vmem (!%p9796_p3), [#allocation3], %s7789_s26 }
  0xa1   : > { %8777 = dma.done.wait (%p9045_p2), %s475_s17, 57344  }
  0xa2   : > { %8779 = vsyncadd (%p9045_p2), %s475_s17, 4294909952  ;;  %p9797_p13 = scmp.ne.s32.totalorder %s9785_s24, 0 }
  0xa4   : > { %8781 = dma.done.wait (%p9797_p13), [#allocation6], 32896  }
  0xa5   : > { %8783 = vsyncadd (%p9797_p13), [#allocation6], 4294934400 }
  0xa6   : > { %8785 = dma.done.wait (%p9797_p13), [#allocation9], 8256  }
  0xa7   : > { %8787 = vsyncadd (%p9797_p13), [#allocation9], 4294959040 }
  0xa8   : > { %8789 = dma.done.wait (%p9797_p13), [#allocation12], 2080  }
  0xa9   : > { %8791 = vsyncadd (%p9797_p13), [#allocation12], 4294965216 }
  0xaa   : > { %8793 = dma.done.wait (%p9797_p13), [#allocation15], 1040  }
  0xab   : > { %8795 = vsyncadd (%p9797_p13), [#allocation15], 4294966256 }
  0xac   : > { %8797 = dma.done.wait (%p9797_p13), [#allocation18], 16  }
  0xad   : > { %8799 = vsyncadd (%p9797_p13), [#allocation18], 4294967280  ;;  %s561_s4 = smul.u32 7, %s8814_s20  ;;  %p6928_p0 = scmp.ne.s32.totalorder %s8814_s20, 0 }
  0xaf   : > { %p564_p1 = scmp.lt.s32.totalorder %s561_s4, 48  ;;  %580 = sbr.rel (%p6928_p0) target bundleno = 185 (0xb9), region = 108 }
  0xb1   : > { %s9806_s4 = smov (!%p564_p1, %s561_s4), 48 }
  0xb2   : > { %s6927_s5 = sshll.u32 %s9806_s4, 2 }
  0xb3   : > { %s9098_s2 = scalar_lea.vmem %s9766_s0, %s6927_s5 }
  0xb4   : > { %v8842_v0 = vmov 0.0  }
  0xb5   : > { %581 = vst [vmem:[#allocation2 + $0x30] sm:$0xff] %v8842_v0  ;;  %582 = vst [vmem:[#allocation2] sm:$0xff] %v8842_v0 }
  0xb6   : > { %583 = vst [vmem:[#allocation2 + $0x18] sm:$0xff] %v8842_v0  ;;  %584 = vst [vmem:[#allocation2 + $0x10] sm:$0xff] %v8842_v0 }
  0xb7   : > { %585 = vst [vmem:[#allocation2 + $0x8] sm:$0xff] %v8842_v0  ;;  %586 = vst [vmem:[#allocation2 + $0x20] sm:$0xff] %v8842_v0 }
  0xb8   : > { %587 = vst [vmem:[#allocation2 + $0x28] sm:$0xff] %v8842_v0  ;;  %588 = vst [vmem:[#allocation2 + $0x38] sm:$0xff] %v8842_v0 }
  0xb9 PF: > { %v657_v1 = vld [vmem:[%s9068_s30 + $0x1c0] sm:$0xff]  ;;  %v9133_v55 = vld [vmem:[%s9098_s2 + $0x8] sm:$0xff]  ;;  %p7384_p2 = scmp.ne.s32.totalorder %s8814_s20, 6 }
  0xba   : > { %v661_v2 = vld [vmem:[%s9068_s30 + $0x1e0] sm:$0xff]  ;;  %v9143_v60 = vcombine.high %v9133_v55, %v9133_v55 }
  0xbb   : > { %v785_v3 = vld [vmem:[%s9068_s30 + $0x5c0] sm:$0xff]  ;;  %v6993_v4 = vcombine.high %v657_v1, %v661_v2  ;;  %v6992_v6 = vcombine.low %v657_v1, %v661_v2 }
  0xbc   : > { %v789_v5 = vld [vmem:[%s9068_s30 + $0x5e0] sm:$0xff]  ;;  %3387 = vmatprep.mubr.bf16.mxu1 %v9143_v60 }
  0xbd   : > { %v649_v7 = vld [vmem:[%s9068_s30 + $0x180] sm:$0xff]  ;;  %v7121_v9 = vcombine.high %v785_v3, %v789_v5  ;;  %v7120_v10 = vcombine.low %v785_v3, %v789_v5  ;;  %3314 = vmatprep.subr.bf16.mxu0 %v6993_v4 }
  0xbe   : > { %v653_v8 = vld [vmem:[%s9068_s30 + $0x1a0] sm:$0xff]  ;;  %3315 = vmatpush1.bf16.msra.mxu0 %v6992_v6 }
  0xbf   : > { %v6985_v11 = vcombine.high %v649_v7, %v653_v8  ;;  %v777_v12 = vld [vmem:[%s9068_s30 + $0x580] sm:$0xff]  ;;  %3355 = vmatprep.subr.bf16.mxu1 %v7121_v9  ;;  %v6984_v19 = vcombine.low %v649_v7, %v653_v8 }
  0xc0   : > { %v781_v13 = vld [vmem:[%s9068_s30 + $0x5a0] sm:$0xff]  ;;  %3356 = vmatpush1.bf16.msra.mxu1 %v7120_v10 }
  0xc1   : > { %v641_v14 = vld [vmem:[%s9068_s30 + $0x140] sm:$0xff]  ;;  %v7113_v15 = vcombine.high %v777_v12, %v781_v13  ;;  %3316 = vmatprep.subr.bf16.mxu0 %v6985_v11  ;;  %v7112_v20 = vcombine.low %v777_v12, %v781_v13 }
  0xc2   : > { %v645_v16 = vld [vmem:[%s9068_s30 + $0x160] sm:$0xff]  ;;  %3317 = vmatpush1.bf16.msra.mxu0 %v6984_v19 }
  0xc3   : > { %v769_v17 = vld [vmem:[%s9068_s30 + $0x540] sm:$0xff]  ;;  %v6977_v21 = vcombine.high %v641_v14, %v645_v16  ;;  %3357 = vmatprep.subr.bf16.mxu1 %v7113_v15  ;;  %v6976_v27 = vcombine.low %v641_v14, %v645_v16 }
  0xc4   : > { %v773_v18 = vld [vmem:[%s9068_s30 + $0x560] sm:$0xff]  ;;  %3358 = vmatpush1.bf16.msra.mxu1 %v7112_v20 }
  0xc5   : > { %v7105_v22 = vcombine.high %v769_v17, %v773_v18  ;;  %v633_v23 = vld [vmem:[%s9068_s30 + $0x100] sm:$0xff]  ;;  %3318 = vmatprep.subr.bf16.mxu0 %v6977_v21  ;;  %v7104_v28 = vcombine.low %v769_v17, %v773_v18 }
  0xc6   : > { %v637_v24 = vld [vmem:[%s9068_s30 + $0x120] sm:$0xff]  ;;  %3319 = vmatpush1.bf16.msra.mxu0 %v6976_v27 }
  0xc7   : > { %v761_v25 = vld [vmem:[%s9068_s30 + $0x500] sm:$0xff]  ;;  %v6969_v29 = vcombine.high %v633_v23, %v637_v24  ;;  %3359 = vmatprep.subr.bf16.mxu1 %v7105_v22  ;;  %v6968_v35 = vcombine.low %v633_v23, %v637_v24 }
  0xc8   : > { %v765_v26 = vld [vmem:[%s9068_s30 + $0x520] sm:$0xff]  ;;  %3360 = vmatpush1.bf16.msra.mxu1 %v7104_v28 }
  0xc9   : > { %v7097_v30 = vcombine.high %v761_v25, %v765_v26  ;;  %v625_v31 = vld [vmem:[%s9068_s30 + $0xc0] sm:$0xff]  ;;  %3320 = vmatprep.subr.bf16.mxu0 %v6969_v29  ;;  %v7096_v36 = vcombine.low %v761_v25, %v765_v26 }
  0xca   : > { %v629_v32 = vld [vmem:[%s9068_s30 + $0xe0] sm:$0xff]  ;;  %3321 = vmatpush1.bf16.msra.mxu0 %v6968_v35 }
  0xcb   : > { %v753_v33 = vld [vmem:[%s9068_s30 + $0x4c0] sm:$0xff]  ;;  %v6961_v37 = vcombine.high %v625_v31, %v629_v32  ;;  %3361 = vmatprep.subr.bf16.mxu1 %v7097_v30  ;;  %v6960_v43 = vcombine.low %v625_v31, %v629_v32 }
  0xcc   : > { %v757_v34 = vld [vmem:[%s9068_s30 + $0x4e0] sm:$0xff]  ;;  %3362 = vmatpush1.bf16.msra.mxu1 %v7096_v36 }
  0xcd   : > { %v7089_v38 = vcombine.high %v753_v33, %v757_v34  ;;  %v617_v39 = vld [vmem:[%s9068_s30 + $0x80] sm:$0xff]  ;;  %3322 = vmatprep.subr.bf16.mxu0 %v6961_v37  ;;  %v7088_v44 = vcombine.low %v753_v33, %v757_v34 }
  0xce   : > { %v621_v40 = vld [vmem:[%s9068_s30 + $0xa0] sm:$0xff]  ;;  %3323 = vmatpush1.bf16.msra.mxu0 %v6960_v43 }
  0xcf   : > { %v745_v41 = vld [vmem:[%s9068_s30 + $0x480] sm:$0xff]  ;;  %v6953_v45 = vcombine.high %v617_v39, %v621_v40  ;;  %3363 = vmatprep.subr.bf16.mxu1 %v7089_v38  ;;  %v6952_v51 = vcombine.low %v617_v39, %v621_v40 }
  0xd0   : > { %v749_v42 = vld [vmem:[%s9068_s30 + $0x4a0] sm:$0xff]  ;;  %3364 = vmatpush1.bf16.msra.mxu1 %v7088_v44 }
  0xd1   : > { %v7081_v46 = vcombine.high %v745_v41, %v749_v42  ;;  %v609_v47 = vld [vmem:[%s9068_s30 + $0x40] sm:$0xff]  ;;  %3324 = vmatprep.subr.bf16.mxu0 %v6953_v45  ;;  %v7080_v52 = vcombine.low %v745_v41, %v749_v42 }
  0xd2   : > { %v613_v48 = vld [vmem:[%s9068_s30 + $0x60] sm:$0xff]  ;;  %3325 = vmatpush1.bf16.msra.mxu0 %v6952_v51 }
  0xd3   : > { %v737_v49 = vld [vmem:[%s9068_s30 + $0x440] sm:$0xff]  ;;  %v6945_v53 = vcombine.high %v609_v47, %v613_v48  ;;  %3365 = vmatprep.subr.bf16.mxu1 %v7081_v46  ;;  %v6944_v63 = vcombine.low %v609_v47, %v613_v48 }
  0xd4   : > { %v741_v50 = vld [vmem:[%s9068_s30 + $0x460] sm:$0xff]  ;;  %3366 = vmatpush1.bf16.msra.mxu1 %v7080_v52 }
  0xd5   : > { %v9130_v54 = vld [vmem:[%s9098_s2] sm:$0xff]  ;;  %v7073_v56 = vcombine.high %v737_v49, %v741_v50  ;;  %3326 = vmatprep.subr.bf16.mxu0 %v6945_v53  ;;  %v7072_v0 = vcombine.low %v737_v49, %v741_v50 }
  0xd6   : > { %v601_v57 = vld [vmem:[%s9068_s30] sm:$0xff]  ;;  %v9139_v59 = vcombine.high %v9130_v54, %v9130_v54  ;;  %3327 = vmatpush1.bf16.msra.mxu0 %v6944_v63 }
  0xd7   : > { %v605_v58 = vld [vmem:[%s9068_s30 + $0x20] sm:$0xff]  ;;  %3367 = vmatprep.subr.bf16.mxu1 %v7073_v56 }
  0xd8   : > { %v729_v61 = vld [vmem:[%s9068_s30 + $0x400] sm:$0xff]  ;;  %3346 = vmatprep.mubr.bf16.mxu0 %v9139_v59  ;;  %v6937_v1 = vcombine.high %v601_v57, %v605_v58  ;;  %v6936_v7 = vcombine.low %v601_v57, %v605_v58  ;;  %3368 = vmatpush1.bf16.msra.mxu1 %v7072_v0 }
  0xd9   : > { %v733_v62 = vld [vmem:[%s9068_s30 + $0x420] sm:$0xff] }
  0xda   : > { %v7065_v2 = vcombine.high %v729_v61, %v733_v62  ;;  %v721_v3 = vld [vmem:[%s9068_s30 + $0x3c0] sm:$0xff]  ;;  %3328 = vmatprep.subr.bf16.mxu0 %v6937_v1  ;;  %v7064_v8 = vcombine.low %v729_v61, %v733_v62 }
  0xdb   : > { %v725_v4 = vld [vmem:[%s9068_s30 + $0x3e0] sm:$0xff]  ;;  %3329 = vmatpush1.bf16.msra.mxu0 %v6936_v7 }
  0xdc   : > { %v849_v5 = vld [vmem:[%s9068_s30 + $0x7c0] sm:$0xff]  ;;  %v7057_v9 = vcombine.high %v721_v3, %v725_v4  ;;  %3369 = vmatprep.subr.bf16.mxu1 %v7065_v2  ;;  %v7056_v15 = vcombine.low %v721_v3, %v725_v4 }
  0xdd   : > { %v853_v6 = vld [vmem:[%s9068_s30 + $0x7e0] sm:$0xff]  ;;  %3370 = vmatpush1.bf16.msra.mxu1 %v7064_v8 }
  0xde   : > { %v7185_v10 = vcombine.high %v849_v5, %v853_v6  ;;  %v713_v11 = vld [vmem:[%s9068_s30 + $0x380] sm:$0xff]  ;;  %3330 = vmatprep.subr.bf16.mxu0 %v7057_v9  ;;  %v7184_v16 = vcombine.low %v849_v5, %v853_v6 }
  0xdf   : > { %v717_v12 = vld [vmem:[%s9068_s30 + $0x3a0] sm:$0xff]  ;;  %3331 = vmatpush2.bf16.msra.mxu0 %v7056_v15 }
  0xe0   : > { %v841_v13 = vld [vmem:[%s9068_s30 + $0x780] sm:$0xff]  ;;  %v7049_v17 = vcombine.high %v713_v11, %v717_v12  ;;  %3371 = vmatprep.subr.bf16.mxu1 %v7185_v10  ;;  %v7048_v23 = vcombine.low %v713_v11, %v717_v12 }
  0xe1   : > { %v845_v14 = vld [vmem:[%s9068_s30 + $0x7a0] sm:$0xff]  ;;  %3372 = vmatpush2.bf16.msra.mxu1 %v7184_v16 }
  0xe2   : > { %v7177_v18 = vcombine.high %v841_v13, %v845_v14  ;;  %v705_v19 = vld [vmem:[%s9068_s30 + $0x340] sm:$0xff]  ;;  %3332 = vmatprep.subr.bf16.mxu0 %v7049_v17  ;;  %v7176_v24 = vcombine.low %v841_v13, %v845_v14  ;;  %v9189_v17 = vcombine.low %v9130_v54, %v9130_v54 }
  0xe3   : > { %v709_v20 = vld [vmem:[%s9068_s30 + $0x360] sm:$0xff]  ;;  %3333 = vmatpush2.bf16.msra.mxu0 %v7048_v23 }
  0xe4   : > { %v833_v21 = vld [vmem:[%s9068_s30 + $0x740] sm:$0xff]  ;;  %v7041_v25 = vcombine.high %v705_v19, %v709_v20  ;;  %3373 = vmatprep.subr.bf16.mxu1 %v7177_v18  ;;  %v7040_v31 = vcombine.low %v705_v19, %v709_v20  ;;  %v9195_v20 = vcombine.low %v9133_v55, %v9133_v55 }
  0xe5   : > { %v837_v22 = vld [vmem:[%s9068_s30 + $0x760] sm:$0xff]  ;;  %3374 = vmatpush2.bf16.msra.mxu1 %v7176_v24 }
  0xe6   : > { %v7169_v26 = vcombine.high %v833_v21, %v837_v22  ;;  %v697_v27 = vld [vmem:[%s9068_s30 + $0x300] sm:$0xff]  ;;  %3334 = vmatprep.subr.bf16.mxu0 %v7041_v25  ;;  %v7168_v32 = vcombine.low %v833_v21, %v837_v22  ;;  %v9198_v22 = vld [vmem:[%s9098_s2 + $0x10] sm:$0xff] }
  0xe7   : > { %v701_v28 = vld [vmem:[%s9068_s30 + $0x320] sm:$0xff]  ;;  %3335 = vmatpush2.bf16.msra.mxu0 %v7040_v31  ;;  %v9207_v55 = vcombine.high %v9198_v22, %v9198_v22 }
  0xe8   : > { %v825_v29 = vld [vmem:[%s9068_s30 + $0x700] sm:$0xff]  ;;  %v7033_v33 = vcombine.high %v697_v27, %v701_v28  ;;  %3375 = vmatprep.subr.bf16.mxu1 %v7169_v26  ;;  %v7032_v39 = vcombine.low %v697_v27, %v701_v28 }
  0xe9   : > { %v829_v30 = vld [vmem:[%s9068_s30 + $0x720] sm:$0xff]  ;;  %3376 = vmatpush2.bf16.msra.mxu1 %v7168_v32 }
  0xea   : > { %v7161_v34 = vcombine.high %v825_v29, %v829_v30  ;;  %v689_v35 = vld [vmem:[%s9068_s30 + $0x2c0] sm:$0xff]  ;;  %3336 = vmatprep.subr.bf16.mxu0 %v7033_v33  ;;  %v7160_v40 = vcombine.low %v825_v29, %v829_v30 }
  0xeb   : > { %v693_v36 = vld [vmem:[%s9068_s30 + $0x2e0] sm:$0xff]  ;;  %3337 = vmatpush2.bf16.msra.mxu0 %v7032_v39 }
  0xec   : > { %v817_v37 = vld [vmem:[%s9068_s30 + $0x6c0] sm:$0xff]  ;;  %v7025_v41 = vcombine.high %v689_v35, %v693_v36  ;;  %3377 = vmatprep.subr.bf16.mxu1 %v7161_v34  ;;  %v7024_v47 = vcombine.low %v689_v35, %v693_v36  ;;  %v8843_v35 = vmov 0  }
  0xed   : > { %v821_v38 = vld [vmem:[%s9068_s30 + $0x6e0] sm:$0xff]  ;;  %3378 = vmatpush2.bf16.msra.mxu1 %v7160_v40 }
  0xee   : > { %v7153_v42 = vcombine.high %v817_v37, %v821_v38  ;;  %v681_v43 = vld [vmem:[%s9068_s30 + $0x280] sm:$0xff]  ;;  %3338 = vmatprep.subr.bf16.mxu0 %v7025_v41  ;;  %v7152_v48 = vcombine.low %v817_v37, %v821_v38 }
  0xef   : > { %v685_v44 = vld [vmem:[%s9068_s30 + $0x2a0] sm:$0xff]  ;;  %3339 = vmatpush2.bf16.msra.mxu0 %v7024_v47 }
  0xf0   : > { %v809_v45 = vld [vmem:[%s9068_s30 + $0x680] sm:$0xff]  ;;  %v7017_v49 = vcombine.high %v681_v43, %v685_v44  ;;  %3379 = vmatprep.subr.bf16.mxu1 %v7153_v42  ;;  %v7016_v57 = vcombine.low %v681_v43, %v685_v44 }
  0xf1   : > { %v813_v46 = vld [vmem:[%s9068_s30 + $0x6a0] sm:$0xff]  ;;  %3380 = vmatpush2.bf16.msra.mxu1 %v7152_v48 }
  0xf2   : > { %v7145_v50 = vcombine.high %v809_v45, %v813_v46  ;;  %v673_v51 = vld [vmem:[%s9068_s30 + $0x240] sm:$0xff]  ;;  %3340 = vmatprep.subr.bf16.mxu0 %v7017_v49  ;;  %v7144_v58 = vcombine.low %v809_v45, %v813_v46 }
  0xf3   : > { %v677_v52 = vld [vmem:[%s9068_s30 + $0x260] sm:$0xff]  ;;  %3341 = vmatpush2.bf16.msra.mxu0 %v7016_v57 }
  0xf4   : > { %v801_v53 = vld [vmem:[%s9068_s30 + $0x640] sm:$0xff]  ;;  %v7009_v61 = vcombine.high %v673_v51, %v677_v52  ;;  %3381 = vmatprep.subr.bf16.mxu1 %v7145_v50  ;;  %v7008_v3 = vcombine.low %v673_v51, %v677_v52 }
  0xf5   : > { %v805_v56 = vld [vmem:[%s9068_s30 + $0x660] sm:$0xff]  ;;  %3382 = vmatpush2.bf16.msra.mxu1 %v7144_v58 }
  0xf6   : > { %v7137_v62 = vcombine.high %v801_v53, %v805_v56  ;;  %v665_v63 = vld [vmem:[%s9068_s30 + $0x200] sm:$0xff]  ;;  %3342 = vmatprep.subr.bf16.mxu0 %v7009_v61  ;;  %v7136_v4 = vcombine.low %v801_v53, %v805_v56 }
  0xf7   : > { %v669_v0 = vld [vmem:[%s9068_s30 + $0x220] sm:$0xff]  ;;  %3343 = vmatpush2.bf16.msra.mxu0 %v7008_v3 }
  0xf8   : > { %v793_v1 = vld [vmem:[%s9068_s30 + $0x600] sm:$0xff]  ;;  %v7001_v5 = vcombine.high %v665_v63, %v669_v0  ;;  %3383 = vmatprep.subr.bf16.mxu1 %v7137_v62  ;;  %v7000_v11 = vcombine.low %v665_v63, %v669_v0 }
  0xf9   : > { %v797_v2 = vld [vmem:[%s9068_s30 + $0x620] sm:$0xff]  ;;  %3384 = vmatpush2.bf16.msra.mxu1 %v7136_v4 }
  0xfa   : > { %v7129_v6 = vcombine.high %v793_v1, %v797_v2  ;;  %v913_v7 = vld [vmem:[%s9068_s30 + $0x9c0] sm:$0xff]  ;;  %3344 = vmatprep.subr.bf16.mxu0 %v7001_v5  ;;  %v7128_v12 = vcombine.low %v793_v1, %v797_v2 }
  0xfb   : > { %v917_v8 = vld [vmem:[%s9068_s30 + $0x9e0] sm:$0xff]  ;;  %3345 = vmatpush2.bf16.msra.mxu0 %v7000_v11 }
  0xfc   : > { %v1041_v9 = vld [vmem:[%s9068_s30 + $0xdc0] sm:$0xff]  ;;  %v7249_v13 = vcombine.high %v913_v7, %v917_v8  ;;  %3385 = vmatprep.subr.bf16.mxu1 %v7129_v6  ;;  %v7248_v21 = vcombine.low %v913_v7, %v917_v8 }
  0xfd   : > { %v1045_v10 = vld [vmem:[%s9068_s30 + $0xde0] sm:$0xff]  ;;  %3386 = vmatpush2.bf16.msra.mxu1 %v7128_v12 }
  0xfe   : > { %v7377_v14 = vcombine.high %v1041_v9, %v1045_v10  ;;  %v905_v15 = vld [vmem:[%s9068_s30 + $0x980] sm:$0xff]  ;;  %3396 = vmatprep.subr.bf16.mxu0 %v7249_v13  ;;  %v7376_v23 = vcombine.low %v1041_v9, %v1045_v10  ;;  %3347 = vmatmul.mubr.bf16.vlgmr.msra.gmra.mxu0 %v9189_v17 }
  0xff   : > { %v909_v16 = vld [vmem:[%s9068_s30 + $0x9a0] sm:$0xff]  ;;  %3397 = vmatpush1.bf16.msra.mxu0 %v7248_v21  ;;  %3428 = vmatprep.mubr.bf16.mxu0 %v9207_v55 }
 0x100   : > { %v1033_v18 = vld [vmem:[%s9068_s30 + $0xd80] sm:$0xff]  ;;  %v7241_v24 = vcombine.high %v905_v15, %v909_v16  ;;  %3437 = vmatprep.subr.bf16.mxu1 %v7377_v14  ;;  %3388 = vmatmul.mubr.bf16.vlgmr.msra.gmra.mxu1 %v9195_v20  ;;  %v7240_v29 = vcombine.low %v905_v15, %v909_v16  ;;  %v658_v16 = vld [vmem:[%s9068_s30 + $0x1c8] sm:$0xff] }
 0x101   : > { %v1037_v19 = vld [vmem:[%s9068_s30 + $0xda0] sm:$0xff]  ;;  %3438 = vmatpush1.bf16.msra.mxu1 %v7376_v23  ;;  %3469 = vmatprep.mubr.bf16.mxu1 %v8843_v35 }
 0x102   : > { %v7369_v25 = vcombine.high %v1033_v18, %v1037_v19  ;;  %v897_v54 = vld [vmem:[%s9068_s30 + $0x940] sm:$0xff]  ;;  %3398 = vmatprep.subr.bf16.mxu0 %v7241_v24  ;;  %v7368_v30 = vcombine.low %v1033_v18, %v1037_v19  ;;  %v662_v18 = vld [vmem:[%s9068_s30 + $0x1e8] sm:$0xff] }
 0x103   : > { %v901_v26 = vld [vmem:[%s9068_s30 + $0x960] sm:$0xff]  ;;  %3399 = vmatpush1.bf16.msra.mxu0 %v7240_v29  ;;  %v6995_v24 = vcombine.high %v658_v16, %v662_v18  ;;  %v9241_v29 = vld [vmem:[%s9098_s2 + $0x18] ss:$0 sps:$4 sm:$0xff]  }
 0x104   : > { %v1025_v27 = vld [vmem:[%s9068_s30 + $0xd40] sm:$0xff]  ;;  %v7233_v31 = vcombine.high %v897_v54, %v901_v26  ;;  %3439 = vmatprep.subr.bf16.mxu1 %v7369_v25  ;;  %v7232_v38 = vcombine.low %v897_v54, %v901_v26  ;;  %v650_v26 = vld [vmem:[%s9068_s30 + $0x188] sm:$0xff] }
 0x105   : > { %v1029_v28 = vld [vmem:[%s9068_s30 + $0xd60] sm:$0xff]  ;;  %3440 = vmatpush1.bf16.msra.mxu1 %v7368_v30  ;;  %v6994_v30 = vcombine.low %v658_v16, %v662_v18  ;;  %v602_v16 = vld [vmem:[%s9068_s30 + $0x8] sm:$0xff] }
 0x106   : > { %v7361_v32 = vcombine.high %v1025_v27, %v1029_v28  ;;  %v889_v33 = vld [vmem:[%s9068_s30 + $0x900] sm:$0xff]  ;;  %3400 = vmatprep.subr.bf16.mxu0 %v7233_v31  ;;  %v7360_v39 = vcombine.low %v1025_v27, %v1029_v28  ;;  %v654_v27 = vld [vmem:[%s9068_s30 + $0x1a8] sm:$0xff] }
 0x107   : > { %v893_v34 = vld [vmem:[%s9068_s30 + $0x920] sm:$0xff]  ;;  %3401 = vmatpush1.bf16.msra.mxu0 %v7232_v38  ;;  %v606_v18 = vld [vmem:[%s9068_s30 + $0x28] sm:$0xff] }
 0x108   : > { %v1017_v36 = vld [vmem:[%s9068_s30 + $0xd00] sm:$0xff]  ;;  %v7225_v40 = vcombine.high %v889_v33, %v893_v34  ;;  %3441 = vmatprep.subr.bf16.mxu1 %v7361_v32  ;;  %v7224_v46 = vcombine.low %v889_v33, %v893_v34  ;;  %v6987_v32 = vcombine.high %v650_v26, %v654_v27 }
 0x109   : > { %v1021_v37 = vld [vmem:[%s9068_s30 + $0xd20] sm:$0xff]  ;;  %3442 = vmatpush1.bf16.msra.mxu1 %v7360_v39  ;;  %v6986_v39 = vcombine.low %v650_v26, %v654_v27  ;;  %v722_v26 = vld [vmem:[%s9068_s30 + $0x3c8] sm:$0xff] }
 0x10a   : > { %v7353_v41 = vcombine.high %v1017_v36, %v1021_v37  ;;  %v881_v42 = vld [vmem:[%s9068_s30 + $0x8c0] sm:$0xff]  ;;  %3402 = vmatprep.subr.bf16.mxu0 %v7225_v40  ;;  %v7352_v47 = vcombine.low %v1017_v36, %v1021_v37  ;;  %v642_v36 = vld [vmem:[%s9068_s30 + $0x148] sm:$0xff] }
 0x10b   : > { %v885_v43 = vld [vmem:[%s9068_s30 + $0x8e0] sm:$0xff]  ;;  %3403 = vmatpush1.bf16.msra.mxu0 %v7224_v46  ;;  %v646_v37 = vld [vmem:[%s9068_s30 + $0x168] sm:$0xff] }
 0x10c   : > { %v1009_v44 = vld [vmem:[%s9068_s30 + $0xcc0] sm:$0xff]  ;;  %v7217_v48 = vcombine.high %v881_v42, %v885_v43  ;;  %3443 = vmatprep.subr.bf16.mxu1 %v7353_v41  ;;  %v7216_v56 = vcombine.low %v881_v42, %v885_v43  ;;  %v6979_v41 = vcombine.high %v642_v36, %v646_v37  ;;  %v726_v27 = vld [vmem:[%s9068_s30 + $0x3e8] sm:$0xff] }
 0x10d   : > { %v1013_v45 = vld [vmem:[%s9068_s30 + $0xce0] sm:$0xff]  ;;  %3444 = vmatpush1.bf16.msra.mxu1 %v7352_v47  ;;  %v6978_v47 = vcombine.low %v642_v36, %v646_v37  ;;  %v9277_v36 = vcombine.low %v9198_v22, %v9198_v22  ;;  %v714_v37 = vld [vmem:[%s9068_s30 + $0x388] sm:$0xff] }
 0x10e   : > { %v7345_v49 = vcombine.high %v1009_v44, %v1013_v45  ;;  %v873_v50 = vld [vmem:[%s9068_s30 + $0x880] sm:$0xff]  ;;  %3404 = vmatprep.subr.bf16.mxu0 %v7217_v48  ;;  %v7344_v57 = vcombine.low %v1009_v44, %v1013_v45  ;;  %v634_v44 = vld [vmem:[%s9068_s30 + $0x108] sm:$0xff] }
 0x10f   : > { %v877_v51 = vld [vmem:[%s9068_s30 + $0x8a0] sm:$0xff]  ;;  %3405 = vmatpush1.bf16.msra.mxu0 %v7216_v56  ;;  %v638_v45 = vld [vmem:[%s9068_s30 + $0x128] sm:$0xff] }
 0x110   : > { %v1001_v52 = vld [vmem:[%s9068_s30 + $0xc80] sm:$0xff]  ;;  %v7209_v58 = vcombine.high %v873_v50, %v877_v51  ;;  %3445 = vmatprep.subr.bf16.mxu1 %v7345_v49  ;;  %v7208_v2 = vcombine.low %v873_v50, %v877_v51  ;;  %v6971_v49 = vcombine.high %v634_v44, %v638_v45  ;;  %v706_v22 = vld [vmem:[%s9068_s30 + $0x348] sm:$0xff] }
 0x111   : > { %v1005_v53 = vld [vmem:[%s9068_s30 + $0xca0] sm:$0xff]  ;;  %3446 = vmatpush1.bf16.msra.mxu1 %v7344_v57  ;;  %v6970_v57 = vcombine.low %v634_v44, %v638_v45  ;;  %v774_v44 = vld [vmem:[%s9068_s30 + $0x568] sm:$0xff] }
 0x112   : > { %v7337_v61 = vcombine.high %v1001_v52, %v1005_v53  ;;  %v865_v62 = vld [vmem:[%s9068_s30 + $0x840] sm:$0xff]  ;;  %3406 = vmatprep.subr.bf16.mxu0 %v7209_v58  ;;  %v7336_v3 = vcombine.low %v1001_v52, %v1005_v53  ;;  %v626_v52 = vld [vmem:[%s9068_s30 + $0xc8] sm:$0xff] }
 0x113   : > { %v869_v63 = vld [vmem:[%s9068_s30 + $0x860] sm:$0xff]  ;;  %3407 = vmatpush1.bf16.msra.mxu0 %v7208_v2  ;;  %v630_v53 = vld [vmem:[%s9068_s30 + $0xe8] sm:$0xff] }
 0x114   : > { %v993_v0 = vld [vmem:[%s9068_s30 + $0xc40] sm:$0xff]  ;;  %v7201_v4 = vcombine.high %v865_v62, %v869_v63  ;;  %3447 = vmatprep.subr.bf16.mxu1 %v7337_v61  ;;  %v7200_v10 = vcombine.low %v865_v62, %v869_v63  ;;  %v6963_v61 = vcombine.high %v626_v52, %v630_v53  ;;  %v710_v45 = vld [vmem:[%s9068_s30 + $0x368] sm:$0xff] }
 0x115   : > { %v997_v1 = vld [vmem:[%s9068_s30 + $0xc60] sm:$0xff]  ;;  %3448 = vmatpush1.bf16.msra.mxu1 %v7336_v3  ;;  %v6962_v3 = vcombine.low %v626_v52, %v630_v53  ;;  %v698_v52 = vld [vmem:[%s9068_s30 + $0x308] sm:$0xff] }
 0x116   : > { %v7329_v5 = vcombine.high %v993_v0, %v997_v1  ;;  %v857_v6 = vld [vmem:[%s9068_s30 + $0x800] sm:$0xff]  ;;  %3408 = vmatprep.subr.bf16.mxu0 %v7201_v4  ;;  %v7328_v11 = vcombine.low %v993_v0, %v997_v1  ;;  %v618_v0 = vld [vmem:[%s9068_s30 + $0x88] sm:$0xff] }
 0x117   : > { %v861_v7 = vld [vmem:[%s9068_s30 + $0x820] sm:$0xff]  ;;  %3409 = vmatpush1.bf16.msra.mxu0 %v7200_v10  ;;  %v622_v1 = vld [vmem:[%s9068_s30 + $0xa8] sm:$0xff] }
 0x118   : > { %v985_v8 = vld [vmem:[%s9068_s30 + $0xc00] sm:$0xff]  ;;  %v7193_v12 = vcombine.high %v857_v6, %v861_v7  ;;  %3449 = vmatprep.subr.bf16.mxu1 %v7329_v5  ;;  %v7192_v19 = vcombine.low %v857_v6, %v861_v7  ;;  %v6955_v5 = vcombine.high %v618_v0, %v622_v1  ;;  %v702_v53 = vld [vmem:[%s9068_s30 + $0x328] sm:$0xff] }
 0x119   : > { %v989_v9 = vld [vmem:[%s9068_s30 + $0xc20] sm:$0xff]  ;;  %3450 = vmatpush1.bf16.msra.mxu1 %v7328_v11  ;;  %v6954_v11 = vcombine.low %v618_v0, %v622_v1  ;;  %v690_v0 = vld [vmem:[%s9068_s30 + $0x2c8] sm:$0xff] }
 0x11a   : > { %v7321_v13 = vcombine.high %v985_v8, %v989_v9  ;;  %v977_v14 = vld [vmem:[%s9068_s30 + $0xbc0] sm:$0xff]  ;;  %3410 = vmatprep.subr.bf16.mxu0 %v7193_v12  ;;  %v7320_v21 = vcombine.low %v985_v8, %v989_v9  ;;  %v610_v8 = vld [vmem:[%s9068_s30 + $0x48] sm:$0xff] }
 0x11b   : > { %v981_v15 = vld [vmem:[%s9068_s30 + $0xbe0] sm:$0xff]  ;;  %3411 = vmatpush1.bf16.msra.mxu0 %v7192_v19  ;;  %v614_v9 = vld [vmem:[%s9068_s30 + $0x68] sm:$0xff] }
 0x11c   : > { %v7313_v23 = vcombine.high %v977_v14, %v981_v15  ;;  %3451 = vmatprep.subr.bf16.mxu1 %v7321_v13  ;;  %v969_v25 = vld [vmem:[%s9068_s30 + $0xb80] sm:$0xff]  ;;  %v7312_v28 = vcombine.low %v977_v14, %v981_v15  ;;  %v6947_v13 = vcombine.high %v610_v8, %v614_v9  ;;  %v694_v1 = vld [vmem:[%s9068_s30 + $0x2e8] sm:$0xff] }
 0x11d   : > { %v973_v54 = vld [vmem:[%s9068_s30 + $0xba0] sm:$0xff]  ;;  %3452 = vmatpush1.bf16.msra.mxu1 %v7320_v21  ;;  %v6946_v21 = vcombine.low %v610_v8, %v614_v9  ;;  %v682_v8 = vld [vmem:[%s9068_s30 + $0x288] sm:$0xff] }
 0x11e   : > { %3412 = vmatprep.subr.bf16.mxu0 %v7313_v23  ;;  %v7305_v31 = vcombine.high %v969_v25, %v973_v54  ;;  %3478 = vmatprep.subr.bf16.mxu1 %v6995_v24  ;;  %v961_v33 = vld [vmem:[%s9068_s30 + $0xb40] sm:$0xff]  ;;  %v7304_v38 = vcombine.low %v969_v25, %v973_v54  ;;  %v6939_v24 = vcombine.high %v602_v16, %v606_v18  ;;  %v786_v25 = vld [vmem:[%s9068_s30 + $0x5c8] sm:$0xff] }
 0x11f   : > { %v965_v34 = vld [vmem:[%s9068_s30 + $0xb60] sm:$0xff]  ;;  %3413 = vmatpush2.bf16.msra.mxu0 %v7312_v28  ;;  %v790_v54 = vld [vmem:[%s9068_s30 + $0x5e8] sm:$0xff] }
 0x120   : > { %3470 = vmatmul.mubr.bf16.vlgmr.msra.gmra.mxu1 %v9241_v29  ;;  %3414 = vmatprep.subr.bf16.mxu0 %v7305_v31  ;;  %v7297_v40 = vcombine.high %v961_v33, %v965_v34  ;;  %v953_v42 = vld [vmem:[%s9068_s30 + $0xb00] sm:$0xff]  ;;  %v7296_v46 = vcombine.low %v961_v33, %v965_v34  ;;  %v7123_v31 = vcombine.high %v786_v25, %v790_v54  ;;  %v778_v33 = vld [vmem:[%s9068_s30 + $0x588] sm:$0xff] }
 0x121   : > { %3479 = vmatpush1.bf16.msra.mxu1 %v6994_v30  ;;  %v957_v43 = vld [vmem:[%s9068_s30 + $0xb20] sm:$0xff]  ;;  %3510 = vmatprep.mubr.bf16.mxu1 %v9139_v59  ;;  %v6938_v30 = vcombine.low %v602_v16, %v606_v18  ;;  %v782_v34 = vld [vmem:[%s9068_s30 + $0x5a8] sm:$0xff] }
 0x122   : > { %3480 = vmatprep.subr.bf16.mxu1 %v6987_v32  ;;  %v7289_v48 = vcombine.high %v953_v42, %v957_v43  ;;  %v945_v50 = vld [vmem:[%s9068_s30 + $0xac0] sm:$0xff]  ;;  %v7288_v56 = vcombine.low %v953_v42, %v957_v43  ;;  %v7059_v32 = vcombine.high %v722_v26, %v726_v27  ;;  %v770_v43 = vld [vmem:[%s9068_s30 + $0x548] sm:$0xff] }
 0x123   : > { %3415 = vmatpush2.bf16.msra.mxu0 %v7304_v38  ;;  %v949_v51 = vld [vmem:[%s9068_s30 + $0xae0] sm:$0xff]  ;;  %v718_v38 = vld [vmem:[%s9068_s30 + $0x3a8] sm:$0xff] }
 0x124   : > { %3416 = vmatprep.subr.bf16.mxu0 %v7297_v40  ;;  %v7281_v58 = vcombine.high %v945_v50, %v949_v51  ;;  %v937_v62 = vld [vmem:[%s9068_s30 + $0xa80] sm:$0xff]  ;;  %v7280_v2 = vcombine.low %v945_v50, %v949_v51  ;;  %v7058_v40 = vcombine.low %v722_v26, %v726_v27  ;;  %v7051_v42 = vcombine.high %v714_v37, %v718_v38  ;;  %v762_v50 = vld [vmem:[%s9068_s30 + $0x508] sm:$0xff] }
 0x125   : > { %3481 = vmatpush1.bf16.msra.mxu1 %v6986_v39  ;;  %v941_v63 = vld [vmem:[%s9068_s30 + $0xaa0] sm:$0xff]  ;;  %v7122_v39 = vcombine.low %v786_v25, %v790_v54  ;;  %v766_v51 = vld [vmem:[%s9068_s30 + $0x528] sm:$0xff] }
 0x126   : > { %3482 = vmatprep.subr.bf16.mxu1 %v6979_v41  ;;  %v7273_v4 = vcombine.high %v937_v62, %v941_v63  ;;  %v929_v6 = vld [vmem:[%s9068_s30 + $0xa40] sm:$0xff]  ;;  %v7272_v10 = vcombine.low %v937_v62, %v941_v63  ;;  %v7115_v41 = vcombine.high %v778_v33, %v782_v34  ;;  %v754_v62 = vld [vmem:[%s9068_s30 + $0x4c8] sm:$0xff] }
 0x127   : > { %3417 = vmatpush2.bf16.msra.mxu0 %v7296_v46  ;;  %v933_v7 = vld [vmem:[%s9068_s30 + $0xa60] sm:$0xff]  ;;  %v7114_v46 = vcombine.low %v778_v33, %v782_v34  ;;  %v758_v63 = vld [vmem:[%s9068_s30 + $0x4e8] sm:$0xff] }
 0x128   : > { %3418 = vmatprep.subr.bf16.mxu0 %v7289_v48  ;;  %v7265_v12 = vcombine.high %v929_v6, %v933_v7  ;;  %v921_v14 = vld [vmem:[%s9068_s30 + $0xa00] sm:$0xff]  ;;  %v7264_v19 = vcombine.low %v929_v6, %v933_v7  ;;  %v7107_v48 = vcombine.high %v770_v43, %v774_v44  ;;  %v746_v6 = vld [vmem:[%s9068_s30 + $0x488] sm:$0xff] }
 0x129   : > { %3483 = vmatpush1.bf16.msra.mxu1 %v6978_v47  ;;  %v925_v15 = vld [vmem:[%s9068_s30 + $0xa20] sm:$0xff]  ;;  %v7050_v47 = vcombine.low %v714_v37, %v718_v38  ;;  %v750_v7 = vld [vmem:[%s9068_s30 + $0x4a8] sm:$0xff] }
 0x12a   : > { %3484 = vmatprep.subr.bf16.mxu1 %v6971_v49  ;;  %v7257_v23 = vcombine.high %v921_v14, %v925_v15  ;;  %v7256_v28 = vcombine.low %v921_v14, %v925_v15  ;;  %v7043_v49 = vcombine.high %v706_v22, %v710_v45  ;;  %v686_v9 = vld [vmem:[%s9068_s30 + $0x2a8] sm:$0xff] }
 0x12b   : > { %3419 = vmatpush2.bf16.msra.mxu0 %v7288_v56  ;;  %v7106_v56 = vcombine.low %v770_v43, %v774_v44  ;;  %v738_v14 = vld [vmem:[%s9068_s30 + $0x448] sm:$0xff] }
 0x12c   : > { %3420 = vmatprep.subr.bf16.mxu0 %v7281_v58  ;;  %v7099_v58 = vcombine.high %v762_v50, %v766_v51  ;;  %v742_v15 = vld [vmem:[%s9068_s30 + $0x468] sm:$0xff] }
 0x12d   : > { %3485 = vmatpush1.bf16.msra.mxu1 %v6970_v57  ;;  %v7042_v57 = vcombine.low %v706_v22, %v710_v45  ;;  %v674_v16 = vld [vmem:[%s9068_s30 + $0x248] sm:$0xff] }
 0x12e   : > { %3486 = vmatprep.subr.bf16.mxu1 %v6963_v61  ;;  %v7035_v61 = vcombine.high %v698_v52, %v702_v53  ;;  %v678_v18 = vld [vmem:[%s9068_s30 + $0x268] sm:$0xff] }
 0x12f   : > { %3421 = vmatpush2.bf16.msra.mxu0 %v7280_v2  ;;  %v7098_v2 = vcombine.low %v762_v50, %v766_v51  ;;  %v730_v25 = vld [vmem:[%s9068_s30 + $0x408] sm:$0xff] }
 0x130   : > { %3422 = vmatprep.subr.bf16.mxu0 %v7273_v4  ;;  %v7091_v4 = vcombine.high %v754_v62, %v758_v63  ;;  %v734_v54 = vld [vmem:[%s9068_s30 + $0x428] sm:$0xff] }
 0x131   : > { %3487 = vmatpush1.bf16.msra.mxu1 %v6962_v3  ;;  %v7034_v3 = vcombine.low %v698_v52, %v702_v53  ;;  %v666_v26 = vld [vmem:[%s9068_s30 + $0x208] sm:$0xff] }
 0x132   : > { %3488 = vmatprep.subr.bf16.mxu1 %v6955_v5  ;;  %v7027_v5 = vcombine.high %v690_v0, %v694_v1  ;;  %v670_v27 = vld [vmem:[%s9068_s30 + $0x228] sm:$0xff] }
 0x133   : > { %3423 = vmatpush2.bf16.msra.mxu0 %v7272_v10  ;;  %v7090_v10 = vcombine.low %v754_v62, %v758_v63  ;;  %v850_v33 = vld [vmem:[%s9068_s30 + $0x7c8] sm:$0xff] }
 0x134   : > { %3424 = vmatprep.subr.bf16.mxu0 %v7265_v12  ;;  %v7083_v12 = vcombine.high %v746_v6, %v750_v7  ;;  %v854_v34 = vld [vmem:[%s9068_s30 + $0x7e8] sm:$0xff] }
 0x135   : > { %3489 = vmatpush1.bf16.msra.mxu1 %v6954_v11  ;;  %v7026_v11 = vcombine.low %v690_v0, %v694_v1  ;;  %v914_v37 = vld [vmem:[%s9068_s30 + $0x9c8] sm:$0xff] }
 0x136   : > { %3490 = vmatprep.subr.bf16.mxu1 %v6947_v13  ;;  %v7019_v13 = vcombine.high %v682_v8, %v686_v9  ;;  %v918_v38 = vld [vmem:[%s9068_s30 + $0x9e8] sm:$0xff] }
 0x137   : > { %3425 = vmatpush2.bf16.msra.mxu0 %v7264_v19  ;;  %v7082_v19 = vcombine.low %v746_v6, %v750_v7  ;;  %v842_v43 = vld [vmem:[%s9068_s30 + $0x788] sm:$0xff] }
 0x138   : > { %3426 = vmatprep.subr.bf16.mxu0 %v7257_v23  ;;  %v7075_v23 = vcombine.high %v738_v14, %v742_v15  ;;  %v846_v44 = vld [vmem:[%s9068_s30 + $0x7a8] sm:$0xff] }
 0x139   : > { %3491 = vmatpush1.bf16.msra.mxu1 %v6946_v21  ;;  %v7018_v21 = vcombine.low %v682_v8, %v686_v9  ;;  %v906_v22 = vld [vmem:[%s9068_s30 + $0x988] sm:$0xff] }
 0x13a   : > { %3492 = vmatprep.subr.bf16.mxu1 %v6939_v24  ;;  %v7011_v24 = vcombine.high %v674_v16, %v678_v18  ;;  %v910_v45 = vld [vmem:[%s9068_s30 + $0x9a8] sm:$0xff] }
 0x13b   : > { %3427 = vmatpush2.bf16.msra.mxu0 %v7256_v28  ;;  %v7074_v28 = vcombine.low %v738_v14, %v742_v15  ;;  %v834_v50 = vld [vmem:[%s9068_s30 + $0x748] sm:$0xff] }
 0x13c   : > { %3519 = vmatprep.subr.bf16.mxu0 %v7123_v31  ;;  %v7067_v31 = vcombine.high %v730_v25, %v734_v54  ;;  %v838_v51 = vld [vmem:[%s9068_s30 + $0x768] sm:$0xff] }
 0x13d   : > { %3493 = vmatpush1.bf16.msra.mxu1 %v6938_v30  ;;  %v7010_v30 = vcombine.low %v674_v16, %v678_v18  ;;  %v898_v52 = vld [vmem:[%s9068_s30 + $0x948] sm:$0xff] }
 0x13e   : > { %3494 = vmatprep.subr.bf16.mxu1 %v7059_v32  ;;  %3429 = vmatmul.mubr.bf16.vlgmr.msra.gmra.mxu0 %v9277_v36  ;;  %v7003_v32 = vcombine.high %v666_v26, %v670_v27  ;;  %v902_v53 = vld [vmem:[%s9068_s30 + $0x968] sm:$0xff] }
 0x13f   : > { %3520 = vmatpush1.bf16.msra.mxu0 %v7122_v39  ;;  %3551 = vmatprep.mubr.bf16.mxu0 %v9143_v60  ;;  %v7066_v39 = vcombine.low %v730_v25, %v734_v54  ;;  %v826_v62 = vld [vmem:[%s9068_s30 + $0x708] sm:$0xff] }
 0x140   : > { %3521 = vmatprep.subr.bf16.mxu0 %v7115_v41  ;;  %v7187_v41 = vcombine.high %v850_v33, %v854_v34  ;;  %v830_v63 = vld [vmem:[%s9068_s30 + $0x728] sm:$0xff] }
 0x141   : > { %3495 = vmatpush2.bf16.msra.mxu1 %v7058_v40  ;;  %v7002_v40 = vcombine.low %v666_v26, %v670_v27  ;;  %v890_v0 = vld [vmem:[%s9068_s30 + $0x908] sm:$0xff] }
 0x142   : > { %3496 = vmatprep.subr.bf16.mxu1 %v7051_v42  ;;  %v7251_v42 = vcombine.high %v914_v37, %v918_v38  ;;  %v894_v1 = vld [vmem:[%s9068_s30 + $0x928] sm:$0xff] }
 0x143   : > { %3522 = vmatpush1.bf16.msra.mxu0 %v7114_v46  ;;  %v7186_v46 = vcombine.low %v850_v33, %v854_v34  ;;  %v818_v6 = vld [vmem:[%s9068_s30 + $0x6c8] sm:$0xff] }
 0x144   : > { %3523 = vmatprep.subr.bf16.mxu0 %v7107_v48  ;;  %v7179_v48 = vcombine.high %v842_v43, %v846_v44  ;;  %v822_v7 = vld [vmem:[%s9068_s30 + $0x6e8] sm:$0xff] }
 0x145   : > { %3497 = vmatpush2.bf16.msra.mxu1 %v7050_v47  ;;  %v7250_v47 = vcombine.low %v914_v37, %v918_v38  ;;  %v882_v8 = vld [vmem:[%s9068_s30 + $0x8c8] sm:$0xff] }
 0x146   : > { %3498 = vmatprep.subr.bf16.mxu1 %v7043_v49  ;;  %v7243_v49 = vcombine.high %v906_v22, %v910_v45  ;;  %v886_v9 = vld [vmem:[%s9068_s30 + $0x8e8] sm:$0xff] }
 0x147   : > { %3524 = vmatpush1.bf16.msra.mxu0 %v7106_v56  ;;  %v7178_v56 = vcombine.low %v842_v43, %v846_v44  ;;  %v810_v14 = vld [vmem:[%s9068_s30 + $0x688] sm:$0xff] }
 0x148   : > { %3525 = vmatprep.subr.bf16.mxu0 %v7099_v58  ;;  %v7171_v58 = vcombine.high %v834_v50, %v838_v51  ;;  %v814_v15 = vld [vmem:[%s9068_s30 + $0x6a8] sm:$0xff] }
 0x149   : > { %3499 = vmatpush2.bf16.msra.mxu1 %v7042_v57  ;;  %v7242_v57 = vcombine.low %v906_v22, %v910_v45  ;;  %v874_v16 = vld [vmem:[%s9068_s30 + $0x888] sm:$0xff] }
 0x14a   : > { %3500 = vmatprep.subr.bf16.mxu1 %v7035_v61  ;;  %v7235_v61 = vcombine.high %v898_v52, %v902_v53  ;;  %v878_v18 = vld [vmem:[%s9068_s30 + $0x8a8] sm:$0xff] }
 0x14b   : > { %3526 = vmatpush1.bf16.msra.mxu0 %v7098_v2  ;;  %v7170_v2 = vcombine.low %v834_v50, %v838_v51  ;;  %v802_v25 = vld [vmem:[%s9068_s30 + $0x648] sm:$0xff] }
 0x14c   : > { %3527 = vmatprep.subr.bf16.mxu0 %v7091_v4  ;;  %v7163_v4 = vcombine.high %v826_v62, %v830_v63  ;;  %v806_v54 = vld [vmem:[%s9068_s30 + $0x668] sm:$0xff] }
 0x14d   : > { %3501 = vmatpush2.bf16.msra.mxu1 %v7034_v3  ;;  %v7234_v3 = vcombine.low %v898_v52, %v902_v53  ;;  %v866_v26 = vld [vmem:[%s9068_s30 + $0x848] sm:$0xff] }
 0x14e   : > { %3502 = vmatprep.subr.bf16.mxu1 %v7027_v5  ;;  %v7227_v5 = vcombine.high %v890_v0, %v894_v1  ;;  %v870_v27 = vld [vmem:[%s9068_s30 + $0x868] sm:$0xff] }
 0x14f   : > { %3528 = vmatpush1.bf16.msra.mxu0 %v7090_v10  ;;  %v7162_v10 = vcombine.low %v826_v62, %v830_v63  ;;  %v794_v33 = vld [vmem:[%s9068_s30 + $0x608] sm:$0xff] }
 0x150   : > { %3529 = vmatprep.subr.bf16.mxu0 %v7083_v12  ;;  %v7155_v12 = vcombine.high %v818_v6, %v822_v7  ;;  %v798_v34 = vld [vmem:[%s9068_s30 + $0x628] sm:$0xff] }
 0x151   : > { %3503 = vmatpush2.bf16.msra.mxu1 %v7026_v11  ;;  %v7226_v11 = vcombine.low %v890_v0, %v894_v1  ;;  %v858_v37 = vld [vmem:[%s9068_s30 + $0x808] sm:$0xff] }
 0x152   : > { %3504 = vmatprep.subr.bf16.mxu1 %v7019_v13  ;;  %v7219_v13 = vcombine.high %v882_v8, %v886_v9  ;;  %v862_v38 = vld [vmem:[%s9068_s30 + $0x828] sm:$0xff] }
 0x153   : > { %3530 = vmatpush1.bf16.msra.mxu0 %v7082_v19  ;;  %v7154_v19 = vcombine.low %v818_v6, %v822_v7  ;;  %v1042_v43 = vld [vmem:[%s9068_s30 + $0xdc8] sm:$0xff] }
 0x154   : > { %3531 = vmatprep.subr.bf16.mxu0 %v7075_v23  ;;  %v7147_v23 = vcombine.high %v810_v14, %v814_v15  ;;  %v1046_v44 = vld [vmem:[%s9068_s30 + $0xde8] sm:$0xff] }
 0x155   : > { %3505 = vmatpush2.bf16.msra.mxu1 %v7018_v21  ;;  %v7218_v21 = vcombine.low %v882_v8, %v886_v9  ;;  %v978_v22 = vld [vmem:[%s9068_s30 + $0xbc8] sm:$0xff] }
 0x156   : > { %3506 = vmatprep.subr.bf16.mxu1 %v7011_v24  ;;  %v7211_v24 = vcombine.high %v874_v16, %v878_v18  ;;  %v982_v45 = vld [vmem:[%s9068_s30 + $0xbe8] sm:$0xff] }
 0x157   : > { %3532 = vmatpush1.bf16.msra.mxu0 %v7074_v28  ;;  %v7146_v28 = vcombine.low %v810_v14, %v814_v15  ;;  %v1034_v50 = vld [vmem:[%s9068_s30 + $0xd88] sm:$0xff] }
 0x158   : > { %3533 = vmatprep.subr.bf16.mxu0 %v7067_v31  ;;  %v7139_v31 = vcombine.high %v802_v25, %v806_v54  ;;  %v1038_v51 = vld [vmem:[%s9068_s30 + $0xda8] sm:$0xff] }
 0x159   : > { %3507 = vmatpush2.bf16.msra.mxu1 %v7010_v30  ;;  %v7210_v30 = vcombine.low %v874_v16, %v878_v18  ;;  %v970_v52 = vld [vmem:[%s9068_s30 + $0xb88] sm:$0xff] }
 0x15a   : > { %3508 = vmatprep.subr.bf16.mxu1 %v7003_v32  ;;  %v7203_v32 = vcombine.high %v866_v26, %v870_v27  ;;  %v974_v53 = vld [vmem:[%s9068_s30 + $0xba8] sm:$0xff] }
 0x15b   : > { %3534 = vmatpush1.bf16.msra.mxu0 %v7066_v39  ;;  %v7138_v39 = vcombine.low %v802_v25, %v806_v54  ;;  %v1026_v62 = vld [vmem:[%s9068_s30 + $0xd48] sm:$0xff] }
 0x15c   : > { %3535 = vmatprep.subr.bf16.mxu0 %v7187_v41  ;;  %v7131_v41 = vcombine.high %v794_v33, %v798_v34  ;;  %v1030_v63 = vld [vmem:[%s9068_s30 + $0xd68] sm:$0xff] }
 0x15d   : > { %3509 = vmatpush2.bf16.msra.mxu1 %v7002_v40  ;;  %v7202_v40 = vcombine.low %v866_v26, %v870_v27  ;;  %v962_v0 = vld [vmem:[%s9068_s30 + $0xb48] sm:$0xff] }
 0x15e   : > { %3560 = vmatprep.subr.bf16.mxu1 %v7251_v42  ;;  %v7195_v42 = vcombine.high %v858_v37, %v862_v38  ;;  %v966_v1 = vld [vmem:[%s9068_s30 + $0xb68] sm:$0xff] }
 0x15f   : > { %3536 = vmatpush2.bf16.msra.mxu0 %v7186_v46  ;;  %v7130_v46 = vcombine.low %v794_v33, %v798_v34  ;;  %v1018_v6 = vld [vmem:[%s9068_s30 + $0xd08] sm:$0xff] }
 0x160   : > { %3511 = vmatmul.mubr.bf16.vlgmr.msra.gmra.mxu1 %v9189_v17  ;;  %3537 = vmatprep.subr.bf16.mxu0 %v7179_v48  ;;  %v7379_v48 = vcombine.high %v1042_v43, %v1046_v44  ;;  %v1022_v7 = vld [vmem:[%s9068_s30 + $0xd28] sm:$0xff] }
 0x161   : > { %3561 = vmatpush1.bf16.msra.mxu1 %v7250_v47  ;;  %3592 = vmatprep.mubr.bf16.mxu1 %v9207_v55  ;;  %v7194_v47 = vcombine.low %v858_v37, %v862_v38  ;;  %v954_v8 = vld [vmem:[%s9068_s30 + $0xb08] sm:$0xff] }
 0x162   : > { %3562 = vmatprep.subr.bf16.mxu1 %v7243_v49  ;;  %v7315_v49 = vcombine.high %v978_v22, %v982_v45  ;;  %v958_v9 = vld [vmem:[%s9068_s30 + $0xb28] sm:$0xff] }
 0x163   : > { %3538 = vmatpush2.bf16.msra.mxu0 %v7178_v56  ;;  %v7378_v56 = vcombine.low %v1042_v43, %v1046_v44  ;;  %v1010_v14 = vld [vmem:[%s9068_s30 + $0xcc8] sm:$0xff] }
 0x164   : > { %3539 = vmatprep.subr.bf16.mxu0 %v7171_v58  ;;  %v7371_v58 = vcombine.high %v1034_v50, %v1038_v51  ;;  %v1014_v15 = vld [vmem:[%s9068_s30 + $0xce8] sm:$0xff] }
 0x165   : > { %3563 = vmatpush1.bf16.msra.mxu1 %v7242_v57  ;;  %v7314_v57 = vcombine.low %v978_v22, %v982_v45  ;;  %v946_v16 = vld [vmem:[%s9068_s30 + $0xac8] sm:$0xff] }
 0x166   : > { %3564 = vmatprep.subr.bf16.mxu1 %v7235_v61  ;;  %v7307_v61 = vcombine.high %v970_v52, %v974_v53  ;;  %v950_v18 = vld [vmem:[%s9068_s30 + $0xae8] sm:$0xff] }
 0x167   : > { %3540 = vmatpush2.bf16.msra.mxu0 %v7170_v2  ;;  %v7370_v2 = vcombine.low %v1034_v50, %v1038_v51  ;;  %v1002_v25 = vld [vmem:[%s9068_s30 + $0xc88] sm:$0xff]  ;;  %v659_v50 = vld [vmem:[%s9068_s30 + $0x1d0] sm:$0xff] }
 0x168   : > { %3541 = vmatprep.subr.bf16.mxu0 %v7163_v4  ;;  %v7363_v4 = vcombine.high %v1026_v62, %v1030_v63  ;;  %v1006_v54 = vld [vmem:[%s9068_s30 + $0xca8] sm:$0xff]  ;;  %v663_v51 = vld [vmem:[%s9068_s30 + $0x1f0] sm:$0xff] }
 0x169   : > { %3565 = vmatpush1.bf16.msra.mxu1 %v7234_v3  ;;  %v7306_v3 = vcombine.low %v970_v52, %v974_v53  ;;  %v938_v26 = vld [vmem:[%s9068_s30 + $0xa88] sm:$0xff]  ;;  %v787_v52 = vld [vmem:[%s9068_s30 + $0x5d0] sm:$0xff] }
 0x16a   : > { %3566 = vmatprep.subr.bf16.mxu1 %v7227_v5  ;;  %v7299_v5 = vcombine.high %v962_v0, %v966_v1  ;;  %v942_v27 = vld [vmem:[%s9068_s30 + $0xaa8] sm:$0xff]  ;;  %v791_v53 = vld [vmem:[%s9068_s30 + $0x5f0] sm:$0xff] }
 0x16b   : > { %3542 = vmatpush2.bf16.msra.mxu0 %v7162_v10  ;;  %v7362_v10 = vcombine.low %v1026_v62, %v1030_v63  ;;  %v994_v33 = vld [vmem:[%s9068_s30 + $0xc48] sm:$0xff]  ;;  %v651_v62 = vld [vmem:[%s9068_s30 + $0x190] sm:$0xff] }
 0x16c   : > { %3543 = vmatprep.subr.bf16.mxu0 %v7155_v12  ;;  %v7355_v12 = vcombine.high %v1018_v6, %v1022_v7  ;;  %v998_v34 = vld [vmem:[%s9068_s30 + $0xc68] sm:$0xff]  ;;  %v655_v63 = vld [vmem:[%s9068_s30 + $0x1b0] sm:$0xff] }
 0x16d   : > { %3567 = vmatpush1.bf16.msra.mxu1 %v7226_v11  ;;  %v7298_v11 = vcombine.low %v962_v0, %v966_v1  ;;  %v930_v37 = vld [vmem:[%s9068_s30 + $0xa48] sm:$0xff]  ;;  %v779_v0 = vld [vmem:[%s9068_s30 + $0x590] sm:$0xff] }
 0x16e   : > { %3568 = vmatprep.subr.bf16.mxu1 %v7219_v13  ;;  %v7291_v13 = vcombine.high %v954_v8, %v958_v9  ;;  %v934_v38 = vld [vmem:[%s9068_s30 + $0xa68] sm:$0xff]  ;;  %v783_v1 = vld [vmem:[%s9068_s30 + $0x5b0] sm:$0xff] }
 0x16f   : > { %3544 = vmatpush2.bf16.msra.mxu0 %v7154_v19  ;;  %v7354_v19 = vcombine.low %v1018_v6, %v1022_v7  ;;  %v986_v43 = vld [vmem:[%s9068_s30 + $0xc08] sm:$0xff]  ;;  %v643_v6 = vld [vmem:[%s9068_s30 + $0x150] sm:$0xff] }
 0x170   : > { %3545 = vmatprep.subr.bf16.mxu0 %v7147_v23  ;;  %v7347_v23 = vcombine.high %v1010_v14, %v1014_v15  ;;  %v990_v44 = vld [vmem:[%s9068_s30 + $0xc28] sm:$0xff]  ;;  %v647_v7 = vld [vmem:[%s9068_s30 + $0x170] sm:$0xff] }
 0x171   : > { %3569 = vmatpush1.bf16.msra.mxu1 %v7218_v21  ;;  %v7290_v21 = vcombine.low %v954_v8, %v958_v9  ;;  %v922_v22 = vld [vmem:[%s9068_s30 + $0xa08] sm:$0xff]  ;;  %v771_v8 = vld [vmem:[%s9068_s30 + $0x550] sm:$0xff] }
 0x172   : > { %3570 = vmatprep.subr.bf16.mxu1 %v7211_v24  ;;  %v7283_v24 = vcombine.high %v946_v16, %v950_v18  ;;  %v926_v45 = vld [vmem:[%s9068_s30 + $0xa28] sm:$0xff]  ;;  %v775_v9 = vld [vmem:[%s9068_s30 + $0x570] sm:$0xff] }
 0x173   : > { %3546 = vmatpush2.bf16.msra.mxu0 %v7146_v28  ;;  %v7346_v28 = vcombine.low %v1010_v14, %v1014_v15  ;;  %v635_v14 = vld [vmem:[%s9068_s30 + $0x110] sm:$0xff] }
 0x174   : > { %3547 = vmatprep.subr.bf16.mxu0 %v7139_v31  ;;  %v7339_v31 = vcombine.high %v1002_v25, %v1006_v54  ;;  %v639_v15 = vld [vmem:[%s9068_s30 + $0x130] sm:$0xff] }
 0x175   : > { %3571 = vmatpush1.bf16.msra.mxu1 %v7210_v30  ;;  %v7282_v30 = vcombine.low %v946_v16, %v950_v18  ;;  %v767_v16 = vld [vmem:[%s9068_s30 + $0x530] sm:$0xff]  ;;  %v6980_v18 = vcombine.low %v643_v6, %v647_v7 }
 0x176   : > { %3572 = vmatprep.subr.bf16.mxu1 %v7203_v32  ;;  %v7275_v32 = vcombine.high %v938_v26, %v942_v27 }
 0x177   : > { %3548 = vmatpush2.bf16.msra.mxu0 %v7138_v39  ;;  %v7338_v39 = vcombine.low %v1002_v25, %v1006_v54  ;;  %v631_v25 = vld [vmem:[%s9068_s30 + $0xf0] sm:$0xff] }
 0x178   : > { %3549 = vmatprep.subr.bf16.mxu0 %v7131_v41  ;;  %v7331_v41 = vcombine.high %v994_v33, %v998_v34  ;;  %v755_v54 = vld [vmem:[%s9068_s30 + $0x4d0] sm:$0xff] }
 0x179   : > { %3573 = vmatpush1.bf16.msra.mxu1 %v7202_v40  ;;  %v7274_v40 = vcombine.low %v938_v26, %v942_v27  ;;  %v759_v26 = vld [vmem:[%s9068_s30 + $0x4f0] sm:$0xff]  ;;  %v6972_v27 = vcombine.low %v635_v14, %v639_v15 }
 0x17a   : > { %3574 = vmatprep.subr.bf16.mxu1 %v7195_v42  ;;  %v7267_v42 = vcombine.high %v930_v37, %v934_v38 }
 0x17b   : > { %3550 = vmatpush2.bf16.msra.mxu0 %v7130_v46  ;;  %v7330_v46 = vcombine.low %v994_v33, %v998_v34  ;;  %v623_v33 = vld [vmem:[%s9068_s30 + $0xb0] sm:$0xff] }
 0x17c   : > { %3601 = vmatprep.subr.bf16.mxu0 %v7379_v48  ;;  %v7323_v48 = vcombine.high %v986_v43, %v990_v44  ;;  %v747_v34 = vld [vmem:[%s9068_s30 + $0x490] sm:$0xff] }
 0x17d   : > { %3575 = vmatpush1.bf16.msra.mxu1 %v7194_v47  ;;  %v7266_v47 = vcombine.low %v930_v37, %v934_v38  ;;  %v751_v37 = vld [vmem:[%s9068_s30 + $0x4b0] sm:$0xff] }
 0x17e   : > { %3576 = vmatprep.subr.bf16.mxu1 %v7315_v49  ;;  %3552 = vmatmul.mubr.bf16.vlgmr.msra.gmra.mxu0 %v9195_v20  ;;  %v7259_v49 = vcombine.high %v922_v22, %v926_v45 }
 0x17f   : > { %3602 = vmatpush1.bf16.msra.mxu0 %v7378_v56  ;;  %3633 = vmatprep.mubr.bf16.mxu0 %v8843_v35  ;;  %v7322_v56 = vcombine.low %v986_v43, %v990_v44  ;;  %v615_v43 = vld [vmem:[%s9068_s30 + $0x70] sm:$0xff] }
 0x180   : > { %3603 = vmatprep.subr.bf16.mxu0 %v7371_v58  ;;  %v6997_v58 = vcombine.high %v659_v50, %v663_v51  ;;  %v739_v44 = vld [vmem:[%s9068_s30 + $0x450] sm:$0xff] }
 0x181   : > { %3577 = vmatpush2.bf16.msra.mxu1 %v7314_v57  ;;  %v7258_v57 = vcombine.low %v922_v22, %v926_v45  ;;  %v743_v22 = vld [vmem:[%s9068_s30 + $0x470] sm:$0xff] }
 0x182   : > { %3578 = vmatprep.subr.bf16.mxu1 %v7307_v61  ;;  %v7125_v61 = vcombine.high %v787_v52, %v791_v53 }
 0x183   : > { %3604 = vmatpush1.bf16.msra.mxu0 %v7370_v2  ;;  %v6996_v2 = vcombine.low %v659_v50, %v663_v51  ;;  %v607_v50 = vld [vmem:[%s9068_s30 + $0x30] sm:$0xff] }
 0x184   : > { %3605 = vmatprep.subr.bf16.mxu0 %v7363_v4  ;;  %v6989_v4 = vcombine.high %v651_v62, %v655_v63  ;;  %v731_v51 = vld [vmem:[%s9068_s30 + $0x410] sm:$0xff] }
 0x185   : > { %3579 = vmatpush2.bf16.msra.mxu1 %v7306_v3  ;;  %v7124_v3 = vcombine.low %v787_v52, %v791_v53  ;;  %v735_v52 = vld [vmem:[%s9068_s30 + $0x430] sm:$0xff] }
 0x186   : > { %3580 = vmatprep.subr.bf16.mxu1 %v7299_v5  ;;  %v7117_v5 = vcombine.high %v779_v0, %v783_v1 }
 0x187   : > { %3606 = vmatpush1.bf16.msra.mxu0 %v7362_v10  ;;  %v6988_v10 = vcombine.low %v651_v62, %v655_v63  ;;  %v727_v62 = vld [vmem:[%s9068_s30 + $0x3f0] sm:$0xff] }
 0x188   : > { %3607 = vmatprep.subr.bf16.mxu0 %v7355_v12  ;;  %v6981_v12 = vcombine.high %v643_v6, %v647_v7  ;;  %v851_v63 = vld [vmem:[%s9068_s30 + $0x7d0] sm:$0xff] }
 0x189   : > { %3581 = vmatpush2.bf16.msra.mxu1 %v7298_v11  ;;  %v7116_v11 = vcombine.low %v779_v0, %v783_v1  ;;  %v855_v0 = vld [vmem:[%s9068_s30 + $0x7f0] sm:$0xff] }
 0x18a   : > { %3582 = vmatprep.subr.bf16.mxu1 %v7291_v13  ;;  %v7109_v13 = vcombine.high %v771_v8, %v775_v9  ;;  %v719_v6 = vld [vmem:[%s9068_s30 + $0x3b0] sm:$0xff] }
 0x18b   : > { %3608 = vmatpush1.bf16.msra.mxu0 %v7354_v19  ;;  %v7108_v19 = vcombine.low %v771_v8, %v775_v9  ;;  %v843_v7 = vld [vmem:[%s9068_s30 + $0x790] sm:$0xff] }
 0x18c   : > { %3609 = vmatprep.subr.bf16.mxu0 %v7347_v23  ;;  %v847_v8 = vld [vmem:[%s9068_s30 + $0x7b0] sm:$0xff] }
 0x18d   : > { %3583 = vmatpush2.bf16.msra.mxu1 %v7290_v21  ;;  %v6973_v21 = vcombine.high %v635_v14, %v639_v15  ;;  %v711_v14 = vld [vmem:[%s9068_s30 + $0x370] sm:$0xff] }
 0x18e   : > { %3584 = vmatprep.subr.bf16.mxu1 %v7283_v24  ;;  %v627_v24 = vld [vmem:[%s9068_s30 + $0xd0] sm:$0xff] }
 0x18f   : > { %3610 = vmatpush1.bf16.msra.mxu0 %v7346_v28  ;;  %v6964_v38 = vcombine.low %v627_v24, %v631_v25 }
 0x190   : > { %3611 = vmatprep.subr.bf16.mxu0 %v7339_v31  ;;  %v7093_v31 = vcombine.high %v755_v54, %v759_v26 }
 0x191   : > { %3585 = vmatpush2.bf16.msra.mxu1 %v7282_v30  ;;  %v6965_v30 = vcombine.high %v627_v24, %v631_v25 }
 0x192   : > { %3586 = vmatprep.subr.bf16.mxu1 %v7275_v32  ;;  %v619_v32 = vld [vmem:[%s9068_s30 + $0x90] sm:$0xff] }
 0x193   : > { %3612 = vmatpush1.bf16.msra.mxu0 %v7338_v39  ;;  %v7092_v39 = vcombine.low %v755_v54, %v759_v26  ;;  %v6956_v45 = vcombine.low %v619_v32, %v623_v33  ;;  %v699_v26 = vld [vmem:[%s9068_s30 + $0x310] sm:$0xff] }
 0x194   : > { %3613 = vmatprep.subr.bf16.mxu0 %v7331_v41  ;;  %v7085_v41 = vcombine.high %v747_v34, %v751_v37 }
 0x195   : > { %3587 = vmatpush2.bf16.msra.mxu1 %v7274_v40  ;;  %v6957_v40 = vcombine.high %v619_v32, %v623_v33 }
 0x196   : > { %3588 = vmatprep.subr.bf16.mxu1 %v7267_v42  ;;  %v611_v42 = vld [vmem:[%s9068_s30 + $0x50] sm:$0xff] }
 0x197   : > { %3614 = vmatpush1.bf16.msra.mxu0 %v7330_v46  ;;  %v7084_v46 = vcombine.low %v747_v34, %v751_v37  ;;  %v6948_v53 = vcombine.low %v611_v42, %v615_v43 }
 0x198   : > { %3615 = vmatprep.subr.bf16.mxu0 %v7323_v48  ;;  %v7077_v48 = vcombine.high %v739_v44, %v743_v22 }
 0x199   : > { %3589 = vmatpush2.bf16.msra.mxu1 %v7266_v47  ;;  %v6949_v47 = vcombine.high %v611_v42, %v615_v43  ;;  %v695_v42 = vld [vmem:[%s9068_s30 + $0x2f0] sm:$0xff] }
 0x19a   : > { %3590 = vmatprep.subr.bf16.mxu1 %v7259_v49  ;;  %v603_v49 = vld [vmem:[%s9068_s30 + $0x10] sm:$0xff] }
 0x19b   : > { %3616 = vmatpush1.bf16.msra.mxu0 %v7322_v56  ;;  %v7076_v56 = vcombine.low %v739_v44, %v743_v22  ;;  %v6940_v1 = vcombine.low %v603_v49, %v607_v50  ;;  %v819_v43 = vld [vmem:[%s9068_s30 + $0x6d0] sm:$0xff] }
 0x19c   : > { %3642 = vmatprep.subr.bf16.mxu0 %v6997_v58  ;;  %v7069_v58 = vcombine.high %v731_v51, %v735_v52  ;;  %v823_v44 = vld [vmem:[%s9068_s30 + $0x6f0] sm:$0xff] }
 0x19d   : > { %3591 = vmatpush2.bf16.msra.mxu1 %v7258_v57  ;;  %v6941_v57 = vcombine.high %v603_v49, %v607_v50  ;;  %v687_v49 = vld [vmem:[%s9068_s30 + $0x2b0] sm:$0xff] }
 0x19e   : > { %3683 = vmatprep.subr.bf16.mxu1 %v7125_v61  ;;  %3634 = vmatmul.mubr.bf16.vlgmr.msra.gmra.mxu0 %v9241_v29  ;;  %v763_v29 = vld [vmem:[%s9068_s30 + $0x510] sm:$0xff] }
 0x19f   : > { %3643 = vmatpush1.bf16.msra.mxu0 %v6996_v2  ;;  %3674 = vmatprep.mubr.bf16.mxu0 %v9139_v59  ;;  %v7101_v23 = vcombine.high %v763_v29, %v767_v16  ;;  %v7100_v28 = vcombine.low %v763_v29, %v767_v16  ;;  %v723_v61 = vld [vmem:[%s9068_s30 + $0x3d0] sm:$0xff]  ;;  %v7068_v2 = vcombine.low %v731_v51, %v735_v52 }
 0x1a0   : > { %3593 = vmatmul.mubr.bf16.vlgmr.msra.gmra.mxu1 %v9277_v36  ;;  %3644 = vmatprep.subr.bf16.mxu0 %v6989_v4  ;;  %v7189_v4 = vcombine.high %v851_v63, %v855_v0  ;;  %v7060_v9 = vcombine.low %v723_v61, %v727_v62  ;;  %v835_v29 = vld [vmem:[%s9068_s30 + $0x750] sm:$0xff] }
 0x1a1   : > { %3684 = vmatpush1.bf16.msra.mxu1 %v7124_v3  ;;  %3715 = vmatprep.mubr.bf16.mxu1 %v9143_v60  ;;  %v7061_v3 = vcombine.high %v723_v61, %v727_v62  ;;  %v839_v16 = vld [vmem:[%s9068_s30 + $0x770] sm:$0xff] }
 0x1a2   : > { %3685 = vmatprep.subr.bf16.mxu1 %v7117_v5  ;;  %v715_v5 = vld [vmem:[%s9068_s30 + $0x390] sm:$0xff]  ;;  %v7173_v54 = vcombine.high %v835_v29, %v839_v16  ;;  %v7172_v37 = vcombine.low %v835_v29, %v839_v16 }
 0x1a3   : > { %3645 = vmatpush1.bf16.msra.mxu0 %v6988_v10  ;;  %v7188_v10 = vcombine.low %v851_v63, %v855_v0  ;;  %v811_v50 = vld [vmem:[%s9068_s30 + $0x690] sm:$0xff] }
 0x1a4   : > { %3646 = vmatprep.subr.bf16.mxu0 %v6981_v12  ;;  %v7181_v12 = vcombine.high %v843_v7, %v847_v8  ;;  %v815_v51 = vld [vmem:[%s9068_s30 + $0x6b0] sm:$0xff] }
 0x1a5   : > { %3686 = vmatpush1.bf16.msra.mxu1 %v7116_v11  ;;  %v7053_v11 = vcombine.high %v715_v5, %v719_v6  ;;  %v679_v61 = vld [vmem:[%s9068_s30 + $0x270] sm:$0xff] }
 0x1a6   : > { %3687 = vmatprep.subr.bf16.mxu1 %v7109_v13  ;;  %v707_v13 = vld [vmem:[%s9068_s30 + $0x350] sm:$0xff] }
 0x1a7   : > { %3647 = vmatpush1.bf16.msra.mxu0 %v6980_v18  ;;  %v7045_v24 = vcombine.high %v707_v13, %v711_v14  ;;  %v7044_v33 = vcombine.low %v707_v13, %v711_v14  ;;  %v803_v62 = vld [vmem:[%s9068_s30 + $0x650] sm:$0xff] }
 0x1a8   : > { %3648 = vmatprep.subr.bf16.mxu0 %v6973_v21  ;;  %v807_v63 = vld [vmem:[%s9068_s30 + $0x670] sm:$0xff] }
 0x1a9   : > { %3688 = vmatpush1.bf16.msra.mxu1 %v7108_v19  ;;  %v7052_v19 = vcombine.low %v715_v5, %v719_v6  ;;  %v671_v5 = vld [vmem:[%s9068_s30 + $0x230] sm:$0xff] }
 0x1aa   : > { %3689 = vmatprep.subr.bf16.mxu1 %v7101_v23  ;;  %v7180_v23 = vcombine.low %v843_v7, %v847_v8  ;;  %v795_v6 = vld [vmem:[%s9068_s30 + $0x610] sm:$0xff] }
 0x1ab   : > { %3649 = vmatpush1.bf16.msra.mxu0 %v6972_v27  ;;  %v703_v27 = vld [vmem:[%s9068_s30 + $0x330] sm:$0xff] }
 0x1ac   : > { %3650 = vmatprep.subr.bf16.mxu0 %v6965_v30  ;;  %v827_v30 = vld [vmem:[%s9068_s30 + $0x710] sm:$0xff]  ;;  %v7036_v22 = vcombine.low %v699_v26, %v703_v27 }
 0x1ad   : > { %3690 = vmatpush1.bf16.msra.mxu1 %v7100_v28  ;;  %v799_v7 = vld [vmem:[%s9068_s30 + $0x630] sm:$0xff] }
 0x1ae   : > { %3691 = vmatprep.subr.bf16.mxu1 %v7093_v31  ;;  %v831_v31 = vld [vmem:[%s9068_s30 + $0x730] sm:$0xff] }
 0x1af   : > { %3651 = vmatpush1.bf16.msra.mxu0 %v6964_v38  ;;  %v7037_v38 = vcombine.high %v699_v26, %v703_v27  ;;  %v919_v13 = vld [vmem:[%s9068_s30 + $0x9f0] sm:$0xff] }
 0x1b0   : > { %3652 = vmatprep.subr.bf16.mxu0 %v6957_v40  ;;  %v7165_v40 = vcombine.high %v827_v30, %v831_v31  ;;  %v1043_v14 = vld [vmem:[%s9068_s30 + $0xdd0] sm:$0xff] }
 0x1b1   : > { %3692 = vmatpush1.bf16.msra.mxu1 %v7092_v39  ;;  %v1047_v29 = vld [vmem:[%s9068_s30 + $0xdf0] sm:$0xff] }
 0x1b2   : > { %3693 = vmatprep.subr.bf16.mxu1 %v7085_v41  ;;  %v691_v41 = vld [vmem:[%s9068_s30 + $0x2d0] sm:$0xff] }
 0x1b3   : > { %3653 = vmatpush1.bf16.msra.mxu0 %v6956_v45  ;;  %v7164_v45 = vcombine.low %v827_v30, %v831_v31  ;;  %v7028_v52 = vcombine.low %v691_v41, %v695_v42  ;;  %v911_v26 = vld [vmem:[%s9068_s30 + $0x9b0] sm:$0xff]  ;;  %v7380_v31 = vcombine.low %v1043_v14, %v1047_v29 }
 0x1b4   : > { %3654 = vmatprep.subr.bf16.mxu0 %v6949_v47  ;;  %v7157_v47 = vcombine.high %v819_v43, %v823_v44  ;;  %v1035_v27 = vld [vmem:[%s9068_s30 + $0xd90] sm:$0xff] }
 0x1b5   : > { %3694 = vmatpush1.bf16.msra.mxu1 %v7084_v46  ;;  %v7029_v46 = vcombine.high %v691_v41, %v695_v42 }
 0x1b6   : > { %3695 = vmatprep.subr.bf16.mxu1 %v7077_v48  ;;  %v683_v48 = vld [vmem:[%s9068_s30 + $0x290] sm:$0xff] }
 0x1b7   : > { %3655 = vmatpush1.bf16.msra.mxu0 %v6948_v53  ;;  %v7156_v53 = vcombine.low %v819_v43, %v823_v44  ;;  %v7020_v0 = vcombine.low %v683_v48, %v687_v49 }
 0x1b8   : > { %3656 = vmatprep.subr.bf16.mxu0 %v6941_v57  ;;  %v7149_v57 = vcombine.high %v811_v50, %v815_v51 }
 0x1b9   : > { %3696 = vmatpush1.bf16.msra.mxu1 %v7076_v56  ;;  %v7021_v56 = vcombine.high %v683_v48, %v687_v49  ;;  %v1023_v48 = vld [vmem:[%s9068_s30 + $0xd30] sm:$0xff] }
 0x1ba   : > { %3697 = vmatprep.subr.bf16.mxu1 %v7069_v58  ;;  %v675_v58 = vld [vmem:[%s9068_s30 + $0x250] sm:$0xff] }
 0x1bb   : > { %3657 = vmatpush1.bf16.msra.mxu0 %v6940_v1  ;;  %v7148_v1 = vcombine.low %v811_v50, %v815_v51  ;;  %v7012_v8 = vcombine.low %v675_v58, %v679_v61 }
 0x1bc   : > { %3658 = vmatprep.subr.bf16.mxu0 %v7061_v3  ;;  %v7141_v3 = vcombine.high %v803_v62, %v807_v63 }
 0x1bd   : > { %3698 = vmatpush1.bf16.msra.mxu1 %v7068_v2  ;;  %v7013_v2 = vcombine.high %v675_v58, %v679_v61  ;;  %v887_v58 = vld [vmem:[%s9068_s30 + $0x8f0] sm:$0xff] }
 0x1be   : > { %3699 = vmatprep.subr.bf16.mxu1 %v7189_v4  ;;  %v9421_v15 = vpop.f32.mrf.mxu0  ;;  %v667_v4 = vld [vmem:[%s9068_s30 + $0x210] sm:$0xff] }
 0x1bf   : > { %3659 = vmatpush2.bf16.msra.mxu0 %v7060_v9  ;;  %v7140_v9 = vcombine.low %v803_v62, %v807_v63  ;;  %v7004_v16 = vcombine.low %v667_v4, %v671_v5  ;;  %v1011_v61 = vld [vmem:[%s9068_s30 + $0xcd0] sm:$0xff] }
 0x1c0   : > { %v9425_v18 = vpop.f32.mrf.mxu1  ;;  %v9427_v21 = vpop.f32.mrf.mxu0  ;;  %3660 = vmatprep.subr.bf16.mxu0 %v7053_v11  ;;  %v7133_v11 = vcombine.high %v795_v6, %v799_v7  ;;  %v1015_v62 = vld [vmem:[%s9068_s30 + $0xcf0] sm:$0xff] }
 0x1c1   : > { %3700 = vmatpush2.bf16.msra.mxu1 %v7188_v10  ;;  %v7005_v10 = vcombine.high %v667_v4, %v671_v5  ;;  %v879_v4 = vld [vmem:[%s9068_s30 + $0x8b0] sm:$0xff] }
 0x1c2   : > { %v9429_v25 = vpop.f32.mrf.mxu1  ;;  %3701 = vmatprep.subr.bf16.mxu1 %v7181_v12  ;;  %v3352_v28 = vpop.f32.mrf.mxu0  ;;  %v915_v12 = vld [vmem:[%s9068_s30 + $0x9d0] sm:$0xff] }
 0x1c3   : > { %3661 = vmatpush2.bf16.msra.mxu0 %v7052_v19  ;;  %v7132_v19 = vcombine.low %v795_v6, %v799_v7  ;;  %v1039_v28 = vld [vmem:[%s9068_s30 + $0xdb0] sm:$0xff]  ;;  %v7252_v30 = vcombine.low %v915_v12, %v919_v13 }
 0x1c4   : > { %v3393_v32 = vpop.f32.mrf.mxu1  ;;  %v3353_v34 = vpop.f32.mrf.mxu0  ;;  %3662 = vmatprep.subr.bf16.mxu0 %v7045_v24  ;;  %v7381_v24 = vcombine.high %v1043_v14, %v1047_v29  ;;  %v7372_v42 = vcombine.low %v1035_v27, %v1039_v28  ;;  %v1003_v5 = vld [vmem:[%s9068_s30 + $0xc90] sm:$0xff] }
 0x1c5   : > { %3702 = vmatpush2.bf16.msra.mxu1 %v7180_v23  ;;  %v7253_v23 = vcombine.high %v915_v12, %v919_v13  ;;  %v899_v34 = vld [vmem:[%s9068_s30 + $0x950] sm:$0xff] }
 0x1c6   : > { %v3394_v39 = vpop.f32.mrf.mxu1  ;;  %3703 = vmatprep.subr.bf16.mxu1 %v7173_v54  ;;  %v907_v54 = vld [vmem:[%s9068_s30 + $0x990] sm:$0xff] }
 0x1c7   : > { %3663 = vmatpush2.bf16.msra.mxu0 %v7044_v33  ;;  %v7245_v32 = vcombine.high %v907_v54, %v911_v26  ;;  %v7373_v33 = vcombine.high %v1035_v27, %v1039_v28  ;;  %v1031_v39 = vld [vmem:[%s9068_s30 + $0xd70] sm:$0xff]  ;;  %v7244_v41 = vcombine.low %v907_v54, %v911_v26 }
 0x1c8   : > { %3664 = vmatprep.subr.bf16.mxu0 %v7037_v38  ;;  %v1027_v38 = vld [vmem:[%s9068_s30 + $0xd50] sm:$0xff] }
 0x1c9   : > { %3704 = vmatpush2.bf16.msra.mxu1 %v7172_v37  ;;  %v903_v37 = vld [vmem:[%s9068_s30 + $0x970] sm:$0xff]  ;;  %v7364_v51 = vcombine.low %v1027_v38, %v1031_v39 }
 0x1ca   : > { %3705 = vmatprep.subr.bf16.mxu1 %v7165_v40  ;;  %v7237_v43 = vcombine.high %v899_v34, %v903_v37  ;;  %v7236_v50 = vcombine.low %v899_v34, %v903_v37  ;;  %v1007_v6 = vld [vmem:[%s9068_s30 + $0xcb0] sm:$0xff]  ;;  %v660_v37 = vld [vmem:[%s9068_s30 + $0x1d8] sm:$0xff] }
 0x1cb   : > { %3665 = vmatpush2.bf16.msra.mxu0 %v7036_v22  ;;  %v7365_v22 = vcombine.high %v1027_v38, %v1031_v39  ;;  %v871_v12 = vld [vmem:[%s9068_s30 + $0x870] sm:$0xff]  ;;  %v664_v38 = vld [vmem:[%s9068_s30 + $0x1f8] sm:$0xff] }
 0x1cc   : > { %3666 = vmatprep.subr.bf16.mxu0 %v7029_v46  ;;  %v895_v46 = vld [vmem:[%s9068_s30 + $0x930] sm:$0xff] }
 0x1cd   : > { %3706 = vmatpush2.bf16.msra.mxu1 %v7164_v45  ;;  %v891_v45 = vld [vmem:[%s9068_s30 + $0x910] sm:$0xff] }
 0x1ce   : > { %3707 = vmatprep.subr.bf16.mxu1 %v7157_v47  ;;  %v1019_v47 = vld [vmem:[%s9068_s30 + $0xd10] sm:$0xff]  ;;  %v7228_v63 = vcombine.low %v891_v45, %v895_v46 }
 0x1cf   : > { %3667 = vmatpush2.bf16.msra.mxu0 %v7028_v52  ;;  %v7229_v52 = vcombine.high %v891_v45, %v895_v46  ;;  %v995_v13 = vld [vmem:[%s9068_s30 + $0xc50] sm:$0xff]  ;;  %v652_v46 = vld [vmem:[%s9068_s30 + $0x198] sm:$0xff] }
 0x1d0   : > { %3668 = vmatprep.subr.bf16.mxu0 %v7021_v56  ;;  %v7357_v56 = vcombine.high %v1019_v47, %v1023_v48  ;;  %v999_v14 = vld [vmem:[%s9068_s30 + $0xc70] sm:$0xff] }
 0x1d1   : > { %3708 = vmatpush2.bf16.msra.mxu1 %v7156_v53  ;;  %v863_v54 = vld [vmem:[%s9068_s30 + $0x830] sm:$0xff] }
 0x1d2   : > { %3709 = vmatprep.subr.bf16.mxu1 %v7149_v57  ;;  %v883_v57 = vld [vmem:[%s9068_s30 + $0x8d0] sm:$0xff] }
 0x1d3   : > { %3669 = vmatpush2.bf16.msra.mxu0 %v7020_v0  ;;  %v7356_v0 = vcombine.low %v1019_v47, %v1023_v48  ;;  %v7220_v7 = vcombine.low %v883_v57, %v887_v58  ;;  %v987_v26 = vld [vmem:[%s9068_s30 + $0xc10] sm:$0xff]  ;;  %v656_v47 = vld [vmem:[%s9068_s30 + $0x1b8] sm:$0xff] }
 0x1d4   : > { %3670 = vmatprep.subr.bf16.mxu0 %v7013_v2  ;;  %v7349_v2 = vcombine.high %v1011_v61, %v1015_v62  ;;  %v991_v27 = vld [vmem:[%s9068_s30 + $0xc30] sm:$0xff] }
 0x1d5   : > { %3710 = vmatpush2.bf16.msra.mxu1 %v7148_v1  ;;  %v7221_v1 = vcombine.high %v883_v57, %v887_v58  ;;  %v983_v34 = vld [vmem:[%s9068_s30 + $0xbf0] sm:$0xff]  ;;  %v644_v58 = vld [vmem:[%s9068_s30 + $0x158] sm:$0xff] }
 0x1d6   : > { %3711 = vmatprep.subr.bf16.mxu1 %v7141_v3  ;;  %v875_v3 = vld [vmem:[%s9068_s30 + $0x890] sm:$0xff] }
 0x1d7   : > { %3671 = vmatpush2.bf16.msra.mxu0 %v7012_v8  ;;  %v7348_v8 = vcombine.low %v1011_v61, %v1015_v62  ;;  %v7212_v29 = vcombine.low %v875_v3, %v879_v4  ;;  %v975_v45 = vld [vmem:[%s9068_s30 + $0xbb0] sm:$0xff]  ;;  %v648_v61 = vld [vmem:[%s9068_s30 + $0x178] sm:$0xff]  ;;  %v3392_v62 = vadd.f32 %v9429_v25, %v9427_v21 }
 0x1d8   : > { %3672 = vmatprep.subr.bf16.mxu0 %v7005_v10  ;;  %v7341_v10 = vcombine.high %v1003_v5, %v1007_v6  ;;  %v6983_v25 = vcombine.high %v644_v58, %v648_v61 }
 0x1d9   : > { %3712 = vmatpush2.bf16.msra.mxu1 %v7140_v9  ;;  %v7213_v9 = vcombine.high %v875_v3, %v879_v4 }
 0x1da   : > { %3713 = vmatprep.subr.bf16.mxu1 %v7133_v11  ;;  %v867_v11 = vld [vmem:[%s9068_s30 + $0x850] sm:$0xff] }
 0x1db   : > { %3673 = vmatpush2.bf16.msra.mxu0 %v7004_v16  ;;  %v7340_v16 = vcombine.low %v1003_v5, %v1007_v6  ;;  %v7204_v28 = vcombine.low %v867_v11, %v871_v12  ;;  %v955_v5 = vld [vmem:[%s9068_s30 + $0xb10] sm:$0xff] }
 0x1dc   : > { %3724 = vmatprep.subr.bf16.mxu0 %v7253_v23  ;;  %v7333_v23 = vcombine.high %v995_v13, %v999_v14  ;;  %v959_v6 = vld [vmem:[%s9068_s30 + $0xb30] sm:$0xff] }
 0x1dd   : > { %3714 = vmatpush2.bf16.msra.mxu1 %v7132_v19  ;;  %v7205_v19 = vcombine.high %v867_v11, %v871_v12 }
 0x1de   : > { %3765 = vmatprep.subr.bf16.mxu1 %v7381_v24  ;;  %3675 = vmatmul.mubr.bf16.vlgmr.msra.gmra.mxu0 %v9189_v17  ;;  %v859_v24 = vld [vmem:[%s9068_s30 + $0x810] sm:$0xff] }
 0x1df   : > { %3725 = vmatpush1.bf16.msra.mxu0 %v7252_v30  ;;  %3756 = vmatprep.mubr.bf16.mxu0 %v9207_v55  ;;  %v7332_v30 = vcombine.low %v995_v13, %v999_v14  ;;  %v7196_v39 = vcombine.low %v859_v24, %v863_v54  ;;  %v6982_v14 = vcombine.low %v644_v58, %v648_v61  ;;  %v788_v61 = vld [vmem:[%s9068_s30 + $0x5d8] sm:$0xff] }
 0x1e0   : > { %v9464_v40 = vpop.f32.mrf.mxu1  ;;  %3716 = vmatmul.mubr.bf16.vlgmr.msra.gmra.mxu1 %v9195_v20  ;;  %3726 = vmatprep.subr.bf16.mxu0 %v7245_v32  ;;  %v7325_v32 = vcombine.high %v987_v26, %v991_v27 }
 0x1e1   : > { %3766 = vmatpush1.bf16.msra.mxu1 %v7380_v31  ;;  %3797 = vmatprep.mubr.bf16.mxu1 %v8843_v35  ;;  %v7197_v31 = vcombine.high %v859_v24, %v863_v54  ;;  %v628_v24 = vld [vmem:[%s9068_s30 + $0xd8] sm:$0xff] }
 0x1e2   : > { %v9467_v44 = vpop.f32.mrf.mxu1  ;;  %3767 = vmatprep.subr.bf16.mxu1 %v7373_v33  ;;  %v979_v33 = vld [vmem:[%s9068_s30 + $0xbd0] sm:$0xff]  ;;  %v632_v54 = vld [vmem:[%s9068_s30 + $0xf8] sm:$0xff] }
 0x1e3   : > { %3727 = vmatpush1.bf16.msra.mxu0 %v7244_v41  ;;  %v7324_v41 = vcombine.low %v987_v26, %v991_v27  ;;  %v7316_v48 = vcombine.low %v979_v33, %v983_v34 }
 0x1e4   : > { %v3475_v49 = vpop.f32.mrf.mxu1  ;;  %3728 = vmatprep.subr.bf16.mxu0 %v7237_v43  ;;  %v6999_v43 = vcombine.high %v660_v37, %v664_v38 }
 0x1e5   : > { %3768 = vmatpush1.bf16.msra.mxu1 %v7372_v42  ;;  %v7317_v42 = vcombine.high %v979_v33, %v983_v34  ;;  %v6998_v49 = vcombine.low %v660_v37, %v664_v38  ;;  %v624_v33 = vld [vmem:[%s9068_s30 + $0xb8] sm:$0xff]  ;;  %v6966_v37 = vcombine.low %v628_v24, %v632_v54 }
 0x1e6   : > { %v3476_v53 = vpop.f32.mrf.mxu1  ;;  %3769 = vmatprep.subr.bf16.mxu1 %v7365_v22  ;;  %v971_v22 = vld [vmem:[%s9068_s30 + $0xb90] sm:$0xff] }
 0x1e7   : > { %3729 = vmatpush1.bf16.msra.mxu0 %v7236_v50  ;;  %v7309_v50 = vcombine.high %v971_v22, %v975_v45  ;;  %v963_v53 = vld [vmem:[%s9068_s30 + $0xb50] sm:$0xff] }
 0x1e8   : > { %3730 = vmatprep.subr.bf16.mxu0 %v7229_v52  ;;  %v6991_v52 = vcombine.high %v652_v46, %v656_v47 }
 0x1e9   : > { %3770 = vmatpush1.bf16.msra.mxu1 %v7364_v51  ;;  %v3390_v51 = vadd.f32 %v9425_v18, %v9421_v15  ;;  %v589_v15 = vld [vmem:[#allocation2 + $0x30] sm:$0xff] }
 0x1ea   : > { %3771 = vmatprep.subr.bf16.mxu1 %v7357_v56  ;;  %v967_v56 = vld [vmem:[%s9068_s30 + $0xb70] sm:$0xff] }
 0x1eb   : > { %3731 = vmatpush1.bf16.msra.mxu0 %v7228_v63  ;;  %v7301_v3 = vcombine.high %v963_v53, %v967_v56 }
 0x1ec   : > { %3732 = vmatprep.subr.bf16.mxu0 %v7221_v1  ;;  %v7308_v1 = vcombine.low %v971_v22, %v975_v45  ;;  %v616_v22 = vld [vmem:[%s9068_s30 + $0x78] sm:$0xff] }
 0x1ed   : > { %3772 = vmatpush1.bf16.msra.mxu1 %v7356_v0  ;;  %v9508_v0 = vld [vmem:[%s9098_s2 + $0x18] ss:$0 sps:$4 sm:$0xff]  }
 0x1ee   : > { %3773 = vmatprep.subr.bf16.mxu1 %v7349_v2  ;;  %v6990_v2 = vcombine.low %v652_v46, %v656_v47 }
 0x1ef   : > { %3733 = vmatpush1.bf16.msra.mxu0 %v7220_v7  ;;  %v590_v7 = vld [vmem:[#allocation2] sm:$0xff] }
 0x1f0   : > { %3734 = vmatprep.subr.bf16.mxu0 %v7213_v9  ;;  %v636_v9 = vld [vmem:[%s9068_s30 + $0x118] sm:$0xff] }
 0x1f1   : > { %3774 = vmatpush1.bf16.msra.mxu1 %v7348_v8 }
 0x1f2   : > { %3775 = vmatprep.subr.bf16.mxu1 %v7341_v10  ;;  %v640_v10 = vld [vmem:[%s9068_s30 + $0x138] sm:$0xff] }
 0x1f3   : > { %3735 = vmatpush1.bf16.msra.mxu0 %v7212_v29  ;;  %v7293_v29 = vcombine.high %v955_v5, %v959_v6  ;;  %v6974_v26 = vcombine.low %v636_v9, %v640_v10 }
 0x1f4   : > { %3736 = vmatprep.subr.bf16.mxu0 %v7205_v19  ;;  %v947_v19 = vld [vmem:[%s9068_s30 + $0xad0] sm:$0xff] }
 0x1f5   : > { %3776 = vmatpush1.bf16.msra.mxu1 %v7340_v16  ;;  %v6975_v16 = vcombine.high %v636_v9, %v640_v10  ;;  %v772_v10 = vld [vmem:[%s9068_s30 + $0x558] sm:$0xff] }
 0x1f6   : > { %3777 = vmatprep.subr.bf16.mxu1 %v7333_v23  ;;  %v951_v23 = vld [vmem:[%s9068_s30 + $0xaf0] sm:$0xff] }
 0x1f7   : > { %3737 = vmatpush1.bf16.msra.mxu0 %v7204_v28  ;;  %v7285_v27 = vcombine.high %v947_v19, %v951_v23  ;;  %v6967_v28 = vcombine.high %v628_v24, %v632_v54  ;;  %v7284_v34 = vcombine.low %v947_v19, %v951_v23  ;;  %v764_v23 = vld [vmem:[%s9068_s30 + $0x518] sm:$0xff] }
 0x1f8   : > { %3738 = vmatprep.subr.bf16.mxu0 %v7197_v31  ;;  %v943_v31 = vld [vmem:[%s9068_s30 + $0xab0] sm:$0xff]  ;;  %v768_v24 = vld [vmem:[%s9068_s30 + $0x538] sm:$0xff] }
 0x1f9   : > { %3778 = vmatpush1.bf16.msra.mxu1 %v7332_v30  ;;  %v939_v30 = vld [vmem:[%s9068_s30 + $0xa90] sm:$0xff]  ;;  %v700_v54 = vld [vmem:[%s9068_s30 + $0x318] sm:$0xff] }
 0x1fa   : > { %3779 = vmatprep.subr.bf16.mxu1 %v7325_v32  ;;  %v620_v32 = vld [vmem:[%s9068_s30 + $0x98] sm:$0xff]  ;;  %v7277_v38 = vcombine.high %v939_v30, %v943_v31  ;;  %v7276_v45 = vcombine.low %v939_v30, %v943_v31 }
 0x1fb   : > { %3739 = vmatpush1.bf16.msra.mxu0 %v7196_v39  ;;  %v6959_v39 = vcombine.high %v620_v32, %v624_v33  ;;  %v6958_v46 = vcombine.low %v620_v32, %v624_v33  ;;  %v756_v32 = vld [vmem:[%s9068_s30 + $0x4d8] sm:$0xff] }
 0x1fc   : > { %3740 = vmatprep.subr.bf16.mxu0 %v7317_v42  ;;  %v935_v42 = vld [vmem:[%s9068_s30 + $0xa70] sm:$0xff]  ;;  %v760_v33 = vld [vmem:[%s9068_s30 + $0x4f8] sm:$0xff] }
 0x1fd   : > { %3780 = vmatpush1.bf16.msra.mxu1 %v7324_v41  ;;  %v931_v41 = vld [vmem:[%s9068_s30 + $0xa50] sm:$0xff] }
 0x1fe   : > { %3806 = vmatprep.subr.bf16.mxu1 %v6999_v43  ;;  %v3430_v57 = vpop.f32.mrf.mxu0  ;;  %v612_v43 = vld [vmem:[%s9068_s30 + $0x58] sm:$0xff]  ;;  %v7269_v47 = vcombine.high %v931_v41, %v935_v42 }
 0x1ff   : > { %v3431_v63 = vadd.f32 %v3430_v57, %v3390_v51  ;;  %3741 = vmatpush2.bf16.msra.mxu0 %v7316_v48  ;;  %v6951_v48 = vcombine.high %v612_v43, %v616_v22  ;;  %v604_v51 = vld [vmem:[%s9068_s30 + $0x18] sm:$0xff] }
 0x200   : > { %3798 = vmatmul.mubr.bf16.vlgmr.msra.gmra.mxu1 %v9508_v0  ;;  %v3432_v18 = vpop.f32.mrf.mxu0  ;;  %3742 = vmatprep.subr.bf16.mxu0 %v7309_v50  ;;  %v927_v50 = vld [vmem:[%s9068_s30 + $0xa30] sm:$0xff] }
 0x201   : > { %3807 = vmatpush1.bf16.msra.mxu1 %v6998_v49  ;;  %v3472_v4 = vadd.f32 %v9464_v40, %v3431_v63  ;;  %v3433_v21 = vadd.f32 %v3432_v18, %v3392_v62  ;;  %3838 = vmatprep.mubr.bf16.mxu1 %v9139_v59  ;;  %v7300_v40 = vcombine.low %v963_v53, %v967_v56  ;;  %v923_v49 = vld [vmem:[%s9068_s30 + $0xa10] sm:$0xff]  ;;  %v792_v62 = vld [vmem:[%s9068_s30 + $0x5f8] sm:$0xff] }
 0x202   : > { %3808 = vmatprep.subr.bf16.mxu1 %v6991_v52  ;;  %v3434_v8 = vpop.f32.mrf.mxu0  ;;  %v608_v52 = vld [vmem:[%s9068_s30 + $0x38] sm:$0xff]  ;;  %v7268_v53 = vcombine.low %v931_v41, %v935_v42  ;;  %v6950_v56 = vcombine.low %v612_v43, %v616_v22  ;;  %v7261_v57 = vcombine.high %v923_v49, %v927_v50  ;;  %v7095_v41 = vcombine.high %v756_v32, %v760_v33 }
 0x203   : > { %v3970_v11 = vadd.f32 %v3472_v4, %v589_v15  ;;  %v3474_v12 = vadd.f32 %v9467_v44, %v3433_v21  ;;  %3743 = vmatpush2.bf16.msra.mxu0 %v7308_v1  ;;  %v7292_v44 = vcombine.low %v955_v5, %v959_v6  ;;  %v6943_v58 = vcombine.high %v604_v51, %v608_v52  ;;  %v724_v63 = vld [vmem:[%s9068_s30 + $0x3d8] sm:$0xff] }
 0x204   : > { %v3435_v13 = vpop.f32.mrf.mxu0  ;;  %3744 = vmatprep.subr.bf16.mxu0 %v7301_v3  ;;  %v728_v1 = vld [vmem:[%s9068_s30 + $0x3f8] sm:$0xff]  ;;  %v7260_v15 = vcombine.low %v923_v49, %v927_v50  ;;  %v6942_v18 = vcombine.low %v604_v51, %v608_v52  ;;  %v7126_v6 = vcombine.low %v788_v61, %v792_v62 }
 0x205   : > { %3809 = vmatpush1.bf16.msra.mxu1 %v6990_v2  ;;  %3978 = vst [vmem:[#allocation2 + $0x30] sm:$0xff] %v3970_v11  ;;  %v3971_v59 = vadd.f32 %v3474_v12, %v590_v7  ;;  %v7127_v2 = vcombine.high %v788_v61, %v792_v62  ;;  %v7063_v3 = vcombine.high %v724_v63, %v728_v1  ;;  %v780_v4 = vld [vmem:[%s9068_s30 + $0x598] sm:$0xff] }
 0x206   : > { %3810 = vmatprep.subr.bf16.mxu1 %v6983_v25  ;;  %v784_v21 = vld [vmem:[%s9068_s30 + $0x5b8] sm:$0xff]  ;;  %v7062_v7 = vcombine.low %v724_v63, %v728_v1 }
 0x207   : > { %3979 = vst [vmem:[#allocation2] sm:$0xff] %v3971_v59  ;;  %3745 = vmatpush2.bf16.msra.mxu0 %v7300_v40  ;;  %v716_v25 = vld [vmem:[%s9068_s30 + $0x398] sm:$0xff]  ;;  %v7119_v8 = vcombine.high %v780_v4, %v784_v21 }
 0x208   : > { %3746 = vmatprep.subr.bf16.mxu0 %v7293_v29  ;;  %v720_v5 = vld [vmem:[%s9068_s30 + $0x3b8] sm:$0xff] }
 0x209   : > { %3811 = vmatpush1.bf16.msra.mxu1 %v6982_v14  ;;  %v7055_v9 = vcombine.high %v716_v25, %v720_v5  ;;  %v776_v11 = vld [vmem:[%s9068_s30 + $0x578] sm:$0xff]  ;;  %v7118_v14 = vcombine.low %v780_v4, %v784_v21  ;;  %v7054_v29 = vcombine.low %v716_v25, %v720_v5 }
 0x20a   : > { %3812 = vmatprep.subr.bf16.mxu1 %v6975_v16  ;;  %v708_v12 = vld [vmem:[%s9068_s30 + $0x358] sm:$0xff]  ;;  %v7111_v59 = vcombine.high %v772_v10, %v776_v11 }
 0x20b   : > { %3747 = vmatpush2.bf16.msra.mxu0 %v7292_v44  ;;  %v712_v40 = vld [vmem:[%s9068_s30 + $0x378] sm:$0xff] }
 0x20c   : > { %3748 = vmatprep.subr.bf16.mxu0 %v7285_v27  ;;  %v7047_v19 = vcombine.high %v708_v12, %v712_v40  ;;  %v704_v44 = vld [vmem:[%s9068_s30 + $0x338] sm:$0xff]  ;;  %v7110_v27 = vcombine.low %v772_v10, %v776_v11 }
 0x20d   : > { %3813 = vmatpush1.bf16.msra.mxu1 %v6974_v26  ;;  %v7039_v31 = vcombine.high %v700_v54, %v704_v44  ;;  %v748_v43 = vld [vmem:[%s9068_s30 + $0x498] sm:$0xff] }
 0x20e   : > { %3814 = vmatprep.subr.bf16.mxu1 %v6967_v28  ;;  %v7103_v28 = vcombine.high %v764_v23, %v768_v24  ;;  %v752_v22 = vld [vmem:[%s9068_s30 + $0x4b8] sm:$0xff] }
 0x20f   : > { %3749 = vmatpush2.bf16.msra.mxu0 %v7284_v34  ;;  %v692_v34 = vld [vmem:[%s9068_s30 + $0x2d8] sm:$0xff]  ;;  %v7087_v49 = vcombine.high %v748_v43, %v752_v22 }
 0x210   : > { %3750 = vmatprep.subr.bf16.mxu0 %v7277_v38  ;;  %v7102_v38 = vcombine.low %v764_v23, %v768_v24  ;;  %v740_v51 = vld [vmem:[%s9068_s30 + $0x458] sm:$0xff] }
 0x211   : > { %3815 = vmatpush1.bf16.msra.mxu1 %v6966_v37  ;;  %v696_v37 = vld [vmem:[%s9068_s30 + $0x2f8] sm:$0xff] }
 0x212   : > { %3816 = vmatprep.subr.bf16.mxu1 %v6959_v39  ;;  %v7038_v39 = vcombine.low %v700_v54, %v704_v44  ;;  %v7031_v42 = vcombine.high %v692_v34, %v696_v37  ;;  %v744_v52 = vld [vmem:[%s9068_s30 + $0x478] sm:$0xff] }
 0x213   : > { %3751 = vmatpush2.bf16.msra.mxu0 %v7276_v45  ;;  %v684_v45 = vld [vmem:[%s9068_s30 + $0x298] sm:$0xff]  ;;  %v7079_v61 = vcombine.high %v740_v51, %v744_v52 }
 0x214   : > { %3752 = vmatprep.subr.bf16.mxu0 %v7269_v47  ;;  %v7094_v47 = vcombine.low %v756_v32, %v760_v33  ;;  %v732_v63 = vld [vmem:[%s9068_s30 + $0x418] sm:$0xff] }
 0x215   : > { %3817 = vmatpush1.bf16.msra.mxu1 %v6958_v46  ;;  %v688_v46 = vld [vmem:[%s9068_s30 + $0x2b8] sm:$0xff] }
 0x216   : > { %3818 = vmatprep.subr.bf16.mxu1 %v6951_v48  ;;  %v7030_v48 = vcombine.low %v692_v34, %v696_v37  ;;  %v7023_v50 = vcombine.high %v684_v45, %v688_v46  ;;  %v736_v1 = vld [vmem:[%s9068_s30 + $0x438] sm:$0xff] }
 0x217   : > { %3753 = vmatpush2.bf16.msra.mxu0 %v7268_v53  ;;  %v676_v53 = vld [vmem:[%s9068_s30 + $0x258] sm:$0xff]  ;;  %v7071_v4 = vcombine.high %v732_v63, %v736_v1 }
 0x218   : > { %3754 = vmatprep.subr.bf16.mxu0 %v7261_v57  ;;  %v7086_v57 = vcombine.low %v748_v43, %v752_v22  ;;  %v852_v25 = vld [vmem:[%s9068_s30 + $0x7d8] sm:$0xff] }
 0x219   : > { %3819 = vmatpush1.bf16.msra.mxu1 %v6950_v56  ;;  %v680_v56 = vld [vmem:[%s9068_s30 + $0x278] sm:$0xff] }
 0x21a   : > { %3820 = vmatprep.subr.bf16.mxu1 %v6943_v58  ;;  %v7022_v58 = vcombine.low %v684_v45, %v688_v46  ;;  %v7015_v62 = vcombine.high %v676_v53, %v680_v56  ;;  %v856_v5 = vld [vmem:[%s9068_s30 + $0x7f8] sm:$0xff] }
 0x21b   : > { %3755 = vmatpush2.bf16.msra.mxu0 %v7260_v15  ;;  %v668_v15 = vld [vmem:[%s9068_s30 + $0x218] sm:$0xff]  ;;  %v7191_v10 = vcombine.high %v852_v25, %v856_v5 }
 0x21c   : > { %3847 = vmatprep.subr.bf16.mxu0 %v7127_v2  ;;  %v7078_v2 = vcombine.low %v740_v51, %v744_v52  ;;  %v836_v54 = vld [vmem:[%s9068_s30 + $0x758] sm:$0xff] }
 0x21d   : > { %3821 = vmatpush1.bf16.msra.mxu1 %v6942_v18  ;;  %v672_v18 = vld [vmem:[%s9068_s30 + $0x238] sm:$0xff] }
 0x21e   : > { %3822 = vmatprep.subr.bf16.mxu1 %v7063_v3  ;;  %3757 = vmatmul.mubr.bf16.vlgmr.msra.gmra.mxu0 %v9277_v36  ;;  %v7014_v3 = vcombine.low %v676_v53, %v680_v56  ;;  %v7007_v21 = vcombine.high %v668_v15, %v672_v18  ;;  %v840_v44 = vld [vmem:[%s9068_s30 + $0x778] sm:$0xff] }
 0x21f   : > { %3848 = vmatpush1.bf16.msra.mxu0 %v7126_v6  ;;  %3879 = vmatprep.mubr.bf16.mxu0 %v9143_v60  ;;  %v7046_v60 = vcombine.low %v708_v12, %v712_v40  ;;  %v916_v6 = vld [vmem:[%s9068_s30 + $0x9d8] sm:$0xff]  ;;  %v7175_v32 = vcombine.high %v836_v54, %v840_v44 }
 0x220   : > { %v9547_v13 = vpop.f32.mrf.mxu1  ;;  %3849 = vmatprep.subr.bf16.mxu0 %v7119_v8  ;;  %v7070_v8 = vcombine.low %v732_v63, %v736_v1  ;;  %v844_v12 = vld [vmem:[%s9068_s30 + $0x798] sm:$0xff] }
 0x221   : > { %3823 = vmatpush2.bf16.msra.mxu1 %v7062_v7  ;;  %v920_v7 = vld [vmem:[%s9068_s30 + $0x9f8] sm:$0xff] }
 0x222   : > { %v9550_v16 = vpop.f32.mrf.mxu1  ;;  %3824 = vmatprep.subr.bf16.mxu1 %v7055_v9  ;;  %v7006_v9 = vcombine.low %v668_v15, %v672_v18  ;;  %v7255_v11 = vcombine.high %v916_v6, %v920_v7  ;;  %v848_v40 = vld [vmem:[%s9068_s30 + $0x7b8] sm:$0xff] }
 0x223   : > { %3850 = vmatpush1.bf16.msra.mxu0 %v7118_v14  ;;  %v908_v14 = vld [vmem:[%s9068_s30 + $0x998] sm:$0xff]  ;;  %v7183_v23 = vcombine.high %v844_v12, %v848_v40 }
 0x224   : > { %v3516_v26 = vpop.f32.mrf.mxu1  ;;  %3851 = vmatprep.subr.bf16.mxu0 %v7111_v59  ;;  %v7190_v59 = vcombine.low %v852_v25, %v856_v5  ;;  %v828_v34 = vld [vmem:[%s9068_s30 + $0x718] sm:$0xff] }
 0x225   : > { %3825 = vmatpush2.bf16.msra.mxu1 %v7054_v29  ;;  %v912_v29 = vld [vmem:[%s9068_s30 + $0x9b8] sm:$0xff] }
 0x226   : > { %v3517_v30 = vpop.f32.mrf.mxu1  ;;  %3826 = vmatprep.subr.bf16.mxu1 %v7047_v19  ;;  %v7254_v19 = vcombine.low %v916_v6, %v920_v7  ;;  %v7247_v24 = vcombine.high %v908_v14, %v912_v29  ;;  %v832_v37 = vld [vmem:[%s9068_s30 + $0x738] sm:$0xff] }
 0x227   : > { %3852 = vmatpush1.bf16.msra.mxu0 %v7110_v27  ;;  %v900_v27 = vld [vmem:[%s9068_s30 + $0x958] sm:$0xff]  ;;  %v7167_v22 = vcombine.high %v828_v34, %v832_v37 }
 0x228   : > { %3853 = vmatprep.subr.bf16.mxu0 %v7103_v28  ;;  %v7182_v28 = vcombine.low %v844_v12, %v848_v40  ;;  %v820_v46 = vld [vmem:[%s9068_s30 + $0x6d8] sm:$0xff] }
 0x229   : > { %3827 = vmatpush2.bf16.msra.mxu1 %v7046_v60  ;;  %v904_v60 = vld [vmem:[%s9068_s30 + $0x978] sm:$0xff] }
 0x22a   : > { %3828 = vmatprep.subr.bf16.mxu1 %v7039_v31  ;;  %v7246_v31 = vcombine.low %v908_v14, %v912_v29  ;;  %v7239_v33 = vcombine.high %v900_v27, %v904_v60  ;;  %v7238_v43 = vcombine.low %v900_v27, %v904_v60  ;;  %v812_v53 = vld [vmem:[%s9068_s30 + $0x698] sm:$0xff] }
 0x22b   : > { %3854 = vmatpush1.bf16.msra.mxu0 %v7102_v38  ;;  %v816_v56 = vld [vmem:[%s9068_s30 + $0x6b8] sm:$0xff] }
 0x22c   : > { %3855 = vmatprep.subr.bf16.mxu0 %v7095_v41  ;;  %v7174_v41 = vcombine.low %v836_v54, %v840_v44  ;;  %v7151_v63 = vcombine.high %v812_v53, %v816_v56  ;;  %v804_v15 = vld [vmem:[%s9068_s30 + $0x658] sm:$0xff] }
 0x22d   : > { %3829 = vmatpush2.bf16.msra.mxu1 %v7038_v39  ;;  %v896_v39 = vld [vmem:[%s9068_s30 + $0x938] sm:$0xff] }
 0x22e   : > { %3830 = vmatprep.subr.bf16.mxu1 %v7031_v42  ;;  %v808_v18 = vld [vmem:[%s9068_s30 + $0x678] sm:$0xff] }
 0x22f   : > { %3856 = vmatpush1.bf16.msra.mxu0 %v7094_v47  ;;  %v824_v47 = vld [vmem:[%s9068_s30 + $0x6f8] sm:$0xff]  ;;  %v7143_v25 = vcombine.high %v804_v15, %v808_v18 }
 0x230   : > { %3857 = vmatprep.subr.bf16.mxu0 %v7087_v49  ;;  %v7166_v49 = vcombine.low %v828_v34, %v832_v37  ;;  %v7159_v51 = vcombine.high %v820_v46, %v824_v47  ;;  %v796_v6 = vld [vmem:[%s9068_s30 + $0x618] sm:$0xff] }
 0x231   : > { %3831 = vmatpush2.bf16.msra.mxu1 %v7030_v48  ;;  %v888_v48 = vld [vmem:[%s9068_s30 + $0x8f8] sm:$0xff] }
 0x232   : > { %3832 = vmatprep.subr.bf16.mxu1 %v7023_v50  ;;  %v800_v7 = vld [vmem:[%s9068_s30 + $0x638] sm:$0xff] }
 0x233   : > { %3858 = vmatpush1.bf16.msra.mxu0 %v7086_v57  ;;  %v876_v57 = vld [vmem:[%s9068_s30 + $0x898] sm:$0xff]  ;;  %v7135_v12 = vcombine.high %v796_v6, %v800_v7 }
 0x234   : > { %3859 = vmatprep.subr.bf16.mxu0 %v7079_v61  ;;  %v7158_v61 = vcombine.low %v820_v46, %v824_v47  ;;  %v1044_v14 = vld [vmem:[%s9068_s30 + $0xdd8] sm:$0xff] }
 0x235   : > { %3833 = vmatpush2.bf16.msra.mxu1 %v7022_v58  ;;  %v880_v58 = vld [vmem:[%s9068_s30 + $0x8b8] sm:$0xff] }
 0x236   : > { %3834 = vmatprep.subr.bf16.mxu1 %v7015_v62  ;;  %v7215_v1 = vcombine.high %v876_v57, %v880_v58  ;;  %v1048_v29 = vld [vmem:[%s9068_s30 + $0xdf8] sm:$0xff] }
 0x237   : > { %3860 = vmatpush1.bf16.msra.mxu0 %v7078_v2  ;;  %v868_v2 = vld [vmem:[%s9068_s30 + $0x858] sm:$0xff]  ;;  %v7383_v54 = vcombine.high %v1044_v14, %v1048_v29 }
 0x238   : > { %3861 = vmatprep.subr.bf16.mxu0 %v7071_v4  ;;  %v7150_v4 = vcombine.low %v812_v53, %v816_v56  ;;  %v1036_v27 = vld [vmem:[%s9068_s30 + $0xd98] sm:$0xff] }
 0x239   : > { %3835 = vmatpush2.bf16.msra.mxu1 %v7014_v3  ;;  %v872_v3 = vld [vmem:[%s9068_s30 + $0x878] sm:$0xff] }
 0x23a   : > { %3836 = vmatprep.subr.bf16.mxu1 %v7007_v21  ;;  %v7214_v21 = vcombine.low %v876_v57, %v880_v58  ;;  %v7207_v5 = vcombine.high %v868_v2, %v872_v3  ;;  %v1040_v60 = vld [vmem:[%s9068_s30 + $0xdb8] sm:$0xff] }
 0x23b   : > { %3862 = vmatpush1.bf16.msra.mxu0 %v7070_v8  ;;  %v860_v8 = vld [vmem:[%s9068_s30 + $0x818] sm:$0xff]  ;;  %v7375_v34 = vcombine.high %v1036_v27, %v1040_v60  ;;  %v7374_v46 = vcombine.low %v1036_v27, %v1040_v60 }
 0x23c   : > { %3863 = vmatprep.subr.bf16.mxu0 %v7191_v10  ;;  %v7142_v10 = vcombine.low %v804_v15, %v808_v18  ;;  %v960_v57 = vld [vmem:[%s9068_s30 + $0xb38] sm:$0xff] }
 0x23d   : > { %3837 = vmatpush2.bf16.msra.mxu1 %v7006_v9  ;;  %v864_v9 = vld [vmem:[%s9068_s30 + $0x838] sm:$0xff] }
 0x23e   : > { %3888 = vmatprep.subr.bf16.mxu1 %v7255_v11  ;;  %v9582_v26 = vpop.f32.mrf.mxu0  ;;  %v7206_v11 = vcombine.low %v868_v2, %v872_v3  ;;  %v7199_v40 = vcombine.high %v860_v8, %v864_v9  ;;  %v1012_v3 = vld [vmem:[%s9068_s30 + $0xcd8] sm:$0xff] }
 0x23f   : > { %3864 = vmatpush2.bf16.msra.mxu0 %v7190_v59  ;;  %v980_v59 = vld [vmem:[%s9068_s30 + $0xbd8] sm:$0xff] }
 0x240   : > { %3839 = vmatmul.mubr.bf16.vlgmr.msra.gmra.mxu1 %v9189_v17  ;;  %v9587_v30 = vpop.f32.mrf.mxu0  ;;  %3865 = vmatprep.subr.bf16.mxu0 %v7183_v23  ;;  %v892_v17 = vld [vmem:[%s9068_s30 + $0x918] sm:$0xff]  ;;  %v7134_v23 = vcombine.low %v796_v6, %v800_v7 }
 0x241   : > { %3889 = vmatpush1.bf16.msra.mxu1 %v7254_v19  ;;  %3920 = vmatprep.mubr.bf16.mxu1 %v9207_v55  ;;  %v7231_v45 = vcombine.high %v892_v17, %v896_v39  ;;  %v884_v55 = vld [vmem:[%s9068_s30 + $0x8d8] sm:$0xff]  ;;  %v7230_v50 = vcombine.low %v892_v17, %v896_v39  ;;  %v3554_v39 = vadd.f32 %v9582_v26, %v9547_v13 }
 0x242   : > { %3890 = vmatprep.subr.bf16.mxu1 %v7247_v24  ;;  %v3557_v38 = vpop.f32.mrf.mxu0  ;;  %v7223_v52 = vcombine.high %v884_v55, %v888_v48  ;;  %v7222_v62 = vcombine.low %v884_v55, %v888_v48  ;;  %v984_v19 = vld [vmem:[%s9068_s30 + $0xbf8] sm:$0xff]  ;;  %v7198_v24 = vcombine.low %v860_v8, %v864_v9  ;;  %v3556_v47 = vadd.f32 %v9587_v30, %v9550_v16  ;;  %v592_v16 = vld [vmem:[#allocation2 + $0x10] sm:$0xff] }
 0x243   : > { %3866 = vmatpush2.bf16.msra.mxu0 %v7182_v28  ;;  %v7319_v44 = vcombine.high %v980_v59, %v984_v19  ;;  %v972_v28 = vld [vmem:[%s9068_s30 + $0xb98] sm:$0xff] }
 0x244   : > { %v3558_v42 = vpop.f32.mrf.mxu0  ;;  %3867 = vmatprep.subr.bf16.mxu0 %v7175_v32  ;;  %v7382_v32 = vcombine.low %v1044_v14, %v1048_v29  ;;  %v1028_v38 = vld [vmem:[%s9068_s30 + $0xd58] sm:$0xff] }
 0x245   : > { %3891 = vmatpush1.bf16.msra.mxu1 %v7246_v31  ;;  %v976_v31 = vld [vmem:[%s9068_s30 + $0xbb8] sm:$0xff] }
 0x246   : > { %3892 = vmatprep.subr.bf16.mxu1 %v7239_v33  ;;  %v7318_v33 = vcombine.low %v980_v59, %v984_v19  ;;  %v7311_v37 = vcombine.high %v972_v28, %v976_v31  ;;  %v1032_v17 = vld [vmem:[%s9068_s30 + $0xd78] sm:$0xff] }
 0x247   : > { %3868 = vmatpush2.bf16.msra.mxu0 %v7174_v41  ;;  %v964_v42 = vld [vmem:[%s9068_s30 + $0xb58] sm:$0xff] }
 0x248   : > { %3869 = vmatprep.subr.bf16.mxu0 %v7167_v22  ;;  %v591_v26 = vld [vmem:[#allocation2 + $0x18] sm:$0xff] }
 0x249   : > { %3893 = vmatpush1.bf16.msra.mxu1 %v7238_v43  ;;  %v968_v43 = vld [vmem:[%s9068_s30 + $0xb78] sm:$0xff] }
 0x24a   : > { %3894 = vmatprep.subr.bf16.mxu1 %v7231_v45  ;;  %v7310_v45 = vcombine.low %v972_v28, %v976_v31  ;;  %v7302_v58 = vcombine.low %v964_v42, %v968_v43 }
 0x24b   : > { %3870 = vmatpush2.bf16.msra.mxu0 %v7166_v49  ;;  %v7303_v49 = vcombine.high %v964_v42, %v968_v43 }
 0x24c   : > { %3871 = vmatprep.subr.bf16.mxu0 %v7159_v51  ;;  %v1024_v51 = vld [vmem:[%s9068_s30 + $0xd38] sm:$0xff] }
 0x24d   : > { %3895 = vmatpush1.bf16.msra.mxu1 %v7230_v50  ;;  %v1020_v50 = vld [vmem:[%s9068_s30 + $0xd18] sm:$0xff] }
 0x24e   : > { %3896 = vmatprep.subr.bf16.mxu1 %v7223_v52  ;;  %v7359_v15 = vcombine.high %v1020_v50, %v1024_v51  ;;  %v7358_v6 = vcombine.low %v1020_v50, %v1024_v51 }
 0x24f   : > { %3872 = vmatpush2.bf16.msra.mxu0 %v7158_v61  ;;  %v7366_v61 = vcombine.low %v1028_v38, %v1032_v17 }
 0x250   : > { %3873 = vmatprep.subr.bf16.mxu0 %v7151_v63 }
 0x251   : > { %3897 = vmatpush1.bf16.msra.mxu1 %v7222_v62 }
 0x252   : > { %3898 = vmatprep.subr.bf16.mxu1 %v7215_v1 }
 0x253   : > { %3874 = vmatpush2.bf16.msra.mxu0 %v7150_v4  ;;  %v1016_v4 = vld [vmem:[%s9068_s30 + $0xcf8] sm:$0xff] }
 0x254   : > { %3875 = vmatprep.subr.bf16.mxu0 %v7143_v25  ;;  %v948_v25 = vld [vmem:[%s9068_s30 + $0xad8] sm:$0xff]  ;;  %v7351_v8 = vcombine.high %v1012_v3, %v1016_v4  ;;  %v7350_v14 = vcombine.low %v1012_v3, %v1016_v4 }
 0x255   : > { %3899 = vmatpush1.bf16.msra.mxu1 %v7214_v21 }
 0x256   : > { %3900 = vmatprep.subr.bf16.mxu1 %v7207_v5  ;;  %v952_v5 = vld [vmem:[%s9068_s30 + $0xaf8] sm:$0xff] }
 0x257   : > { %3876 = vmatpush2.bf16.msra.mxu0 %v7142_v10  ;;  %v7287_v9 = vcombine.high %v948_v25, %v952_v5  ;;  %v1004_v10 = vld [vmem:[%s9068_s30 + $0xc98] sm:$0xff]  ;;  %v7286_v29 = vcombine.low %v948_v25, %v952_v5 }
 0x258   : > { %3877 = vmatprep.subr.bf16.mxu0 %v7135_v12  ;;  %v940_v12 = vld [vmem:[%s9068_s30 + $0xa98] sm:$0xff] }
 0x259   : > { %3901 = vmatpush1.bf16.msra.mxu1 %v7206_v11  ;;  %v1008_v11 = vld [vmem:[%s9068_s30 + $0xcb8] sm:$0xff] }
 0x25a   : > { %3902 = vmatprep.subr.bf16.mxu1 %v7199_v40  ;;  %v944_v40 = vld [vmem:[%s9068_s30 + $0xab8] sm:$0xff]  ;;  %v7343_v59 = vcombine.high %v1004_v10, %v1008_v11  ;;  %v7342_v27 = vcombine.low %v1004_v10, %v1008_v11 }
 0x25b   : > { %3878 = vmatpush2.bf16.msra.mxu0 %v7134_v23  ;;  %v7279_v19 = vcombine.high %v940_v12, %v944_v40  ;;  %v996_v23 = vld [vmem:[%s9068_s30 + $0xc58] sm:$0xff]  ;;  %v7278_v60 = vcombine.low %v940_v12, %v944_v40  ;;  %v595_v12 = vld [vmem:[#allocation2 + $0x28] sm:$0xff] }
 0x25c   : > { %3929 = vmatprep.subr.bf16.mxu0 %v7383_v54  ;;  %v932_v54 = vld [vmem:[%s9068_s30 + $0xa58] sm:$0xff] }
 0x25d   : > { %3903 = vmatpush1.bf16.msra.mxu1 %v7198_v24  ;;  %v1000_v24 = vld [vmem:[%s9068_s30 + $0xc78] sm:$0xff] }
 0x25e   : > { %3904 = vmatprep.subr.bf16.mxu1 %v7319_v44  ;;  %v3635_v41 = vpop.f32.mrf.mxu0  ;;  %3880 = vmatmul.mubr.bf16.vlgmr.msra.gmra.mxu0 %v9195_v20  ;;  %v7367_v20 = vcombine.high %v1028_v38, %v1032_v17  ;;  %v936_v44 = vld [vmem:[%s9068_s30 + $0xa78] sm:$0xff]  ;;  %v7335_v28 = vcombine.high %v996_v23, %v1000_v24  ;;  %v7334_v38 = vcombine.low %v996_v23, %v1000_v24 }
 0x25f   : > { %3930 = vmatpush1.bf16.msra.mxu0 %v7382_v32  ;;  %3961 = vmatprep.mubr.bf16.mxu0 %v8843_v35  ;;  %v956_v35 = vld [vmem:[%s9068_s30 + $0xb18] sm:$0xff]  ;;  %v7271_v31 = vcombine.high %v932_v54, %v936_v44  ;;  %v7270_v17 = vcombine.low %v932_v54, %v936_v44 }
 0x260   : > { %v3594_v22 = vpop.f32.mrf.mxu1  ;;  %v3637_v13 = vpop.f32.mrf.mxu0  ;;  %3931 = vmatprep.subr.bf16.mxu0 %v7375_v34  ;;  %v7295_v2 = vcombine.high %v956_v35, %v960_v57  ;;  %v7294_v7 = vcombine.low %v956_v35, %v960_v57  ;;  %v988_v32 = vld [vmem:[%s9068_s30 + $0xc18] sm:$0xff]  ;;  %v593_v57 = vld [vmem:[#allocation2 + $0x8] sm:$0xff] }
 0x261   : > { %v3595_v55 = vadd.f32 %v3594_v22, %v3554_v39  ;;  %3905 = vmatpush2.bf16.msra.mxu1 %v7318_v33  ;;  %v992_v33 = vld [vmem:[%s9068_s30 + $0xc38] sm:$0xff] }
 0x262   : > { %v3596_v48 = vpop.f32.mrf.mxu1  ;;  %3906 = vmatprep.subr.bf16.mxu1 %v7311_v37  ;;  %v3639_v56 = vpop.f32.mrf.mxu0  ;;  %v924_v34 = vld [vmem:[%s9068_s30 + $0xa18] sm:$0xff]  ;;  %v7327_v39 = vcombine.high %v988_v32, %v992_v33  ;;  %v7326_v42 = vcombine.low %v988_v32, %v992_v33 }
 0x263   : > { %v3636_v52 = vadd.f32 %v3635_v41, %v3595_v55  ;;  %v3597_v53 = vadd.f32 %v3596_v48, %v3556_v47  ;;  %3932 = vmatpush1.bf16.msra.mxu0 %v7374_v46  ;;  %v928_v37 = vld [vmem:[%s9068_s30 + $0xa38] sm:$0xff] }
 0x264   : > { %v3598_v30 = vpop.f32.mrf.mxu1  ;;  %v3640_v1 = vpop.f32.mrf.mxu0  ;;  %3933 = vmatprep.subr.bf16.mxu0 %v7367_v20  ;;  %v7263_v41 = vcombine.high %v924_v34, %v928_v37  ;;  %v7262_v43 = vcombine.low %v924_v34, %v928_v37 }
 0x265   : > { %v3972_v62 = vadd.f32 %v3636_v52, %v591_v26  ;;  %v3638_v63 = vadd.f32 %v3637_v13, %v3597_v53  ;;  %3907 = vmatpush2.bf16.msra.mxu1 %v7310_v45  ;;  %v594_v30 = vld [vmem:[#allocation2 + $0x20] sm:$0xff] }
 0x266   : > { %v3599_v18 = vpop.f32.mrf.mxu1  ;;  %3908 = vmatprep.subr.bf16.mxu1 %v7303_v49 }
 0x267   : > { %3980 = vst [vmem:[#allocation2 + $0x18] sm:$0xff] %v3972_v62  ;;  %v3973_v21 = vadd.f32 %v3638_v63, %v592_v16  ;;  %3934 = vmatpush1.bf16.msra.mxu0 %v7366_v61 }
 0x268   : > { %3935 = vmatprep.subr.bf16.mxu0 %v7359_v15 }
 0x269   : > { %3981 = vst [vmem:[#allocation2 + $0x10] sm:$0xff] %v3973_v21  ;;  %3909 = vmatpush2.bf16.msra.mxu1 %v7302_v58 }
 0x26a   : > { %3910 = vmatprep.subr.bf16.mxu1 %v7295_v2 }
 0x26b   : > { %3936 = vmatpush1.bf16.msra.mxu0 %v7358_v6 }
 0x26c   : > { %3937 = vmatprep.subr.bf16.mxu0 %v7351_v8 }
 0x26d   : > { %3911 = vmatpush2.bf16.msra.mxu1 %v7294_v7 }
 0x26e   : > { %3912 = vmatprep.subr.bf16.mxu1 %v7287_v9 }
 0x26f   : > { %3938 = vmatpush1.bf16.msra.mxu0 %v7350_v14 }
 0x270   : > { %3939 = vmatprep.subr.bf16.mxu0 %v7343_v59 }
 0x271   : > { %3913 = vmatpush2.bf16.msra.mxu1 %v7286_v29 }
 0x272   : > { %3914 = vmatprep.subr.bf16.mxu1 %v7279_v19  ;;  %v596_v19 = vld [vmem:[#allocation2 + $0x38] sm:$0xff] }
 0x273   : > { %3940 = vmatpush1.bf16.msra.mxu0 %v7342_v27 }
 0x274   : > { %3941 = vmatprep.subr.bf16.mxu0 %v7335_v28 }
 0x275   : > { %3915 = vmatpush2.bf16.msra.mxu1 %v7278_v60 }
 0x276   : > { %3916 = vmatprep.subr.bf16.mxu1 %v7271_v31 }
 0x277   : > { %3942 = vmatpush1.bf16.msra.mxu0 %v7334_v38 }
 0x278   : > { %3943 = vmatprep.subr.bf16.mxu0 %v7327_v39 }
 0x279   : > { %3917 = vmatpush2.bf16.msra.mxu1 %v7270_v17 }
 0x27a   : > { %3918 = vmatprep.subr.bf16.mxu1 %v7263_v41 }
 0x27b   : > { %3944 = vmatpush1.bf16.msra.mxu0 %v7326_v42 }
 0x27d   : > { %3919 = vmatpush2.bf16.msra.mxu1 %v7262_v43 }
 0x27e   : > { %3962 = vmatmul.mubr.bf16.vlgmr.msra.gmra.mxu0 %v9508_v0 }
 0x280   : > { %3921 = vmatmul.mubr.bf16.vlgmr.msra.gmra.mxu1 %v9277_v36 }
 0x29e   : > { %v3676_v22 = vpop.f32.mrf.mxu0 }
 0x2a0   : > { %v3717_v45 = vpop.f32.mrf.mxu1  ;;  %v3678_v46 = vpop.f32.mrf.mxu0 }
 0x2a1   : > { %v3718_v52 = vadd.f32 %v3717_v45, %v3676_v22 }
 0x2a2   : > { %v3719_v47 = vpop.f32.mrf.mxu1  ;;  %v3680_v55 = vpop.f32.mrf.mxu0 }
 0x2a3   : > { %v3720_v56 = vadd.f32 %v3719_v47, %v3678_v46 }
 0x2a4   : > { %v3721_v13 = vpop.f32.mrf.mxu1  ;;  %v3681_v20 = vpop.f32.mrf.mxu0 }
 0x2a6   : > { %v3722_v26 = vpop.f32.mrf.mxu1 }
 0x2c0   : > { %v3799_v48 = vpop.f32.mrf.mxu1 }
 0x2c2   : > { %v3801_v49 = vpop.f32.mrf.mxu1 }
 0x2c4   : > { %v3803_v50 = vpop.f32.mrf.mxu1 }
 0x2c6   : > { %v3804_v51 = vpop.f32.mrf.mxu1 }
 0x2de   : > { %v3758_v53 = vpop.f32.mrf.mxu0 }
 0x2df   : > { %v3759_v35 = vadd.f32 %v3758_v53, %v3718_v52 }
 0x2e0   : > { %v3760_v0 = vpop.f32.mrf.mxu0 }
 0x2e1   : > { %v3800_v16 = vadd.f32 %v3799_v48, %v3759_v35  ;;  %v3761_v36 = vadd.f32 %v3760_v0, %v3720_v56 }
 0x2e2   : > { %v3762_v58 = vpop.f32.mrf.mxu0 }
 0x2e3   : > { %v3974_v61 = vadd.f32 %v3800_v16, %v593_v57  ;;  %v3802_v62 = vadd.f32 %v3801_v49, %v3761_v36 }
 0x2e4   : > { %v3763_v63 = vpop.f32.mrf.mxu0 }
 0x2e5   : > { %3982 = vst [vmem:[#allocation2 + $0x8] sm:$0xff] %v3974_v61  ;;  %v3975_v1 = vadd.f32 %v3802_v62, %v594_v30 }
 0x2e7   : > { %3983 = vst [vmem:[#allocation2 + $0x20] sm:$0xff] %v3975_v1 }
 0x300   : > { %v3840_v15 = vpop.f32.mrf.mxu1 }
 0x302   : > { %v3842_v18 = vpop.f32.mrf.mxu1 }
 0x304   : > { %v3844_v2 = vpop.f32.mrf.mxu1 }
 0x306   : > { %v3845_v3 = vpop.f32.mrf.mxu1 }
 0x31e   : > { %v3881_v4 = vpop.f32.mrf.mxu0 }
 0x31f   : > { %v3882_v6 = vadd.f32 %v3881_v4, %v3840_v15 }
 0x320   : > { %v3883_v21 = vpop.f32.mrf.mxu0 }
 0x321   : > { %v3884_v9 = vadd.f32 %v3883_v21, %v3842_v18 }
 0x322   : > { %v3885_v25 = vpop.f32.mrf.mxu0 }
 0x324   : > { %v3886_v5 = vpop.f32.mrf.mxu0 }
 0x33e   : > { %v3963_v7 = vpop.f32.mrf.mxu0 }
 0x340   : > { %v3922_v8 = vpop.f32.mrf.mxu1  ;;  %v3965_v11 = vpop.f32.mrf.mxu0 }
 0x341   : > { %v3923_v10 = vadd.f32 %v3922_v8, %v3882_v6 }
 0x342   : > { %v3924_v40 = vpop.f32.mrf.mxu1  ;;  %v3967_v59 = vpop.f32.mrf.mxu0 }
 0x343   : > { %v3964_v14 = vadd.f32 %v3963_v7, %v3923_v10  ;;  %v3925_v29 = vadd.f32 %v3924_v40, %v3884_v9 }
 0x344   : > { %v3926_v23 = vpop.f32.mrf.mxu1  ;;  %v3968_v44 = vpop.f32.mrf.mxu0 }
 0x345   : > { %v3976_v24 = vadd.f32 %v3964_v14, %v595_v12  ;;  %v3966_v54 = vadd.f32 %v3965_v11, %v3925_v29  ;;  %3989 = sbr.rel (%p7384_p2) target bundleno = 1943 (0x797), region = 112 }
 0x346   : > { %v3927_v27 = vpop.f32.mrf.mxu1 }
 0x347   : > { %3984 = vst [vmem:[#allocation2 + $0x28] sm:$0xff] %v3976_v24  ;;  %v3977_v60 = vadd.f32 %v3966_v54, %v596_v19 }
 0x349   : > { %3985 = vst [vmem:[#allocation2 + $0x38] sm:$0xff] %v3977_v60 }
 0x34a   : > { %v7956_v28 = vld [vmem:[#allocation7 + $0xe4] ss:$16 sps:$4 sm:$0xff]   ;;  %v7960_v32 = vld [vmem:[#allocation7 + $0xe0] ss:$16 sps:$4 sm:$0xff]   ;;  %v4000_v63 = vlaneseq  ;;  %v3991_v14 = vld [vmem:[#allocation2] sm:$0xff]  ;;  %vm8845_vm0 = vmmov 0  }
 0x34b   : > { %v7958_v31 = vld [vmem:[#allocation7 + $0x2e4] ss:$16 sps:$4 sm:$0xff]   ;;  %5622 = vmatprep.subr.bf16.mxu0 %v7956_v28  ;;  %v7961_v33 = vld [vmem:[#allocation7 + $0x2e0] ss:$16 sps:$4 sm:$0xff]   ;;  %v9662_v59 = vld [vmem:[#allocation5] sm:$0xff] }
 0x34c   : > { %5663 = vmatprep.subr.bf16.mxu1 %v7958_v31  ;;  %v7962_v34 = vld [vmem:[#allocation7 + $0xc4] ss:$16 sps:$4 sm:$0xff]   ;;  %5623 = vmatpush1.bf16.msra.mxu0 %v7960_v32  ;;  %v7966_v38 = vld [vmem:[#allocation7 + $0xc0] ss:$16 sps:$4 sm:$0xff]   ;;  %v9651_v2 = vshrl.u32 %v4000_v63, 7  ;;  %v3993_v19 = vld [vmem:[#allocation2 + $0x10] sm:$0xff] }
 0x34d   : > { %5664 = vmatpush1.bf16.msra.mxu1 %v7961_v33  ;;  %v7964_v37 = vld [vmem:[#allocation7 + $0x2c4] ss:$16 sps:$4 sm:$0xff]   ;;  %5624 = vmatprep.subr.bf16.mxu0 %v7962_v34  ;;  %v7967_v17 = vld [vmem:[#allocation7 + $0x2c0] ss:$16 sps:$4 sm:$0xff]   ;;  %v3990_v23 = vld [vmem:[#allocation2 + $0x30] sm:$0xff] }
 0x34e   : > { %5665 = vmatprep.subr.bf16.mxu1 %v7964_v37  ;;  %v7968_v39 = vld [vmem:[#allocation7 + $0xa4] ss:$16 sps:$4 sm:$0xff]   ;;  %v7972_v42 = vld [vmem:[#allocation7 + $0xa0] ss:$16 sps:$4 sm:$0xff]   ;;  %v9654_v6 = vsub.s32 1, %v9651_v2  ;;  %v4014_v8 = vsub.s32 3, %v9651_v2 }
 0x34f   : > { %v7970_v41 = vld [vmem:[#allocation7 + $0x2a4] ss:$16 sps:$4 sm:$0xff]   ;;  %v7973_v43 = vld [vmem:[#allocation7 + $0x2a0] ss:$16 sps:$4 sm:$0xff]   ;;  %v9658_v9 = vsub.s32 0, %v9651_v2  ;;  %v4010_v11 = vsub.s32 2, %v9651_v2 }
 0x350   : > { %5625 = vmatpush1.bf16.msra.mxu0 %v7966_v38  ;;  %v7974_v22 = vld [vmem:[#allocation7 + $0x84] ss:$16 sps:$4 sm:$0xff]   ;;  %v7978_v46 = vld [vmem:[#allocation7 + $0x80] ss:$16 sps:$4 sm:$0xff]   ;;  %v4018_v29 = vsub.s32 4, %v9651_v2  ;;  %v4026_v24 = vsub.s32 6, %v9651_v2  ;;  %v4007_v54 = vrot.slane %v9662_v59, %v9654_v6  ;;  %v4015_v44 = vrot.slane %v9662_v59, %v4014_v8 }
 0x351   : > { %5666 = vmatpush1.bf16.msra.mxu1 %v7967_v17  ;;  %5626 = vmatprep.subr.bf16.mxu0 %v7968_v39  ;;  %v7976_v45 = vld [vmem:[#allocation7 + $0x284] ss:$16 sps:$4 sm:$0xff]   ;;  %v7979_v47 = vld [vmem:[#allocation7 + $0x280] ss:$16 sps:$4 sm:$0xff]   ;;  %v4003_v27 = vrot.slane %v9662_v59, %v9658_v9  ;;  %v4011_v32 = vrot.slane %v9662_v59, %v4010_v11 }
 0x352   : > { %5667 = vmatprep.subr.bf16.mxu1 %v7970_v41  ;;  %v7980_v55 = vld [vmem:[#allocation7 + $0x64] ss:$16 sps:$4 sm:$0xff]   ;;  %v7984_v20 = vld [vmem:[#allocation7 + $0x60] ss:$16 sps:$4 sm:$0xff]   ;;  %v4041_v33 = vadd.f32 %v4007_v54, %v3991_v14  ;;  %v4043_v34 = vadd.f32 %v4015_v44, %v3993_v19  ;;  %v9676_v38 = vrot.slane %v9662_v59, %v4018_v29  ;;  %v9679_v41 = vrot.slane %v9662_v59, %v4026_v24 }
 0x353   : > { %v7982_v13 = vld [vmem:[#allocation7 + $0x264] ss:$16 sps:$4 sm:$0xff]   ;;  %v7985_v26 = vld [vmem:[#allocation7 + $0x260] ss:$16 sps:$4 sm:$0xff]   ;;  %v4040_v37 = vadd.f32 %v4003_v27, %v3990_v23  ;;  %v4022_v19 = vsub.s32 5, %v9651_v2  ;;  %v4030_v23 = vsub.s32 7, %v9651_v2 }
 0x354   : > { %5627 = vmatpush1.bf16.msra.mxu0 %v7972_v42  ;;  %v7986_v48 = vld [vmem:[#allocation7 + $0x44] ss:$16 sps:$4 sm:$0xff]   ;;  %v7990_v50 = vld [vmem:[#allocation7 + $0x40] ss:$16 sps:$4 sm:$0xff]   ;;  %8460 = vtanh.f32 %v4041_v33 }
 0x355   : > { %5668 = vmatpush1.bf16.msra.mxu1 %v7973_v43  ;;  %5628 = vmatprep.subr.bf16.mxu0 %v7974_v22  ;;  %v7988_v49 = vld [vmem:[#allocation7 + $0x244] ss:$16 sps:$4 sm:$0xff]   ;;  %v7991_v51 = vld [vmem:[#allocation7 + $0x240] ss:$16 sps:$4 sm:$0xff]   ;;  %8462 = vtanh.f32 %v4043_v34  ;;  %v3995_v34 = vld [vmem:[#allocation2 + $0x20] sm:$0xff] }
 0x356   : > { %5669 = vmatprep.subr.bf16.mxu1 %v7976_v45  ;;  %v7992_v52 = vld [vmem:[#allocation7 + $0x24] ss:$16 sps:$4 sm:$0xff]   ;;  %v7996_v56 = vld [vmem:[#allocation7 + $0x20] ss:$16 sps:$4 sm:$0xff]   ;;  %8464 = vtanh.f32 %v4040_v37 }
 0x357   : > { %v7994_v53 = vld [vmem:[#allocation7 + $0x224] ss:$16 sps:$4 sm:$0xff]   ;;  %v7997_v35 = vld [vmem:[#allocation7 + $0x220] ss:$16 sps:$4 sm:$0xff]  }
 0x358   : > { %5629 = vmatpush1.bf16.msra.mxu0 %v7978_v46  ;;  %v7998_v57 = vld [vmem:[#allocation7 + $0x4] ss:$16 sps:$4 sm:$0xff]   ;;  %v8002_v16 = vld [vmem:[#allocation7] ss:$16 sps:$4 sm:$0xff]  }
 0x359   : > { %5670 = vmatpush1.bf16.msra.mxu1 %v7979_v47  ;;  %5630 = vmatprep.subr.bf16.mxu0 %v7980_v55  ;;  %v8000_v0 = vld [vmem:[#allocation7 + $0x204] ss:$16 sps:$4 sm:$0xff]   ;;  %v8003_v36 = vld [vmem:[#allocation7 + $0x200] ss:$16 sps:$4 sm:$0xff]  }
 0x35a   : > { %5671 = vmatprep.subr.bf16.mxu1 %v7982_v13  ;;  %v8004_v30 = vld [vmem:[#allocation7 + $0x1e4] ss:$16 sps:$4 sm:$0xff]   ;;  %v8008_v61 = vld [vmem:[#allocation7 + $0x1e0] ss:$16 sps:$4 sm:$0xff]  }
 0x35b   : > { %v8006_v58 = vld [vmem:[#allocation7 + $0x3e4] ss:$16 sps:$4 sm:$0xff]   ;;  %v8009_v62 = vld [vmem:[#allocation7 + $0x3e0] ss:$16 sps:$4 sm:$0xff]  }
 0x35c   : > { %5631 = vmatpush1.bf16.msra.mxu0 %v7984_v20  ;;  %v8010_v1 = vld [vmem:[#allocation7 + $0x1c4] ss:$16 sps:$4 sm:$0xff]   ;;  %v8014_v18 = vld [vmem:[#allocation7 + $0x1c0] ss:$16 sps:$4 sm:$0xff]  }
 0x35d   : > { %5672 = vmatpush1.bf16.msra.mxu1 %v7985_v26  ;;  %5632 = vmatprep.subr.bf16.mxu0 %v7986_v48  ;;  %v8012_v15 = vld [vmem:[#allocation7 + $0x3c4] ss:$16 sps:$4 sm:$0xff]   ;;  %v8015_v3 = vld [vmem:[#allocation7 + $0x3c0] ss:$16 sps:$4 sm:$0xff]  }
 0x35e   : > { %5673 = vmatprep.subr.bf16.mxu1 %v7988_v49  ;;  %v8016_v4 = vld [vmem:[#allocation7 + $0x1a4] ss:$16 sps:$4 sm:$0xff]   ;;  %v8020_v25 = vld [vmem:[#allocation7 + $0x1a0] ss:$16 sps:$4 sm:$0xff]  }
 0x35f   : > { %v8018_v21 = vld [vmem:[#allocation7 + $0x3a4] ss:$16 sps:$4 sm:$0xff]   ;;  %v8021_v5 = vld [vmem:[#allocation7 + $0x3a0] ss:$16 sps:$4 sm:$0xff]  }
 0x360   : > { %5633 = vmatpush1.bf16.msra.mxu0 %v7990_v50  ;;  %v8022_v7 = vld [vmem:[#allocation7 + $0x184] ss:$16 sps:$4 sm:$0xff]   ;;  %v8026_v12 = vld [vmem:[#allocation7 + $0x180] ss:$16 sps:$4 sm:$0xff]  }
 0x361   : > { %5674 = vmatpush1.bf16.msra.mxu1 %v7991_v51  ;;  %5634 = vmatprep.subr.bf16.mxu0 %v7992_v52  ;;  %v8024_v10 = vld [vmem:[#allocation7 + $0x384] ss:$16 sps:$4 sm:$0xff]   ;;  %v8027_v40 = vld [vmem:[#allocation7 + $0x380] ss:$16 sps:$4 sm:$0xff]   ;;  %v8461_v51 = vpop.eup %8460 }
 0x362   : > { %5675 = vmatprep.subr.bf16.mxu1 %v7994_v53  ;;  %v3992_v60 = vld [vmem:[#allocation2 + $0x18] sm:$0xff]  ;;  %v8463_v52 = vpop.eup %8462  ;;  %v9681_v53 = vpack.c.bf16 %v8461_v51, %v8461_v51 }
 0x363   : > { %v8028_v28 = vld [vmem:[#allocation7 + $0x164] ss:$16 sps:$4 sm:$0xff]   ;;  %v8032_v17 = vld [vmem:[#allocation7 + $0x160] ss:$16 sps:$4 sm:$0xff]   ;;  %v4042_v39 = vadd.f32 %v4011_v32, %v3992_v60  ;;  %v4023_v60 = vrot.slane %v9662_v59, %v4022_v19 }
 0x364   : > { %5635 = vmatpush1.bf16.msra.mxu0 %v7996_v56  ;;  %v8030_v31 = vld [vmem:[#allocation7 + $0x364] ss:$16 sps:$4 sm:$0xff]   ;;  %v8033_v42 = vld [vmem:[#allocation7 + $0x360] ss:$16 sps:$4 sm:$0xff]   ;;  %5654 = vmatprep.mubr.bf16.mxu0 %v9681_v53 }
 0x365   : > { %5676 = vmatpush1.bf16.msra.mxu1 %v7997_v35  ;;  %5636 = vmatprep.subr.bf16.mxu0 %v7998_v57  ;;  %v8034_v43 = vld [vmem:[#allocation7 + $0x144] ss:$16 sps:$4 sm:$0xff]   ;;  %v8038_v45 = vld [vmem:[#allocation7 + $0x140] ss:$16 sps:$4 sm:$0xff]   ;;  %8466 = vtanh.f32 %v4042_v39  ;;  %v8465_v57 = vpop.eup %8464  ;;  %v4045_v39 = vadd.f32 %v4023_v60, %v3995_v34  ;;  %v8148_v34 = vld [vmem:[#allocation7 + $0xe8] ss:$16 sps:$4 sm:$0xff]  }
 0x366   : > { %5677 = vmatprep.subr.bf16.mxu1 %v8000_v0  ;;  %v8036_v22 = vld [vmem:[#allocation7 + $0x344] ss:$16 sps:$4 sm:$0xff]   ;;  %v8039_v46 = vld [vmem:[#allocation7 + $0x340] ss:$16 sps:$4 sm:$0xff]   ;;  %v9683_v0 = vpack.c.bf16 %v8463_v52, %v8463_v52 }
 0x367   : > { %v8040_v47 = vld [vmem:[#allocation7 + $0x124] ss:$16 sps:$4 sm:$0xff]   ;;  %v8044_v13 = vld [vmem:[#allocation7 + $0x120] ss:$16 sps:$4 sm:$0xff]   ;;  %8468 = vtanh.f32 %v4045_v39  ;;  %v8159_v39 = vld [vmem:[#allocation7 + $0x2cc] ss:$16 sps:$4 sm:$0xff]  }
 0x368   : > { %5637 = vmatpush1.bf16.msra.mxu0 %v8002_v16  ;;  %v8042_v55 = vld [vmem:[#allocation7 + $0x324] ss:$16 sps:$4 sm:$0xff]   ;;  %v8045_v20 = vld [vmem:[#allocation7 + $0x320] ss:$16 sps:$4 sm:$0xff]   ;;  %5695 = vmatprep.mubr.bf16.mxu1 %v9683_v0 }
 0x369   : > { %5678 = vmatpush1.bf16.msra.mxu1 %v8003_v36  ;;  %5638 = vmatprep.subr.bf16.mxu0 %v8004_v30  ;;  %v8046_v26 = vld [vmem:[#allocation7 + $0x104] ss:$16 sps:$4 sm:$0xff]   ;;  %v8050_v49 = vld [vmem:[#allocation7 + $0x100] ss:$16 sps:$4 sm:$0xff]   ;;  %v9685_v30 = vpack.c.bf16 %v8465_v57, %v8465_v57 }
 0x36a   : > { %5679 = vmatprep.subr.bf16.mxu1 %v8006_v58  ;;  %v8048_v48 = vld [vmem:[#allocation7 + $0x304] ss:$16 sps:$4 sm:$0xff]   ;;  %v8051_v50 = vld [vmem:[#allocation7 + $0x300] ss:$16 sps:$4 sm:$0xff]  }
 0x36b   : > { %v8054_v56 = vld [vmem:[#allocation7 + $0x4e4] ss:$16 sps:$4 sm:$0xff]   ;;  %v8052_v16 = vld [vmem:[#allocation7 + $0x4e0] ss:$16 sps:$4 sm:$0xff]  }
 0x36c   : > { %5639 = vmatpush2.bf16.msra.mxu0 %v8008_v61  ;;  %v8057_v35 = vld [vmem:[#allocation7 + $0x6e4] ss:$16 sps:$4 sm:$0xff]   ;;  %v8055_v58 = vld [vmem:[#allocation7 + $0x6e0] ss:$16 sps:$4 sm:$0xff]  }
 0x36d   : > { %5680 = vmatpush2.bf16.msra.mxu1 %v8009_v62  ;;  %5640 = vmatprep.subr.bf16.mxu0 %v8010_v1  ;;  %v8060_v62 = vld [vmem:[#allocation7 + $0x4c4] ss:$16 sps:$4 sm:$0xff]   ;;  %v8058_v1 = vld [vmem:[#allocation7 + $0x4c0] ss:$16 sps:$4 sm:$0xff]  }
 0x36e   : > { %5681 = vmatprep.subr.bf16.mxu1 %v8012_v15  ;;  %v8063_v63 = vld [vmem:[#allocation7 + $0x6c4] ss:$16 sps:$4 sm:$0xff]   ;;  %v8061_v15 = vld [vmem:[#allocation7 + $0x6c0] ss:$16 sps:$4 sm:$0xff]  }
 0x36f   : > { %v8076_v14 = vld [vmem:[#allocation7 + $0x460] ss:$16 sps:$4 sm:$0xff]   ;;  %v8084_v24 = vld [vmem:[#allocation7 + $0x444] ss:$16 sps:$4 sm:$0xff]  }
 0x370   : > { %5641 = vmatpush2.bf16.msra.mxu0 %v8014_v18  ;;  %v8066_v18 = vld [vmem:[#allocation7 + $0x4a4] ss:$16 sps:$4 sm:$0xff]   ;;  %v8079_v29 = vld [vmem:[#allocation7 + $0x660] ss:$16 sps:$4 sm:$0xff]  }
 0x371   : > { %5682 = vmatpush2.bf16.msra.mxu1 %v8015_v3  ;;  %5642 = vmatprep.subr.bf16.mxu0 %v8016_v4  ;;  %v8069_v3 = vld [vmem:[#allocation7 + $0x6a4] ss:$16 sps:$4 sm:$0xff]   ;;  %v8064_v4 = vld [vmem:[#allocation7 + $0x4a0] ss:$16 sps:$4 sm:$0xff]  }
 0x372   : > { %5683 = vmatprep.subr.bf16.mxu1 %v8018_v21  ;;  %v8467_v36 = vpop.eup %8466  ;;  %v8067_v21 = vld [vmem:[#allocation7 + $0x6a0] ss:$16 sps:$4 sm:$0xff]   ;;  %v8087_v54 = vld [vmem:[#allocation7 + $0x644] ss:$16 sps:$4 sm:$0xff]  }
 0x373   : > { %v9689_v61 = vpack.c.bf16 %v8467_v36, %v8467_v36  ;;  %v8082_v44 = vld [vmem:[#allocation7 + $0x440] ss:$16 sps:$4 sm:$0xff]   ;;  %v8093_v32 = vld [vmem:[#allocation7 + $0x624] ss:$16 sps:$4 sm:$0xff]  }
 0x374   : > { %5643 = vmatpush2.bf16.msra.mxu0 %v8020_v25  ;;  %v8072_v25 = vld [vmem:[#allocation7 + $0x484] ss:$16 sps:$4 sm:$0xff]   ;;  %v8085_v27 = vld [vmem:[#allocation7 + $0x640] ss:$16 sps:$4 sm:$0xff]  }
 0x375   : > { %5684 = vmatpush2.bf16.msra.mxu1 %v8021_v5  ;;  %5644 = vmatprep.subr.bf16.mxu0 %v8022_v7  ;;  %v8075_v5 = vld [vmem:[#allocation7 + $0x684] ss:$16 sps:$4 sm:$0xff]   ;;  %v8070_v7 = vld [vmem:[#allocation7 + $0x480] ss:$16 sps:$4 sm:$0xff]  }
 0x376   : > { %5685 = vmatprep.subr.bf16.mxu1 %v8024_v10  ;;  %v8073_v10 = vld [vmem:[#allocation7 + $0x680] ss:$16 sps:$4 sm:$0xff]   ;;  %v8117_v51 = vld [vmem:[#allocation7 + $0x7a4] ss:$16 sps:$4 sm:$0xff]  }
 0x377   : > { %v8088_v33 = vld [vmem:[#allocation7 + $0x420] ss:$16 sps:$4 sm:$0xff]  }
 0x378   : > { %5645 = vmatpush2.bf16.msra.mxu0 %v8026_v12  ;;  %v8078_v12 = vld [vmem:[#allocation7 + $0x464] ss:$16 sps:$4 sm:$0xff]   ;;  %v8112_v52 = vld [vmem:[#allocation7 + $0x5a0] ss:$16 sps:$4 sm:$0xff]  }
 0x379   : > { %5686 = vmatpush2.bf16.msra.mxu1 %v8027_v40  ;;  %5646 = vmatprep.subr.bf16.mxu0 %v8028_v28  ;;  %v8081_v40 = vld [vmem:[#allocation7 + $0x664] ss:$16 sps:$4 sm:$0xff]   ;;  %v4031_v28 = vrot.slane %v9662_v59, %v4030_v23  ;;  %v8097_v59 = vld [vmem:[#allocation7 + $0x600] ss:$16 sps:$4 sm:$0xff]  }
 0x37a   : > { %5687 = vmatprep.subr.bf16.mxu1 %v8030_v31  ;;  %v8090_v31 = vld [vmem:[#allocation7 + $0x424] ss:$16 sps:$4 sm:$0xff]   ;;  %v8139_v19 = vld [vmem:[#allocation7 + $0x720] ss:$16 sps:$4 sm:$0xff]  }
 0x37b   : > { %v3997_v37 = vld [vmem:[#allocation2 + $0x38] sm:$0xff]  ;;  %v3994_v57 = vld [vmem:[#allocation2 + $0x8] sm:$0xff] }
 0x37c   : > { %5647 = vmatpush2.bf16.msra.mxu0 %v8032_v17  ;;  %v8091_v17 = vld [vmem:[#allocation7 + $0x620] ss:$16 sps:$4 sm:$0xff]   ;;  %v8144_v23 = vld [vmem:[#allocation7 + $0x504] ss:$16 sps:$4 sm:$0xff]  }
 0x37d   : > { %5688 = vmatpush2.bf16.msra.mxu1 %v8033_v42  ;;  %5648 = vmatprep.subr.bf16.mxu0 %v8034_v43  ;;  %v4047_v42 = vadd.f32 %v4031_v28, %v3997_v37  ;;  %v8096_v43 = vld [vmem:[#allocation7 + $0x404] ss:$16 sps:$4 sm:$0xff]   ;;  %v8145_v60 = vld [vmem:[#allocation7 + $0x700] ss:$16 sps:$4 sm:$0xff]   ;;  %v8150_v28 = vld [vmem:[#allocation7 + $0xec] ss:$16 sps:$4 sm:$0xff]  }
 0x37e   : > { %5689 = vmatprep.subr.bf16.mxu1 %v8036_v22  ;;  %v8099_v22 = vld [vmem:[#allocation7 + $0x604] ss:$16 sps:$4 sm:$0xff]   ;;  %v8151_v37 = vld [vmem:[#allocation7 + $0x2e8] ss:$16 sps:$4 sm:$0xff]  }
 0x37f   : > { %8470 = vtanh.f32 %v4047_v42  ;;  %v8154_v42 = vld [vmem:[#allocation7 + $0xc8] ss:$16 sps:$4 sm:$0xff]  }
 0x380   : > { %5649 = vmatpush2.bf16.msra.mxu0 %v8038_v45  ;;  %v8094_v45 = vld [vmem:[#allocation7 + $0x400] ss:$16 sps:$4 sm:$0xff]  }
 0x381   : > { %5690 = vmatpush2.bf16.msra.mxu1 %v8039_v46  ;;  %5650 = vmatprep.subr.bf16.mxu0 %v8040_v47  ;;  %v8102_v46 = vld [vmem:[#allocation7 + $0x5e4] ss:$16 sps:$4 sm:$0xff]  }
 0x382   : > { %5691 = vmatprep.subr.bf16.mxu1 %v8042_v55  ;;  %v8105_v47 = vld [vmem:[#allocation7 + $0x7e4] ss:$16 sps:$4 sm:$0xff]   ;;  %v8100_v55 = vld [vmem:[#allocation7 + $0x5e0] ss:$16 sps:$4 sm:$0xff]  }
 0x384   : > { %5651 = vmatpush2.bf16.msra.mxu0 %v8044_v13  ;;  %v8103_v13 = vld [vmem:[#allocation7 + $0x7e0] ss:$16 sps:$4 sm:$0xff]  }
 0x385   : > { %5692 = vmatpush2.bf16.msra.mxu1 %v8045_v20  ;;  %5652 = vmatprep.subr.bf16.mxu0 %v8046_v26  ;;  %v8108_v20 = vld [vmem:[#allocation7 + $0x5c4] ss:$16 sps:$4 sm:$0xff]  }
 0x386   : > { %5693 = vmatprep.subr.bf16.mxu1 %v8048_v48  ;;  %v8111_v26 = vld [vmem:[#allocation7 + $0x7c4] ss:$16 sps:$4 sm:$0xff]   ;;  %v8106_v48 = vld [vmem:[#allocation7 + $0x5c0] ss:$16 sps:$4 sm:$0xff]  }
 0x388   : > { %5653 = vmatpush2.bf16.msra.mxu0 %v8050_v49  ;;  %v8109_v49 = vld [vmem:[#allocation7 + $0x7c0] ss:$16 sps:$4 sm:$0xff]  }
 0x389   : > { %5694 = vmatpush2.bf16.msra.mxu1 %v8051_v50  ;;  %5704 = vmatprep.subr.bf16.mxu0 %v8054_v56  ;;  %v8114_v50 = vld [vmem:[#allocation7 + $0x5a4] ss:$16 sps:$4 sm:$0xff]   ;;  %v8115_v56 = vld [vmem:[#allocation7 + $0x7a0] ss:$16 sps:$4 sm:$0xff]  }
 0x38a   : > { %5745 = vmatprep.subr.bf16.mxu1 %v8057_v35  ;;  %v8469_v35 = vpop.eup %8468 }
 0x38b   : > { %5655 = vmatmul.mubr.bf16.vlgmr.msra.gmra.mxu0 %v9685_v30  ;;  %v9697_v36 = vpack.c.bf16 %v8469_v35, %v8469_v35  ;;  %v8189_v35 = vld [vmem:[#allocation7 + $0x22c] ss:$16 sps:$4 sm:$0xff]  }
 0x38c   : > { %5696 = vmatmul.mubr.bf16.vlgmr.msra.gmra.mxu1 %v9689_v61  ;;  %5705 = vmatpush1.bf16.msra.mxu0 %v8052_v16  ;;  %v8471_v16 = vpop.eup %8470 }
 0x38d   : > { %5746 = vmatpush1.bf16.msra.mxu1 %v8055_v58  ;;  %5706 = vmatprep.subr.bf16.mxu0 %v8060_v62  ;;  %v3996_v58 = vld [vmem:[#allocation2 + $0x28] sm:$0xff] }
 0x38e   : > { %5747 = vmatprep.subr.bf16.mxu1 %v8063_v63  ;;  %v8120_v62 = vld [vmem:[#allocation7 + $0x584] ss:$16 sps:$4 sm:$0xff]   ;;  %5736 = vmatprep.mubr.bf16.mxu0 %v9697_v36 }
 0x38f   : > { %v8123_v63 = vld [vmem:[#allocation7 + $0x784] ss:$16 sps:$4 sm:$0xff]  }
 0x390   : > { %5707 = vmatpush1.bf16.msra.mxu0 %v8058_v1  ;;  %v9699_v1 = vpack.c.bf16 %v8471_v16, %v8471_v16  ;;  %v8187_v16 = vld [vmem:[#allocation7 + $0x228] ss:$16 sps:$4 sm:$0xff]  }
 0x391   : > { %5748 = vmatpush1.bf16.msra.mxu1 %v8061_v15  ;;  %5708 = vmatprep.subr.bf16.mxu0 %v8066_v18  ;;  %v4044_v15 = vadd.f32 %v9676_v38, %v3994_v57  ;;  %v8118_v18 = vld [vmem:[#allocation7 + $0x580] ss:$16 sps:$4 sm:$0xff]   ;;  %v8132_v38 = vld [vmem:[#allocation7 + $0x544] ss:$16 sps:$4 sm:$0xff]   ;;  %v8184_v57 = vld [vmem:[#allocation7 + $0x28] ss:$16 sps:$4 sm:$0xff]  }
 0x392   : > { %5749 = vmatprep.subr.bf16.mxu1 %v8069_v3  ;;  %5777 = vmatprep.mubr.bf16.mxu1 %v9699_v1  ;;  %v4046_v3 = vadd.f32 %v9679_v41, %v3996_v58  ;;  %v8133_v41 = vld [vmem:[#allocation7 + $0x740] ss:$16 sps:$4 sm:$0xff]   ;;  %v8192_v58 = vld [vmem:[#allocation7 + $0xc] ss:$16 sps:$4 sm:$0xff]  }
 0x393   : > { %8472 = vtanh.f32 %v4044_v15  ;;  %v8193_v15 = vld [vmem:[#allocation7 + $0x208] ss:$16 sps:$4 sm:$0xff]  }
 0x394   : > { %5709 = vmatpush1.bf16.msra.mxu0 %v8064_v4  ;;  %v8121_v4 = vld [vmem:[#allocation7 + $0x780] ss:$16 sps:$4 sm:$0xff]   ;;  %8474 = vtanh.f32 %v4046_v3  ;;  %v8201_v3 = vld [vmem:[#allocation7 + $0x3ec] ss:$16 sps:$4 sm:$0xff]  }
 0x395   : > { %5750 = vmatpush1.bf16.msra.mxu1 %v8067_v21  ;;  %5710 = vmatprep.subr.bf16.mxu0 %v8072_v25  ;;  %v8126_v21 = vld [vmem:[#allocation7 + $0x564] ss:$16 sps:$4 sm:$0xff]  }
 0x396   : > { %5751 = vmatprep.subr.bf16.mxu1 %v8075_v5  ;;  %v8129_v25 = vld [vmem:[#allocation7 + $0x764] ss:$16 sps:$4 sm:$0xff]   ;;  %v8124_v5 = vld [vmem:[#allocation7 + $0x560] ss:$16 sps:$4 sm:$0xff]  }
 0x398   : > { %5711 = vmatpush1.bf16.msra.mxu0 %v8070_v7  ;;  %v8127_v7 = vld [vmem:[#allocation7 + $0x760] ss:$16 sps:$4 sm:$0xff]  }
 0x399   : > { %5752 = vmatpush1.bf16.msra.mxu1 %v8073_v10  ;;  %5712 = vmatprep.subr.bf16.mxu0 %v8078_v12  ;;  %v8135_v10 = vld [vmem:[#allocation7 + $0x744] ss:$16 sps:$4 sm:$0xff]   ;;  %v8130_v12 = vld [vmem:[#allocation7 + $0x540] ss:$16 sps:$4 sm:$0xff]  }
 0x39a   : > { %5753 = vmatprep.subr.bf16.mxu1 %v8081_v40  ;;  %v8138_v40 = vld [vmem:[#allocation7 + $0x524] ss:$16 sps:$4 sm:$0xff]  }
 0x39c   : > { %5713 = vmatpush1.bf16.msra.mxu0 %v8076_v14  ;;  %v8141_v14 = vld [vmem:[#allocation7 + $0x724] ss:$16 sps:$4 sm:$0xff]  }
 0x39d   : > { %5754 = vmatpush1.bf16.msra.mxu1 %v8079_v29  ;;  %5714 = vmatprep.subr.bf16.mxu0 %v8084_v24  ;;  %v8136_v29 = vld [vmem:[#allocation7 + $0x520] ss:$16 sps:$4 sm:$0xff]   ;;  %v8147_v24 = vld [vmem:[#allocation7 + $0x704] ss:$16 sps:$4 sm:$0xff]  }
 0x39e   : > { %5755 = vmatprep.subr.bf16.mxu1 %v8087_v54 }
 0x3a0   : > { %5715 = vmatpush1.bf16.msra.mxu0 %v8082_v44  ;;  %v8473_v54 = vpop.eup %8472  ;;  %v8142_v44 = vld [vmem:[#allocation7 + $0x500] ss:$16 sps:$4 sm:$0xff]  }
 0x3a1   : > { %5756 = vmatpush1.bf16.msra.mxu1 %v8085_v27  ;;  %5716 = vmatprep.subr.bf16.mxu0 %v8090_v31  ;;  %v8475_v27 = vpop.eup %8474  ;;  %v8153_v31 = vld [vmem:[#allocation7 + $0x2ec] ss:$16 sps:$4 sm:$0xff]  }
 0x3a2   : > { %5757 = vmatprep.subr.bf16.mxu1 %v8093_v32  ;;  %v9705_v32 = vpack.c.bf16 %v8473_v54, %v8473_v54  ;;  %v8225_v54 = vld [vmem:[#allocation7 + $0x36c] ss:$16 sps:$4 sm:$0xff]  }
 0x3a4   : > { %5717 = vmatpush1.bf16.msra.mxu0 %v8088_v33  ;;  %v9707_v33 = vpack.c.bf16 %v8475_v27, %v8475_v27  ;;  %v8223_v27 = vld [vmem:[#allocation7 + $0x368] ss:$16 sps:$4 sm:$0xff]  }
 0x3a5   : > { %5758 = vmatpush1.bf16.msra.mxu1 %v8091_v17  ;;  %5718 = vmatprep.subr.bf16.mxu0 %v8096_v43  ;;  %v8156_v17 = vld [vmem:[#allocation7 + $0xcc] ss:$16 sps:$4 sm:$0xff]   ;;  %v8157_v43 = vld [vmem:[#allocation7 + $0x2c8] ss:$16 sps:$4 sm:$0xff]  }
 0x3a6   : > { %5759 = vmatprep.subr.bf16.mxu1 %v8099_v22  ;;  %v8162_v22 = vld [vmem:[#allocation7 + $0xac] ss:$16 sps:$4 sm:$0xff]  }
 0x3a8   : > { %5719 = vmatpush1.bf16.msra.mxu0 %v8094_v45  ;;  %v8165_v45 = vld [vmem:[#allocation7 + $0x2ac] ss:$16 sps:$4 sm:$0xff]  }
 0x3a9   : > { %5760 = vmatpush1.bf16.msra.mxu1 %v8097_v59  ;;  %5720 = vmatprep.subr.bf16.mxu0 %v8102_v46  ;;  %v8160_v59 = vld [vmem:[#allocation7 + $0xa8] ss:$16 sps:$4 sm:$0xff]  }
 0x3aa   : > { %5761 = vmatprep.subr.bf16.mxu1 %v8105_v47  ;;  %v8163_v46 = vld [vmem:[#allocation7 + $0x2a8] ss:$16 sps:$4 sm:$0xff]   ;;  %v8168_v47 = vld [vmem:[#allocation7 + $0x8c] ss:$16 sps:$4 sm:$0xff]  }
 0x3ac   : > { %5721 = vmatpush2.bf16.msra.mxu0 %v8100_v55  ;;  %v8171_v55 = vld [vmem:[#allocation7 + $0x28c] ss:$16 sps:$4 sm:$0xff]  }
 0x3ad   : > { %5762 = vmatpush2.bf16.msra.mxu1 %v8103_v13  ;;  %5722 = vmatprep.subr.bf16.mxu0 %v8108_v20  ;;  %v8166_v13 = vld [vmem:[#allocation7 + $0x88] ss:$16 sps:$4 sm:$0xff]  }
 0x3ae   : > { %5763 = vmatprep.subr.bf16.mxu1 %v8111_v26  ;;  %v8169_v20 = vld [vmem:[#allocation7 + $0x288] ss:$16 sps:$4 sm:$0xff]   ;;  %v8174_v26 = vld [vmem:[#allocation7 + $0x6c] ss:$16 sps:$4 sm:$0xff]  }
 0x3b0   : > { %5723 = vmatpush2.bf16.msra.mxu0 %v8106_v48  ;;  %v8177_v48 = vld [vmem:[#allocation7 + $0x26c] ss:$16 sps:$4 sm:$0xff]  }
 0x3b1   : > { %5764 = vmatpush2.bf16.msra.mxu1 %v8109_v49  ;;  %5724 = vmatprep.subr.bf16.mxu0 %v8114_v50  ;;  %v8172_v49 = vld [vmem:[#allocation7 + $0x68] ss:$16 sps:$4 sm:$0xff]   ;;  %v8183_v50 = vld [vmem:[#allocation7 + $0x24c] ss:$16 sps:$4 sm:$0xff]  }
 0x3b2   : > { %5765 = vmatprep.subr.bf16.mxu1 %v8117_v51  ;;  %v8178_v51 = vld [vmem:[#allocation7 + $0x48] ss:$16 sps:$4 sm:$0xff]  }
 0x3b4   : > { %5725 = vmatpush2.bf16.msra.mxu0 %v8112_v52  ;;  %v8181_v52 = vld [vmem:[#allocation7 + $0x248] ss:$16 sps:$4 sm:$0xff]  }
 0x3b5   : > { %5766 = vmatpush2.bf16.msra.mxu1 %v8115_v56  ;;  %5726 = vmatprep.subr.bf16.mxu0 %v8120_v62  ;;  %v8186_v56 = vld [vmem:[#allocation7 + $0x2c] ss:$16 sps:$4 sm:$0xff]  }
 0x3b6   : > { %5767 = vmatprep.subr.bf16.mxu1 %v8123_v63  ;;  %v8195_v62 = vld [vmem:[#allocation7 + $0x20c] ss:$16 sps:$4 sm:$0xff]   ;;  %v8190_v63 = vld [vmem:[#allocation7 + $0x8] ss:$16 sps:$4 sm:$0xff]  }
 0x3b8   : > { %5727 = vmatpush2.bf16.msra.mxu0 %v8118_v18  ;;  %v8198_v18 = vld [vmem:[#allocation7 + $0x1ec] ss:$16 sps:$4 sm:$0xff]  }
 0x3b9   : > { %5768 = vmatpush2.bf16.msra.mxu1 %v8121_v4  ;;  %5728 = vmatprep.subr.bf16.mxu0 %v8126_v21  ;;  %v8196_v4 = vld [vmem:[#allocation7 + $0x1e8] ss:$16 sps:$4 sm:$0xff]  }
 0x3ba   : > { %5769 = vmatprep.subr.bf16.mxu1 %v8129_v25  ;;  %v8199_v21 = vld [vmem:[#allocation7 + $0x3e8] ss:$16 sps:$4 sm:$0xff]   ;;  %v8204_v25 = vld [vmem:[#allocation7 + $0x1cc] ss:$16 sps:$4 sm:$0xff]  }
 0x3bc   : > { %5729 = vmatpush2.bf16.msra.mxu0 %v8124_v5  ;;  %v8207_v5 = vld [vmem:[#allocation7 + $0x3cc] ss:$16 sps:$4 sm:$0xff]  }
 0x3bd   : > { %5770 = vmatpush2.bf16.msra.mxu1 %v8127_v7  ;;  %5730 = vmatprep.subr.bf16.mxu0 %v8132_v38  ;;  %v8202_v7 = vld [vmem:[#allocation7 + $0x1c8] ss:$16 sps:$4 sm:$0xff]  }
 0x3be   : > { %5771 = vmatprep.subr.bf16.mxu1 %v8135_v10  ;;  %v8205_v38 = vld [vmem:[#allocation7 + $0x3c8] ss:$16 sps:$4 sm:$0xff]   ;;  %v8210_v10 = vld [vmem:[#allocation7 + $0x1ac] ss:$16 sps:$4 sm:$0xff]  }
 0x3c0   : > { %5731 = vmatpush2.bf16.msra.mxu0 %v8130_v12  ;;  %v8213_v12 = vld [vmem:[#allocation7 + $0x3ac] ss:$16 sps:$4 sm:$0xff]  }
 0x3c1   : > { %5772 = vmatpush2.bf16.msra.mxu1 %v8133_v41  ;;  %5732 = vmatprep.subr.bf16.mxu0 %v8138_v40  ;;  %v8208_v41 = vld [vmem:[#allocation7 + $0x1a8] ss:$16 sps:$4 sm:$0xff]  }
 0x3c2   : > { %5773 = vmatprep.subr.bf16.mxu1 %v8141_v14  ;;  %v8211_v40 = vld [vmem:[#allocation7 + $0x3a8] ss:$16 sps:$4 sm:$0xff]   ;;  %v8216_v14 = vld [vmem:[#allocation7 + $0x18c] ss:$16 sps:$4 sm:$0xff]  }
 0x3c4   : > { %5733 = vmatpush2.bf16.msra.mxu0 %v8136_v29  ;;  %v8219_v29 = vld [vmem:[#allocation7 + $0x38c] ss:$16 sps:$4 sm:$0xff]  }
 0x3c5   : > { %5774 = vmatpush2.bf16.msra.mxu1 %v8139_v19  ;;  %5734 = vmatprep.subr.bf16.mxu0 %v8144_v23  ;;  %v8214_v19 = vld [vmem:[#allocation7 + $0x188] ss:$16 sps:$4 sm:$0xff]  }
 0x3c6   : > { %5775 = vmatprep.subr.bf16.mxu1 %v8147_v24  ;;  %v8217_v23 = vld [vmem:[#allocation7 + $0x388] ss:$16 sps:$4 sm:$0xff]   ;;  %v8222_v24 = vld [vmem:[#allocation7 + $0x16c] ss:$16 sps:$4 sm:$0xff]  }
 0x3c8   : > { %5735 = vmatpush2.bf16.msra.mxu0 %v8142_v44  ;;  %v8220_v44 = vld [vmem:[#allocation7 + $0x168] ss:$16 sps:$4 sm:$0xff]  }
 0x3c9   : > { %5776 = vmatpush2.bf16.msra.mxu1 %v8145_v60  ;;  %5786 = vmatprep.subr.bf16.mxu0 %v8150_v28  ;;  %v8228_v60 = vld [vmem:[#allocation7 + $0x14c] ss:$16 sps:$4 sm:$0xff]  }
 0x3ca   : > { %5827 = vmatprep.subr.bf16.mxu1 %v8153_v31  ;;  %v8231_v28 = vld [vmem:[#allocation7 + $0x34c] ss:$16 sps:$4 sm:$0xff]   ;;  %v8226_v31 = vld [vmem:[#allocation7 + $0x148] ss:$16 sps:$4 sm:$0xff]  }
 0x3cb   : > { %5737 = vmatmul.mubr.bf16.vlgmr.msra.gmra.mxu0 %v9705_v32 }
 0x3cc   : > { %5778 = vmatmul.mubr.bf16.vlgmr.msra.gmra.mxu1 %v9707_v33  ;;  %5787 = vmatpush1.bf16.msra.mxu0 %v8148_v34  ;;  %v8229_v34 = vld [vmem:[#allocation7 + $0x348] ss:$16 sps:$4 sm:$0xff]  }
 0x3cd   : > { %5828 = vmatpush1.bf16.msra.mxu1 %v8151_v37  ;;  %5788 = vmatprep.subr.bf16.mxu0 %v8156_v17  ;;  %v8234_v37 = vld [vmem:[#allocation7 + $0x12c] ss:$16 sps:$4 sm:$0xff]  }
 0x3ce   : > { %5829 = vmatprep.subr.bf16.mxu1 %v8159_v39  ;;  %5818 = vmatprep.mubr.bf16.mxu0 %v9681_v53  ;;  %v8175_v53 = vld [vmem:[#allocation7 + $0x268] ss:$16 sps:$4 sm:$0xff]   ;;  %v8237_v17 = vld [vmem:[#allocation7 + $0x32c] ss:$16 sps:$4 sm:$0xff]  }
 0x3cf   : > { %5859 = vmatprep.mubr.bf16.mxu1 %v9683_v0  ;;  %v8180_v0 = vld [vmem:[#allocation7 + $0x4c] ss:$16 sps:$4 sm:$0xff]   ;;  %v8232_v39 = vld [vmem:[#allocation7 + $0x128] ss:$16 sps:$4 sm:$0xff]  }
 0x3d0   : > { %5789 = vmatpush1.bf16.msra.mxu0 %v8154_v42  ;;  %v8235_v42 = vld [vmem:[#allocation7 + $0x328] ss:$16 sps:$4 sm:$0xff]  }
 0x3d1   : > { %5830 = vmatpush1.bf16.msra.mxu1 %v8157_v43  ;;  %5790 = vmatprep.subr.bf16.mxu0 %v8162_v22  ;;  %v8240_v43 = vld [vmem:[#allocation7 + $0x10c] ss:$16 sps:$4 sm:$0xff]  }
 0x3d2   : > { %5831 = vmatprep.subr.bf16.mxu1 %v8165_v45  ;;  %v8243_v22 = vld [vmem:[#allocation7 + $0x30c] ss:$16 sps:$4 sm:$0xff]   ;;  %v8238_v45 = vld [vmem:[#allocation7 + $0x108] ss:$16 sps:$4 sm:$0xff]  }
 0x3d4   : > { %5791 = vmatpush1.bf16.msra.mxu0 %v8160_v59  ;;  %v8241_v59 = vld [vmem:[#allocation7 + $0x308] ss:$16 sps:$4 sm:$0xff]  }
 0x3d5   : > { %5832 = vmatpush1.bf16.msra.mxu1 %v8163_v46  ;;  %5792 = vmatprep.subr.bf16.mxu0 %v8168_v47  ;;  %v8246_v46 = vld [vmem:[#allocation7 + $0x4ec] ss:$16 sps:$4 sm:$0xff]  }
 0x3d6   : > { %5833 = vmatprep.subr.bf16.mxu1 %v8171_v55  ;;  %v8249_v47 = vld [vmem:[#allocation7 + $0x6ec] ss:$16 sps:$4 sm:$0xff]   ;;  %v8244_v55 = vld [vmem:[#allocation7 + $0x4e8] ss:$16 sps:$4 sm:$0xff]  }
 0x3d8   : > { %5793 = vmatpush1.bf16.msra.mxu0 %v8166_v13  ;;  %v8247_v13 = vld [vmem:[#allocation7 + $0x6e8] ss:$16 sps:$4 sm:$0xff]  }
 0x3d9   : > { %5834 = vmatpush1.bf16.msra.mxu1 %v8169_v20  ;;  %5794 = vmatprep.subr.bf16.mxu0 %v8174_v26  ;;  %v8252_v20 = vld [vmem:[#allocation7 + $0x4cc] ss:$16 sps:$4 sm:$0xff]  }
 0x3da   : > { %5835 = vmatprep.subr.bf16.mxu1 %v8177_v48  ;;  %v8255_v26 = vld [vmem:[#allocation7 + $0x6cc] ss:$16 sps:$4 sm:$0xff]   ;;  %v8250_v48 = vld [vmem:[#allocation7 + $0x4c8] ss:$16 sps:$4 sm:$0xff]  }
 0x3dc   : > { %5795 = vmatpush1.bf16.msra.mxu0 %v8172_v49  ;;  %v8253_v49 = vld [vmem:[#allocation7 + $0x6c8] ss:$16 sps:$4 sm:$0xff]  }
 0x3dd   : > { %5836 = vmatpush1.bf16.msra.mxu1 %v8175_v53  ;;  %5796 = vmatprep.subr.bf16.mxu0 %v8180_v0  ;;  %v8258_v53 = vld [vmem:[#allocation7 + $0x4ac] ss:$16 sps:$4 sm:$0xff]  }
 0x3de   : > { %5837 = vmatprep.subr.bf16.mxu1 %v8183_v50  ;;  %v8261_v0 = vld [vmem:[#allocation7 + $0x6ac] ss:$16 sps:$4 sm:$0xff]   ;;  %v8256_v50 = vld [vmem:[#allocation7 + $0x4a8] ss:$16 sps:$4 sm:$0xff]  }
 0x3e0   : > { %5797 = vmatpush1.bf16.msra.mxu0 %v8178_v51  ;;  %v8259_v51 = vld [vmem:[#allocation7 + $0x6a8] ss:$16 sps:$4 sm:$0xff]  }
 0x3e1   : > { %5838 = vmatpush1.bf16.msra.mxu1 %v8181_v52  ;;  %5798 = vmatprep.subr.bf16.mxu0 %v8186_v56  ;;  %v8264_v52 = vld [vmem:[#allocation7 + $0x48c] ss:$16 sps:$4 sm:$0xff]   ;;  %v8262_v56 = vld [vmem:[#allocation7 + $0x488] ss:$16 sps:$4 sm:$0xff]  }
 0x3e2   : > { %5839 = vmatprep.subr.bf16.mxu1 %v8189_v35  ;;  %v8270_v35 = vld [vmem:[#allocation7 + $0x46c] ss:$16 sps:$4 sm:$0xff]  }
 0x3e4   : > { %5799 = vmatpush1.bf16.msra.mxu0 %v8184_v57  ;;  %v8273_v57 = vld [vmem:[#allocation7 + $0x66c] ss:$16 sps:$4 sm:$0xff]  }
 0x3e5   : > { %5840 = vmatpush1.bf16.msra.mxu1 %v8187_v16  ;;  %5800 = vmatprep.subr.bf16.mxu0 %v8192_v58  ;;  %v8268_v16 = vld [vmem:[#allocation7 + $0x468] ss:$16 sps:$4 sm:$0xff]  }
 0x3e6   : > { %5841 = vmatprep.subr.bf16.mxu1 %v8195_v62  ;;  %v8271_v58 = vld [vmem:[#allocation7 + $0x668] ss:$16 sps:$4 sm:$0xff]   ;;  %v8276_v62 = vld [vmem:[#allocation7 + $0x44c] ss:$16 sps:$4 sm:$0xff]  }
 0x3e8   : > { %5801 = vmatpush1.bf16.msra.mxu0 %v8190_v63  ;;  %v8277_v63 = vld [vmem:[#allocation7 + $0x648] ss:$16 sps:$4 sm:$0xff]  }
 0x3e9   : > { %5842 = vmatpush1.bf16.msra.mxu1 %v8193_v15  ;;  %5802 = vmatprep.subr.bf16.mxu0 %v8198_v18  ;;  %v8282_v15 = vld [vmem:[#allocation7 + $0x42c] ss:$16 sps:$4 sm:$0xff]  }
 0x3ea   : > { %5843 = vmatprep.subr.bf16.mxu1 %v8201_v3  ;;  %v8285_v18 = vld [vmem:[#allocation7 + $0x62c] ss:$16 sps:$4 sm:$0xff]   ;;  %v8280_v3 = vld [vmem:[#allocation7 + $0x428] ss:$16 sps:$4 sm:$0xff]  }
 0x3ec   : > { %5803 = vmatpush2.bf16.msra.mxu0 %v8196_v4  ;;  %v8283_v4 = vld [vmem:[#allocation7 + $0x628] ss:$16 sps:$4 sm:$0xff]  }
 0x3ed   : > { %5844 = vmatpush2.bf16.msra.mxu1 %v8199_v21  ;;  %5804 = vmatprep.subr.bf16.mxu0 %v8204_v25  ;;  %v8288_v21 = vld [vmem:[#allocation7 + $0x40c] ss:$16 sps:$4 sm:$0xff]  }
 0x3ee   : > { %5845 = vmatprep.subr.bf16.mxu1 %v8207_v5  ;;  %v8291_v25 = vld [vmem:[#allocation7 + $0x60c] ss:$16 sps:$4 sm:$0xff]   ;;  %v8286_v5 = vld [vmem:[#allocation7 + $0x408] ss:$16 sps:$4 sm:$0xff]  }
 0x3f0   : > { %5805 = vmatpush2.bf16.msra.mxu0 %v8202_v7  ;;  %v8289_v7 = vld [vmem:[#allocation7 + $0x608] ss:$16 sps:$4 sm:$0xff]  }
 0x3f1   : > { %5846 = vmatpush2.bf16.msra.mxu1 %v8205_v38  ;;  %5806 = vmatprep.subr.bf16.mxu0 %v8210_v10  ;;  %v8294_v38 = vld [vmem:[#allocation7 + $0x5ec] ss:$16 sps:$4 sm:$0xff]  }
 0x3f2   : > { %5847 = vmatprep.subr.bf16.mxu1 %v8213_v12  ;;  %v8297_v10 = vld [vmem:[#allocation7 + $0x7ec] ss:$16 sps:$4 sm:$0xff]   ;;  %v8292_v12 = vld [vmem:[#allocation7 + $0x5e8] ss:$16 sps:$4 sm:$0xff]  }
 0x3f4   : > { %5807 = vmatpush2.bf16.msra.mxu0 %v8208_v41  ;;  %v8295_v41 = vld [vmem:[#allocation7 + $0x7e8] ss:$16 sps:$4 sm:$0xff]  }
 0x3f5   : > { %5848 = vmatpush2.bf16.msra.mxu1 %v8211_v40  ;;  %5808 = vmatprep.subr.bf16.mxu0 %v8216_v14  ;;  %v8300_v40 = vld [vmem:[#allocation7 + $0x5cc] ss:$16 sps:$4 sm:$0xff]  }
 0x3f6   : > { %5849 = vmatprep.subr.bf16.mxu1 %v8219_v29  ;;  %v8303_v14 = vld [vmem:[#allocation7 + $0x7cc] ss:$16 sps:$4 sm:$0xff]   ;;  %v8298_v29 = vld [vmem:[#allocation7 + $0x5c8] ss:$16 sps:$4 sm:$0xff]  }
 0x3f8   : > { %5809 = vmatpush2.bf16.msra.mxu0 %v8214_v19  ;;  %v8301_v19 = vld [vmem:[#allocation7 + $0x7c8] ss:$16 sps:$4 sm:$0xff]  }
 0x3f9   : > { %5850 = vmatpush2.bf16.msra.mxu1 %v8217_v23  ;;  %5810 = vmatprep.subr.bf16.mxu0 %v8222_v24  ;;  %v8306_v23 = vld [vmem:[#allocation7 + $0x5ac] ss:$16 sps:$4 sm:$0xff]  }
 0x3fa   : > { %5851 = vmatprep.subr.bf16.mxu1 %v8225_v54  ;;  %v8309_v24 = vld [vmem:[#allocation7 + $0x7ac] ss:$16 sps:$4 sm:$0xff]   ;;  %v8304_v54 = vld [vmem:[#allocation7 + $0x5a8] ss:$16 sps:$4 sm:$0xff]  }
 0x3fc   : > { %5811 = vmatpush2.bf16.msra.mxu0 %v8220_v44  ;;  %v8307_v44 = vld [vmem:[#allocation7 + $0x7a8] ss:$16 sps:$4 sm:$0xff]  }
 0x3fd   : > { %5852 = vmatpush2.bf16.msra.mxu1 %v8223_v27  ;;  %5812 = vmatprep.subr.bf16.mxu0 %v8228_v60  ;;  %v8312_v27 = vld [vmem:[#allocation7 + $0x58c] ss:$16 sps:$4 sm:$0xff]  }
 0x3fe   : > { %5853 = vmatprep.subr.bf16.mxu1 %v8231_v28  ;;  %v8315_v60 = vld [vmem:[#allocation7 + $0x78c] ss:$16 sps:$4 sm:$0xff]   ;;  %v8310_v28 = vld [vmem:[#allocation7 + $0x588] ss:$16 sps:$4 sm:$0xff]  }
 0x400   : > { %5813 = vmatpush2.bf16.msra.mxu0 %v8226_v31  ;;  %v8313_v31 = vld [vmem:[#allocation7 + $0x788] ss:$16 sps:$4 sm:$0xff]  }
 0x401   : > { %5854 = vmatpush2.bf16.msra.mxu1 %v8229_v34  ;;  %5814 = vmatprep.subr.bf16.mxu0 %v8234_v37  ;;  %v8318_v34 = vld [vmem:[#allocation7 + $0x56c] ss:$16 sps:$4 sm:$0xff]  }
 0x402   : > { %5855 = vmatprep.subr.bf16.mxu1 %v8237_v17  ;;  %v8321_v37 = vld [vmem:[#allocation7 + $0x76c] ss:$16 sps:$4 sm:$0xff]   ;;  %v8316_v17 = vld [vmem:[#allocation7 + $0x568] ss:$16 sps:$4 sm:$0xff]  }
 0x404   : > { %5815 = vmatpush2.bf16.msra.mxu0 %v8232_v39  ;;  %v8319_v39 = vld [vmem:[#allocation7 + $0x768] ss:$16 sps:$4 sm:$0xff]  }
 0x405   : > { %5856 = vmatpush2.bf16.msra.mxu1 %v8235_v42  ;;  %5816 = vmatprep.subr.bf16.mxu0 %v8240_v43  ;;  %v8324_v42 = vld [vmem:[#allocation7 + $0x54c] ss:$16 sps:$4 sm:$0xff]  }
 0x406   : > { %5857 = vmatprep.subr.bf16.mxu1 %v8243_v22  ;;  %v8327_v43 = vld [vmem:[#allocation7 + $0x74c] ss:$16 sps:$4 sm:$0xff]   ;;  %v8322_v22 = vld [vmem:[#allocation7 + $0x548] ss:$16 sps:$4 sm:$0xff]  }
 0x408   : > { %5817 = vmatpush2.bf16.msra.mxu0 %v8238_v45  ;;  %v8325_v45 = vld [vmem:[#allocation7 + $0x748] ss:$16 sps:$4 sm:$0xff]  }
 0x409   : > { %5858 = vmatpush2.bf16.msra.mxu1 %v8241_v59  ;;  %5868 = vmatprep.subr.bf16.mxu0 %v8246_v46  ;;  %v8330_v59 = vld [vmem:[#allocation7 + $0x52c] ss:$16 sps:$4 sm:$0xff]  }
 0x40a   : > { %5909 = vmatprep.subr.bf16.mxu1 %v8249_v47  ;;  %v8333_v46 = vld [vmem:[#allocation7 + $0x72c] ss:$16 sps:$4 sm:$0xff]   ;;  %v8328_v47 = vld [vmem:[#allocation7 + $0x528] ss:$16 sps:$4 sm:$0xff]  }
 0x40b   : > { %5819 = vmatmul.mubr.bf16.vlgmr.msra.gmra.mxu0 %v9685_v30  ;;  %v8267_v30 = vld [vmem:[#allocation7 + $0x68c] ss:$16 sps:$4 sm:$0xff]  }
 0x40c   : > { %5860 = vmatmul.mubr.bf16.vlgmr.msra.gmra.mxu1 %v9689_v61  ;;  %5869 = vmatpush1.bf16.msra.mxu0 %v8244_v55  ;;  %v8265_v61 = vld [vmem:[#allocation7 + $0x688] ss:$16 sps:$4 sm:$0xff]  }
 0x40d   : > { %5910 = vmatpush1.bf16.msra.mxu1 %v8247_v13  ;;  %5870 = vmatprep.subr.bf16.mxu0 %v8252_v20  ;;  %v8331_v55 = vld [vmem:[#allocation7 + $0x728] ss:$16 sps:$4 sm:$0xff]   ;;  %v8336_v13 = vld [vmem:[#allocation7 + $0x50c] ss:$16 sps:$4 sm:$0xff]  }
 0x40e   : > { %5911 = vmatprep.subr.bf16.mxu1 %v8255_v26  ;;  %5900 = vmatprep.mubr.bf16.mxu0 %v9697_v36  ;;  %v8279_v36 = vld [vmem:[#allocation7 + $0x64c] ss:$16 sps:$4 sm:$0xff]   ;;  %v8334_v26 = vld [vmem:[#allocation7 + $0x508] ss:$16 sps:$4 sm:$0xff]  }
 0x40f   : > { %5941 = vmatprep.mubr.bf16.mxu1 %v9699_v1  ;;  %v8274_v1 = vld [vmem:[#allocation7 + $0x448] ss:$16 sps:$4 sm:$0xff]   ;;  %v8339_v20 = vld [vmem:[#allocation7 + $0x70c] ss:$16 sps:$4 sm:$0xff]  }
 0x410   : > { %5871 = vmatpush1.bf16.msra.mxu0 %v8250_v48  ;;  %v8337_v48 = vld [vmem:[#allocation7 + $0x708] ss:$16 sps:$4 sm:$0xff]  }
 0x411   : > { %5912 = vmatpush1.bf16.msra.mxu1 %v8253_v49  ;;  %5872 = vmatprep.subr.bf16.mxu0 %v8258_v53  ;;  %v8342_v49 = vld [vmem:[#allocation10 + $0x74] ss:$8 sps:$4 sm:$0xff]   ;;  %v8340_v53 = vld [vmem:[#allocation10 + $0x70] ss:$8 sps:$4 sm:$0xff]  }
 0x412   : > { %5913 = vmatprep.subr.bf16.mxu1 %v8261_v0  ;;  %v8345_v0 = vld [vmem:[#allocation10 + $0x64] ss:$8 sps:$4 sm:$0xff]  }
 0x414   : > { %5873 = vmatpush1.bf16.msra.mxu0 %v8256_v50 }
 0x415   : > { %5914 = vmatpush1.bf16.msra.mxu1 %v8259_v51  ;;  %5874 = vmatprep.subr.bf16.mxu0 %v8264_v52  ;;  %v8343_v52 = vld [vmem:[#allocation10 + $0x60] ss:$8 sps:$4 sm:$0xff]  }
 0x416   : > { %5915 = vmatprep.subr.bf16.mxu1 %v8267_v30 }
 0x418   : > { %5875 = vmatpush1.bf16.msra.mxu0 %v8262_v56 }
 0x419   : > { %5916 = vmatpush1.bf16.msra.mxu1 %v8265_v61  ;;  %5876 = vmatprep.subr.bf16.mxu0 %v8270_v35  ;;  %v8348_v61 = vld [vmem:[#allocation10 + $0x54] ss:$8 sps:$4 sm:$0xff]  }
 0x41a   : > { %5917 = vmatprep.subr.bf16.mxu1 %v8273_v57 }
 0x41c   : > { %5877 = vmatpush1.bf16.msra.mxu0 %v8268_v16  ;;  %v8346_v16 = vld [vmem:[#allocation10 + $0x50] ss:$8 sps:$4 sm:$0xff]  }
 0x41d   : > { %5918 = vmatpush1.bf16.msra.mxu1 %v8271_v58  ;;  %5878 = vmatprep.subr.bf16.mxu0 %v8276_v62 }
 0x41e   : > { %5919 = vmatprep.subr.bf16.mxu1 %v8279_v36  ;;  %v8351_v36 = vld [vmem:[#allocation10 + $0x44] ss:$8 sps:$4 sm:$0xff]  }
 0x420   : > { %5879 = vmatpush1.bf16.msra.mxu0 %v8274_v1  ;;  %v8388_v1 = vld [vmem:[#allocation10 + $0x170] ss:$8 sps:$4 sm:$0xff]  }
 0x421   : > { %5920 = vmatpush1.bf16.msra.mxu1 %v8277_v63  ;;  %5880 = vmatprep.subr.bf16.mxu0 %v8282_v15  ;;  %v8393_v63 = vld [vmem:[#allocation10 + $0x164] ss:$8 sps:$4 sm:$0xff]   ;;  %v8391_v15 = vld [vmem:[#allocation10 + $0x160] ss:$8 sps:$4 sm:$0xff]  }
 0x422   : > { %5921 = vmatprep.subr.bf16.mxu1 %v8285_v18  ;;  %v8354_v18 = vld [vmem:[#allocation10 + $0x34] ss:$8 sps:$4 sm:$0xff]  }
 0x424   : > { %5881 = vmatpush1.bf16.msra.mxu0 %v8280_v3  ;;  %v8396_v3 = vld [vmem:[#allocation10 + $0x154] ss:$8 sps:$4 sm:$0xff]  }
 0x425   : > { %5922 = vmatpush1.bf16.msra.mxu1 %v8283_v4  ;;  %5882 = vmatprep.subr.bf16.mxu0 %v8288_v21  ;;  %v8352_v4 = vld [vmem:[#allocation10 + $0x30] ss:$8 sps:$4 sm:$0xff]  }
 0x426   : > { %5923 = vmatprep.subr.bf16.mxu1 %v8291_v25  ;;  %v8394_v21 = vld [vmem:[#allocation10 + $0x150] ss:$8 sps:$4 sm:$0xff]   ;;  %v8357_v25 = vld [vmem:[#allocation10 + $0x24] ss:$8 sps:$4 sm:$0xff]  }
 0x428   : > { %5883 = vmatpush1.bf16.msra.mxu0 %v8286_v5  ;;  %v8399_v5 = vld [vmem:[#allocation10 + $0x144] ss:$8 sps:$4 sm:$0xff]  }
 0x429   : > { %5924 = vmatpush1.bf16.msra.mxu1 %v8289_v7  ;;  %5884 = vmatprep.subr.bf16.mxu0 %v8294_v38  ;;  %v8355_v7 = vld [vmem:[#allocation10 + $0x20] ss:$8 sps:$4 sm:$0xff]  }
 0x42a   : > { %5925 = vmatprep.subr.bf16.mxu1 %v8297_v10  ;;  %v8397_v38 = vld [vmem:[#allocation10 + $0x140] ss:$8 sps:$4 sm:$0xff]   ;;  %v8360_v10 = vld [vmem:[#allocation10 + $0x14] ss:$8 sps:$4 sm:$0xff]  }
 0x42c   : > { %5885 = vmatpush2.bf16.msra.mxu0 %v8292_v12  ;;  %v8402_v12 = vld [vmem:[#allocation10 + $0x134] ss:$8 sps:$4 sm:$0xff]  }
 0x42d   : > { %5926 = vmatpush2.bf16.msra.mxu1 %v8295_v41  ;;  %5886 = vmatprep.subr.bf16.mxu0 %v8300_v40  ;;  %v8358_v41 = vld [vmem:[#allocation10 + $0x10] ss:$8 sps:$4 sm:$0xff]  }
 0x42e   : > { %5927 = vmatprep.subr.bf16.mxu1 %v8303_v14  ;;  %v8400_v40 = vld [vmem:[#allocation10 + $0x130] ss:$8 sps:$4 sm:$0xff]   ;;  %v8363_v14 = vld [vmem:[#allocation10 + $0x4] ss:$8 sps:$4 sm:$0xff]  }
 0x430   : > { %5887 = vmatpush2.bf16.msra.mxu0 %v8298_v29  ;;  %v8405_v29 = vld [vmem:[#allocation10 + $0x124] ss:$8 sps:$4 sm:$0xff]  }
 0x431   : > { %5928 = vmatpush2.bf16.msra.mxu1 %v8301_v19  ;;  %5888 = vmatprep.subr.bf16.mxu0 %v8306_v23  ;;  %v8361_v19 = vld [vmem:[#allocation10] ss:$8 sps:$4 sm:$0xff]  }
 0x432   : > { %5929 = vmatprep.subr.bf16.mxu1 %v8309_v24  ;;  %v8403_v23 = vld [vmem:[#allocation10 + $0x120] ss:$8 sps:$4 sm:$0xff]   ;;  %v8366_v24 = vld [vmem:[#allocation10 + $0xf4] ss:$8 sps:$4 sm:$0xff]  }
 0x434   : > { %5889 = vmatpush2.bf16.msra.mxu0 %v8304_v54  ;;  %v8408_v54 = vld [vmem:[#allocation10 + $0x114] ss:$8 sps:$4 sm:$0xff]  }
 0x435   : > { %5930 = vmatpush2.bf16.msra.mxu1 %v8307_v44  ;;  %5890 = vmatprep.subr.bf16.mxu0 %v8312_v27  ;;  %v8364_v44 = vld [vmem:[#allocation10 + $0xf0] ss:$8 sps:$4 sm:$0xff]  }
 0x436   : > { %5931 = vmatprep.subr.bf16.mxu1 %v8315_v60  ;;  %v8406_v27 = vld [vmem:[#allocation10 + $0x110] ss:$8 sps:$4 sm:$0xff]   ;;  %v8369_v60 = vld [vmem:[#allocation10 + $0xe4] ss:$8 sps:$4 sm:$0xff]  }
 0x438   : > { %5891 = vmatpush2.bf16.msra.mxu0 %v8310_v28  ;;  %v8411_v28 = vld [vmem:[#allocation10 + $0x104] ss:$8 sps:$4 sm:$0xff]  }
 0x439   : > { %5932 = vmatpush2.bf16.msra.mxu1 %v8313_v31  ;;  %5892 = vmatprep.subr.bf16.mxu0 %v8318_v34  ;;  %v8367_v31 = vld [vmem:[#allocation10 + $0xe0] ss:$8 sps:$4 sm:$0xff]  }
 0x43a   : > { %5933 = vmatprep.subr.bf16.mxu1 %v8321_v37  ;;  %v8409_v34 = vld [vmem:[#allocation10 + $0x100] ss:$8 sps:$4 sm:$0xff]   ;;  %v8372_v37 = vld [vmem:[#allocation10 + $0xd4] ss:$8 sps:$4 sm:$0xff]  }
 0x43c   : > { %5893 = vmatpush2.bf16.msra.mxu0 %v8316_v17  ;;  %v8414_v17 = vld [vmem:[#allocation10 + $0x1f4] ss:$8 sps:$4 sm:$0xff]  }
 0x43d   : > { %5934 = vmatpush2.bf16.msra.mxu1 %v8319_v39  ;;  %5894 = vmatprep.subr.bf16.mxu0 %v8324_v42  ;;  %v8370_v39 = vld [vmem:[#allocation10 + $0xd0] ss:$8 sps:$4 sm:$0xff]  }
 0x43e   : > { %5935 = vmatprep.subr.bf16.mxu1 %v8327_v43  ;;  %v8412_v42 = vld [vmem:[#allocation10 + $0x1f0] ss:$8 sps:$4 sm:$0xff]   ;;  %v8375_v43 = vld [vmem:[#allocation10 + $0xc4] ss:$8 sps:$4 sm:$0xff]  }
 0x440   : > { %5895 = vmatpush2.bf16.msra.mxu0 %v8322_v22  ;;  %v8417_v22 = vld [vmem:[#allocation10 + $0x1e4] ss:$8 sps:$4 sm:$0xff]  }
 0x441   : > { %5936 = vmatpush2.bf16.msra.mxu1 %v8325_v45  ;;  %5896 = vmatprep.subr.bf16.mxu0 %v8330_v59  ;;  %v8373_v45 = vld [vmem:[#allocation10 + $0xc0] ss:$8 sps:$4 sm:$0xff]  }
 0x442   : > { %5937 = vmatprep.subr.bf16.mxu1 %v8333_v46  ;;  %v8415_v59 = vld [vmem:[#allocation10 + $0x1e0] ss:$8 sps:$4 sm:$0xff]   ;;  %v8378_v46 = vld [vmem:[#allocation10 + $0xb4] ss:$8 sps:$4 sm:$0xff]  }
 0x444   : > { %5897 = vmatpush2.bf16.msra.mxu0 %v8328_v47  ;;  %v8376_v47 = vld [vmem:[#allocation10 + $0xb0] ss:$8 sps:$4 sm:$0xff]  }
 0x445   : > { %5938 = vmatpush2.bf16.msra.mxu1 %v8331_v55  ;;  %5898 = vmatprep.subr.bf16.mxu0 %v8336_v13  ;;  %v8381_v55 = vld [vmem:[#allocation10 + $0xa4] ss:$8 sps:$4 sm:$0xff]   ;;  %v8379_v13 = vld [vmem:[#allocation10 + $0xa0] ss:$8 sps:$4 sm:$0xff]  }
 0x446   : > { %5939 = vmatprep.subr.bf16.mxu1 %v8339_v20  ;;  %v8384_v20 = vld [vmem:[#allocation10 + $0x94] ss:$8 sps:$4 sm:$0xff]  }
 0x448   : > { %5899 = vmatpush2.bf16.msra.mxu0 %v8334_v26  ;;  %v9727_v26 = vld [vmem:[#allocation8] sm:$0xf] }
 0x449   : > { %5940 = vmatpush2.bf16.msra.mxu1 %v8337_v48  ;;  %6354 = vmatprep.subr.bf16.mxu0 %v8342_v49  ;;  %v8382_v48 = vld [vmem:[#allocation10 + $0x90] ss:$8 sps:$4 sm:$0xff]   ;;  %v8387_v49 = vld [vmem:[#allocation10 + $0x84] ss:$8 sps:$4 sm:$0xff]  }
 0x44b   : > { %v9717_v50 = vpop.f32.mrf.mxu0  ;;  %5901 = vmatmul.mubr.bf16.vlgmr.msra.gmra.mxu0 %v9705_v32  ;;  %v8390_v32 = vld [vmem:[#allocation10 + $0x174] ss:$8 sps:$4 sm:$0xff]  }
 0x44c   : > { %v9719_v51 = vpop.f32.mrf.mxu1  ;;  %5942 = vmatmul.mubr.bf16.vlgmr.msra.gmra.mxu1 %v9707_v33  ;;  %6355 = vmatpush1.bf16.msra.mxu0 %v8340_v53  ;;  %v8349_v33 = vld [vmem:[#allocation10 + $0x40] ss:$8 sps:$4 sm:$0xff]   ;;  %v4325_v53 = vrot.slane %v9727_v26, %v9658_v9 }
 0x44d   : > { %v9723_v30 = vpop.f32.mrf.mxu0  ;;  %6356 = vmatprep.subr.bf16.mxu0 %v8345_v0  ;;  %6395 = vmatprep.subr.bf16.mxu1 %v8390_v32  ;;  %v4329_v0 = vrot.slane %v9727_v26, %v9654_v6 }
 0x44e   : > { %v9725_v56 = vpop.f32.mrf.mxu1  ;;  %6396 = vmatpush1.bf16.msra.mxu1 %v8388_v1 }
 0x44f   : > { %v5660_v35 = vpop.f32.mrf.mxu0  ;;  %6397 = vmatprep.subr.bf16.mxu1 %v8393_v63 }
 0x450   : > { %v5701_v57 = vpop.f32.mrf.mxu1  ;;  %6357 = vmatpush1.bf16.msra.mxu0 %v8343_v52  ;;  %v8385_v52 = vld [vmem:[#allocation10 + $0x80] ss:$8 sps:$4 sm:$0xff]   ;;  %v5659_v35 = vadd.f32 %v9723_v30, %v4329_v0 }
 0x451   : > { %v5661_v58 = vpop.f32.mrf.mxu0  ;;  %6358 = vmatprep.subr.bf16.mxu0 %v8348_v61  ;;  %v5657_v61 = vadd.f32 %v9717_v50, %v4325_v53  ;;  %v8420_v57 = vld [vmem:[#allocation10 + $0x1d4] ss:$8 sps:$4 sm:$0xff]   ;;  %v8421_v50 = vld [vmem:[#allocation10 + $0x1c0] ss:$8 sps:$4 sm:$0xff]  }
 0x452   : > { %v5702_v62 = vpop.f32.mrf.mxu1  ;;  %6398 = vmatpush1.bf16.msra.mxu1 %v8391_v15  ;;  %v8418_v58 = vld [vmem:[#allocation10 + $0x1d0] ss:$8 sps:$4 sm:$0xff]   ;;  %v5700_v1 = vadd.f32 %v9725_v56, %v5659_v35  ;;  %v8423_v15 = vld [vmem:[#allocation10 + $0x1c4] ss:$8 sps:$4 sm:$0xff]  }
 0x453   : > { %6399 = vmatprep.subr.bf16.mxu1 %v8396_v3  ;;  %v8429_v56 = vld [vmem:[#allocation10 + $0x1a4] ss:$8 sps:$4 sm:$0xff]  }
 0x454   : > { %6359 = vmatpush1.bf16.msra.mxu0 %v8346_v16  ;;  %v5698_v16 = vadd.f32 %v9719_v51, %v5657_v61 }
 0x455   : > { %6360 = vmatprep.subr.bf16.mxu0 %v8351_v36 }
 0x456   : > { %6400 = vmatpush1.bf16.msra.mxu1 %v8394_v21 }
 0x457   : > { %6401 = vmatprep.subr.bf16.mxu1 %v8399_v5  ;;  %v8426_v5 = vld [vmem:[#allocation10 + $0x1b4] ss:$8 sps:$4 sm:$0xff]  }
 0x458   : > { %6361 = vmatpush1.bf16.msra.mxu0 %v8349_v33 }
 0x459   : > { %6362 = vmatprep.subr.bf16.mxu0 %v8354_v18 }
 0x45a   : > { %6402 = vmatpush1.bf16.msra.mxu1 %v8397_v38  ;;  %v8427_v38 = vld [vmem:[#allocation10 + $0x1a0] ss:$8 sps:$4 sm:$0xff]  }
 0x45b   : > { %6403 = vmatprep.subr.bf16.mxu1 %v8402_v12  ;;  %v8430_v12 = vld [vmem:[#allocation10 + $0x190] ss:$8 sps:$4 sm:$0xff]  }
 0x45c   : > { %6363 = vmatpush1.bf16.msra.mxu0 %v8352_v4 }
 0x45d   : > { %6364 = vmatprep.subr.bf16.mxu0 %v8357_v25 }
 0x45e   : > { %6404 = vmatpush1.bf16.msra.mxu1 %v8400_v40 }
 0x45f   : > { %6405 = vmatprep.subr.bf16.mxu1 %v8405_v29 }
 0x460   : > { %6365 = vmatpush1.bf16.msra.mxu0 %v8355_v7  ;;  %v8424_v7 = vld [vmem:[#allocation10 + $0x1b0] ss:$8 sps:$4 sm:$0xff]  }
 0x461   : > { %6366 = vmatprep.subr.bf16.mxu0 %v8360_v10  ;;  %v8432_v10 = vld [vmem:[#allocation10 + $0x194] ss:$8 sps:$4 sm:$0xff]  }
 0x462   : > { %6406 = vmatpush1.bf16.msra.mxu1 %v8403_v23 }
 0x463   : > { %6407 = vmatprep.subr.bf16.mxu1 %v8408_v54 }
 0x464   : > { %6367 = vmatpush1.bf16.msra.mxu0 %v8358_v41  ;;  %v8435_v41 = vld [vmem:[#allocation10 + $0x184] ss:$8 sps:$4 sm:$0xff]  }
 0x465   : > { %6368 = vmatprep.subr.bf16.mxu0 %v8363_v14  ;;  %v8433_v14 = vld [vmem:[#allocation10 + $0x180] ss:$8 sps:$4 sm:$0xff]  }
 0x466   : > { %6408 = vmatpush1.bf16.msra.mxu1 %v8406_v27 }
 0x467   : > { %6409 = vmatprep.subr.bf16.mxu1 %v8411_v28 }
 0x468   : > { %6369 = vmatpush1.bf16.msra.mxu0 %v8361_v19 }
 0x469   : > { %6370 = vmatprep.subr.bf16.mxu0 %v8366_v24 }
 0x46a   : > { %6410 = vmatpush1.bf16.msra.mxu1 %v8409_v34 }
 0x46b   : > { %6411 = vmatprep.subr.bf16.mxu1 %v8414_v17  ;;  %v8437_v17 = vld [vmem:[#allocation13 + $0x38] sm:$0xff]  }
 0x46c   : > { %6371 = vmatpush2.bf16.msra.mxu0 %v8364_v44 }
 0x46d   : > { %6372 = vmatprep.subr.bf16.mxu0 %v8369_v60 }
 0x46e   : > { %6412 = vmatpush2.bf16.msra.mxu1 %v8412_v42  ;;  %v8439_v42 = vld [vmem:[#allocation13 + $0x30] sm:$0xff]  }
 0x46f   : > { %6413 = vmatprep.subr.bf16.mxu1 %v8417_v22  ;;  %v8441_v22 = vld [vmem:[#allocation13 + $0x28] sm:$0xff]  }
 0x470   : > { %6373 = vmatpush2.bf16.msra.mxu0 %v8367_v31 }
 0x471   : > { %6374 = vmatprep.subr.bf16.mxu0 %v8372_v37  ;;  %v8436_v37 = vld [vmem:[#allocation13 + $0x78] sm:$0xff]  }
 0x472   : > { %6414 = vmatpush2.bf16.msra.mxu1 %v8415_v59  ;;  %v4337_v59 = vrot.slane %v9727_v26, %v4014_v8 }
 0x473   : > { %6415 = vmatprep.subr.bf16.mxu1 %v8420_v57 }
 0x474   : > { %6375 = vmatpush2.bf16.msra.mxu0 %v8370_v39  ;;  %v8438_v39 = vld [vmem:[#allocation13 + $0x70] sm:$0xff]  }
 0x475   : > { %6376 = vmatprep.subr.bf16.mxu0 %v8375_v43  ;;  %v8440_v43 = vld [vmem:[#allocation13 + $0x68] sm:$0xff]  }
 0x476   : > { %6416 = vmatpush2.bf16.msra.mxu1 %v8418_v58 }
 0x477   : > { %6417 = vmatprep.subr.bf16.mxu1 %v8423_v15  ;;  %v8444_v15 = vld [vmem:[#allocation13 + $0x58] sm:$0xff]  }
 0x478   : > { %6377 = vmatpush2.bf16.msra.mxu0 %v8373_v45  ;;  %v4333_v45 = vrot.slane %v9727_v26, %v4010_v11 }
 0x479   : > { %6378 = vmatprep.subr.bf16.mxu0 %v8378_v46 }
 0x47a   : > { %6418 = vmatpush2.bf16.msra.mxu1 %v8421_v50  ;;  %v8446_v50 = vld [vmem:[#allocation13 + $0x50] sm:$0xff]  }
 0x47b   : > { %6419 = vmatprep.subr.bf16.mxu1 %v8426_v5  ;;  %v8452_v5 = vld [vmem:[#allocation16 + $0x38] sm:$0xff]  }
 0x47c   : > { %6379 = vmatpush2.bf16.msra.mxu0 %v8376_v47 }
 0x47d   : > { %6380 = vmatprep.subr.bf16.mxu0 %v8381_v55 }
 0x47e   : > { %6420 = vmatpush2.bf16.msra.mxu1 %v8424_v7  ;;  %v8844_v7 = vmov 0.0  }
 0x47f   : > { %6421 = vmatprep.subr.bf16.mxu1 %v8429_v56  ;;  %v8453_v56 = vld [vmem:[#allocation16 + $0x30] sm:$0xff]  }
 0x480   : > { %6381 = vmatpush2.bf16.msra.mxu0 %v8379_v13 }
 0x481   : > { %6382 = vmatprep.subr.bf16.mxu0 %v8384_v20 }
 0x482   : > { %6422 = vmatpush2.bf16.msra.mxu1 %v8427_v38  ;;  %v6022_v38 = vld [vmem:[#allocation11] sm:$0x3] }
 0x483   : > { %6423 = vmatprep.subr.bf16.mxu1 %v8432_v10  ;;  %v6027_v10 = vrot.slane %v6022_v38, %v9658_v9  ;;  %v8456_v9 = vld [vmem:[#allocation16 + $0x18] sm:$0xff]  }
 0x484   : > { %6383 = vmatpush2.bf16.msra.mxu0 %v8382_v48 }
 0x485   : > { %6384 = vmatprep.subr.bf16.mxu0 %v8387_v49 }
 0x486   : > { %6424 = vmatpush2.bf16.msra.mxu1 %v8430_v12  ;;  %v6031_v12 = vrot.slane %v6022_v38, %v9654_v6  ;;  %v8455_v6 = vld [vmem:[#allocation16 + $0x20] sm:$0xff]  }
 0x487   : > { %6425 = vmatprep.subr.bf16.mxu1 %v8435_v41 }
 0x488   : > { %6385 = vmatpush2.bf16.msra.mxu0 %v8385_v52 }
 0x489   : > { %7737 = vmatprep.subr.bf16.mxu0 %v8436_v37  ;;  %v8458_v37 = vld [vmem:[#allocation16 + $0x8] sm:$0xff]  }
 0x48a   : > { %6426 = vmatpush2.bf16.msra.mxu1 %v8433_v14 }
 0x48b   : > { %v5738_v62 = vpop.f32.mrf.mxu0  ;;  %7768 = vmatprep.subr.bf16.mxu1 %v8844_v7 }
 0x48c   : > { %v5779_v36 = vpop.f32.mrf.mxu1  ;;  %v5739_v32 = vadd.f32 %v5738_v62, %v5698_v16 }
 0x48d   : > { %v5740_v63 = vpop.f32.mrf.mxu0 }
 0x48e   : > { %v5781_v33 = vpop.f32.mrf.mxu1  ;;  %v5780_v18 = vadd.f32 %v5779_v36, %v5739_v32  ;;  %v5741_v3 = vadd.f32 %v5740_v63, %v5700_v1  ;;  %v8442_v1 = vld [vmem:[#allocation13 + $0x60] sm:$0xff]  }
 0x48f   : > { %v5742_v4 = vpop.f32.mrf.mxu0  ;;  %v8443_v32 = vld [vmem:[#allocation13 + $0x20] sm:$0xff]  }
 0x490   : > { %v5783_v30 = vpop.f32.mrf.mxu1  ;;  %v5782_v21 = vadd.f32 %v5781_v33, %v5741_v3  ;;  %8476 = vtanh.f32 %v5780_v18  ;;  %v8445_v18 = vld [vmem:[#allocation13 + $0x18] sm:$0xff]   ;;  %v8447_v4 = vld [vmem:[#allocation13 + $0x10] sm:$0xff]  }
 0x491   : > { %v5743_v51 = vpop.f32.mrf.mxu0  ;;  %v8448_v30 = vld [vmem:[#allocation13 + $0x48] sm:$0xff]  }
 0x492   : > { %v5784_v25 = vpop.f32.mrf.mxu1  ;;  %8478 = vtanh.f32 %v5782_v21  ;;  %v8449_v21 = vld [vmem:[#allocation13 + $0x8] sm:$0xff]   ;;  %v8450_v51 = vld [vmem:[#allocation13 + $0x40] sm:$0xff]  }
 0x493   : > { %v8451_v25 = vld [vmem:[#allocation13] sm:$0xff]  }
 0x49d   : > { %v8477_v40 = vpop.eup %8476 }
 0x49e   : > { %v5954_v23 = vpack.c.bf16 %v8477_v40, %v8477_v40 }
 0x49f   : > { %v8479_v29 = vpop.eup %8478 }
 0x4a0   : > { %v5955_v19 = vpack.c.bf16 %v8479_v29, %v8479_v29 }
 0x4a2   : > { %6386 = vmatprep.mubr.bf16.mxu0 %v5955_v19 }
 0x4a3   : > { %6387 = vmatmul.mubr.bf16.vlgmr.msra.gmra.mxu0 %v5954_v23 }
 0x4a4   : > { %7738 = vmatpush3.bf16.msra.mxu0 %v8437_v17  ;;  %v8459_v17 = vld [vmem:[#allocation16] sm:$0xff]  }
 0x4a5   : > { %7739 = vmatprep.subr.bf16.mxu0 %v8438_v39 }
 0x4a8   : > { %7740 = vmatpush3.bf16.msra.mxu0 %v8439_v42  ;;  %v7705_v42 = vld [vmem:[#allocation14] ss:$0 sm:$0xff] }
 0x4a9   : > { %7741 = vmatprep.subr.bf16.mxu0 %v8440_v43 }
 0x4ac   : > { %7742 = vmatpush3.bf16.msra.mxu0 %v8441_v22 }
 0x4ad   : > { %7743 = vmatprep.subr.bf16.mxu0 %v8442_v1 }
 0x4b0   : > { %7744 = vmatpush3.bf16.msra.mxu0 %v8443_v32 }
 0x4b1   : > { %7745 = vmatprep.subr.bf16.mxu0 %v8444_v15 }
 0x4b4   : > { %7746 = vmatpush3.bf16.msra.mxu0 %v8445_v18 }
 0x4b5   : > { %7747 = vmatprep.subr.bf16.mxu0 %v8446_v50 }
 0x4b8   : > { %7748 = vmatpush3.bf16.msra.mxu0 %v8447_v4 }
 0x4b9   : > { %7749 = vmatprep.subr.bf16.mxu0 %v8448_v30 }
 0x4bc   : > { %7750 = vmatpush3.bf16.msra.mxu0 %v8449_v21 }
 0x4bd   : > { %7751 = vmatprep.subr.bf16.mxu0 %v8450_v51 }
 0x4c0   : > { %7752 = vmatpush3.bf16.msra.mxu0 %v8451_v25 }
 0x4cb   : > { %v5820_v24 = vpop.f32.mrf.mxu0 }
 0x4cc   : > { %v5861_v54 = vpop.f32.mrf.mxu1  ;;  %v5821_v46 = vadd.f32 %v5820_v24, %v4333_v45 }
 0x4cd   : > { %v5822_v44 = vpop.f32.mrf.mxu0 }
 0x4ce   : > { %v5863_v27 = vpop.f32.mrf.mxu1  ;;  %v5823_v47 = vadd.f32 %v5822_v44, %v4337_v59  ;;  %v5862_v55 = vadd.f32 %v5861_v54, %v5821_v46 }
 0x4cf   : > { %v5824_v60 = vpop.f32.mrf.mxu0 }
 0x4d0   : > { %v5865_v28 = vpop.f32.mrf.mxu1  ;;  %v5864_v48 = vadd.f32 %v5863_v27, %v5823_v47 }
 0x4d1   : > { %v5825_v31 = vpop.f32.mrf.mxu0 }
 0x4d2   : > { %v5866_v34 = vpop.f32.mrf.mxu1  ;;  %v8454_v31 = vld [vmem:[#allocation16 + $0x28] sm:$0xff]  }
 0x4d3   : > { %v8457_v34 = vld [vmem:[#allocation16 + $0x10] sm:$0xff]  }
 0x50b   : > { %v5902_v13 = vpop.f32.mrf.mxu0 }
 0x50c   : > { %v5943_v20 = vpop.f32.mrf.mxu1  ;;  %v5903_v49 = vadd.f32 %v5902_v13, %v5862_v55  ;;  %v7722_v13 = vld [vmem:[#allocation17] ss:$0 sm:$0xff] }
 0x50d   : > { %v5904_v53 = vpop.f32.mrf.mxu0 }
 0x50e   : > { %v5945_v0 = vpop.f32.mrf.mxu1  ;;  %v5944_v52 = vadd.f32 %v5943_v20, %v5903_v49  ;;  %v5905_v61 = vadd.f32 %v5904_v53, %v5864_v48 }
 0x50f   : > { %v5906_v35 = vpop.f32.mrf.mxu0 }
 0x510   : > { %v5947_v57 = vpop.f32.mrf.mxu1  ;;  %v5946_v16 = vadd.f32 %v5945_v0, %v5905_v61  ;;  %8480 = vtanh.f32 %v5944_v52 }
 0x511   : > { %v5907_v11 = vpop.f32.mrf.mxu0 }
 0x512   : > { %v5948_v58 = vpop.f32.mrf.mxu1  ;;  %8482 = vtanh.f32 %v5946_v16 }
 0x51d   : > { %v8481_v2 = vpop.eup %8480 }
 0x51e   : > { %v5956_v62 = vpack.c.bf16 %v8481_v2, %v8481_v2 }
 0x51f   : > { %v8483_v8 = vpop.eup %8482 }
 0x520   : > { %v5957_v26 = vpack.c.bf16 %v8483_v8, %v8483_v8 }
 0x522   : > { %6427 = vmatprep.mubr.bf16.mxu1 %v5957_v26 }
 0x523   : > { %6428 = vmatmul.mubr.bf16.vlgmr.msra.gmra.mxu1 %v5956_v62 }
 0x524   : > { %7769 = vmatpush3.bf16.msra.mxu1 %v8452_v5  ;;  %7784 = vmatprep.mubr.msk.bf16.mxu1 %vm8845_vm0, %v8844_v7 }
 0x525   : > { %7770 = vmatprep.subr.bf16.mxu1 %v8844_v7 }
 0x528   : > { %7771 = vmatpush3.bf16.msra.mxu1 %v8453_v56 }
 0x529   : > { %7772 = vmatprep.subr.bf16.mxu1 %v8844_v7 }
 0x52c   : > { %7773 = vmatpush3.bf16.msra.mxu1 %v8454_v31 }
 0x52d   : > { %7774 = vmatprep.subr.bf16.mxu1 %v8844_v7 }
 0x530   : > { %7775 = vmatpush3.bf16.msra.mxu1 %v8455_v6 }
 0x531   : > { %7776 = vmatprep.subr.bf16.mxu1 %v8844_v7 }
 0x534   : > { %7777 = vmatpush3.bf16.msra.mxu1 %v8456_v9 }
 0x535   : > { %7778 = vmatprep.subr.bf16.mxu1 %v8844_v7 }
 0x538   : > { %7779 = vmatpush3.bf16.msra.mxu1 %v8457_v34 }
 0x539   : > { %7780 = vmatprep.subr.bf16.mxu1 %v8844_v7 }
 0x53c   : > { %7781 = vmatpush3.bf16.msra.mxu1 %v8458_v37 }
 0x53d   : > { %7782 = vmatprep.subr.bf16.mxu1 %v8844_v7 }
 0x540   : > { %7783 = vmatpush3.bf16.msra.mxu1 %v8459_v17 }
 0x563   : > { %v6388_v36 = vpop.f32.mrf.mxu0 }
 0x564   : > { %v6389_v41 = vadd.f32 %v6388_v36, %v6027_v10 }
 0x565   : > { %v6390_v63 = vpop.f32.mrf.mxu0 }
 0x566   : > { %v6391_v14 = vadd.f32 %v6390_v63, %v6031_v12 }
 0x567   : > { %v6392_v33 = vpop.f32.mrf.mxu0 }
 0x569   : > { %v6393_v3 = vpop.f32.mrf.mxu0 }
 0x5e3   : > { %v6429_v40 = vpop.f32.mrf.mxu1 }
 0x5e4   : > { %v6430_v29 = vadd.f32 %v6429_v40, %v6389_v41 }
 0x5e5   : > { %v6431_v19 = vpop.f32.mrf.mxu1 }
 0x5e6   : > { %v6432_v23 = vadd.f32 %v6431_v19, %v6391_v14  ;;  %8484 = vtanh.f32 %v6430_v29 }
 0x5e7   : > { %v6433_v24 = vpop.f32.mrf.mxu1 }
 0x5e8   : > { %8486 = vtanh.f32 %v6432_v23 }
 0x5e9   : > { %v6434_v54 = vpop.f32.mrf.mxu1 }
 0x5f3   : > { %v8485_v44 = vpop.eup %8484 }
 0x5f4   : > { %v6438_v28 = vpack.c.bf16 %v8485_v44, %v8485_v44 }
 0x5f5   : > { %v8487_v27 = vpop.eup %8486 }
 0x5f6   : > { %v6439_v60 = vpack.c.bf16 %v8487_v27, %v8487_v27 }
 0x5f8   : > { %6607 = vmatprep.mubr.bf16.mxu0 %v6439_v60 }
 0x5f9   : > { %6608 = vmatmul.mubr.bf16.vlgmr.msra.gmra.mxu0 %v6438_v28 }
 0x6b9   : > { %v7753_v39 = vpop.f32.mrf.mxu0 }
 0x6bb   : > { %v7754_v43 = vpop.f32.mrf.mxu0 }
 0x6bc   : > { %v7755_v22 = vadd.f32 %v7754_v43, %v7753_v39 }
 0x6bd   : > { %v7756_v45 = vpop.f32.mrf.mxu0 }
 0x6be   : > { %v6610_v59 = vadd.f32 %v7755_v22, %v7705_v42 }
 0x6bf   : > { %v7757_v46 = vpop.f32.mrf.mxu0 }
 0x6c0   : > { %8488 = vtanh.f32 %v6610_v59 }
 0x6cd   : > { %v8489_v47 = vpop.eup %8488 }
 0x6ce   : > { %v6616_v55 = vpack.c.bf16 %v8489_v47, %v8489_v47 }
 0x6d0   : > { %7785 = vmatmul.mubr.bf16.vlgmr.msra.gmra.mxu1 %v6616_v55 }
 0x790   : > { %v6722_v20 = vpop.f32.mrf.mxu1 }
 0x791   : > { %v6723_v48 = vadd.f32 %v7722_v13, %v6722_v20 }
 0x792   : > { %v7786_v49 = vpop.f32.mrf.mxu1 }
 0x793   : > { %6728 = vst [vmem:[%s9777_s11] sm:$0xff] %v6723_v48 }
 0x794   : > { %v6725_v53 = vpop.f32.mrf.mxu1 }
 0x796   : > { %v7787_v0 = vpop.f32.mrf.mxu1 }
 0x797 PF: > { %s29_s22 = sadd.s32 1, %s8822_s22   ;;  %s9798_s17 = smov %s8806_s18 }
 0x798   : > { %p26_p5 = scmp.ge.s32.totalorder %s29_s22, 9   ;;  %s9799_s18 = smov %s8810_s19 }
 0x799   : > { %s9800_s19 = smov %s9052_s29  ;;  %s9801_s20 = smov %s8818_s21 }
 0x79a   : > { %s9802_s21 = smov %s9804_s14  ;;  %28 = sbr.rel (!%p26_p5) target bundleno = 14 (0xe), region = 151 }
 0x79f   :  { %6748 = vsyncpa [#allocation4], 1 }
 0x7a0   :  { %6750 = vsyncpa [#allocation4 + $0x1], 1 }
 0x7a1   :  { %6751 = vsyncpa [#allocation6], 1 }
 0x7a2   :  { %6752 = vsyncpa [#allocation9], 1 }
 0x7a3   :  { %6753 = vsyncpa [#allocation12], 1 }
 0x7a4   :  { %6754 = vsyncpa [#allocation15], 1 }
 0x7a5   :  { %6755 = vsyncpa [#allocation18], 1 }

</bundles_post_ra>
